<compile_context>
chip_gen: v7x
topology: tpu7x:2x2x1
jax: 0.10.0
libtpu: 0.0.40
codegen_flags: <defaults>
</compile_context>

<pallas_src>
import math
import functools
import numpy as np
import jax
import jax.numpy as jnp
from jax import lax
from jax.experimental import pallas as pl
from jax.experimental.pallas import tpu as pltpu

LRELU_SLOPE = 0.2
LRELU_GAIN = math.sqrt(2.0)


# --------------------------------------------------------------------------------------
# Mapping network kernel: x = z * rsqrt(mean(z^2)+eps) ; then N equalized dense + lrelu
# --------------------------------------------------------------------------------------
def _mapping_kernel(z_ref, w_ref, b_ref, o_ref, *, n_layers, normalize):
    x = z_ref[...].astype(jnp.float32)                      # (N, F)
    if normalize:
        x = x * lax.rsqrt(jnp.mean(x * x, axis=1, keepdims=True) + 1e-8)
    for i in range(n_layers):
        w = w_ref[i].astype(jnp.bfloat16)                   # (F, F) (lr/he scaled)
        b = b_ref[i]                                        # (1, F)
        x = jnp.dot(x.astype(jnp.bfloat16), w,
                    preferred_element_type=jnp.float32) + b
        x = jnp.where(x >= 0.0, x, LRELU_SLOPE * x) * LRELU_GAIN
    o_ref[...] = x


def g_mapping(z, w_stack, b_stack, normalize=True):
    n_layers = w_stack.shape[0]
    kern = functools.partial(_mapping_kernel, n_layers=n_layers, normalize=normalize)
    return pl.pallas_call(
        kern,
        out_shape=jax.ShapeDtypeStruct((z.shape[0], w_stack.shape[-1]), jnp.float32),
    )(z, w_stack, b_stack)


# --------------------------------------------------------------------------------------
# Fused modulated conv2d kernel (StyleGAN2 style):
#   style affine -> input modulation -> in-kernel tap stacking -> single bf16 MXU matmul
#   -> output demodulation -> bias -> lrelu -> RGB skip add.
# All samples are handled in one invocation (no grid); batch+spatial live on the lane axis.
# --------------------------------------------------------------------------------------
def _modconv_kernel(*refs, ksize, wp, demodulate, act, has_skip):
    it = iter(refs)
    xe_ref = next(it)        # (Cin, Lext)    f32   padded-flat activations (+halo zeros)
    seg_ref = next(it)       # (N,   Lext)    f32   per-sample one-hot over flat axis
    w_ref = next(it)         # (Cout, kk*Cin) bf16  shared (unmodulated) conv weight
    aff_wT_ref = next(it)    # (Cin, D)       f32   style-affine weight (pre-transposed)
    aff_b_ref = next(it)     # (Cin, 1)       f32
    dlatT_ref = next(it)     # (D, N)         f32   dlatent rows (pre-transposed)
    b_ref = next(it)         # (Cout, 1)      f32   conv bias
    w2_ref = next(it) if demodulate else None     # (Cout, Cin) f32  sum_t w_t^2
    yskip_ref = next(it) if has_skip else None    # (Cout, Lout) f32 RGB skip
    o_ref = next(it)         # (Cout, Lout)   f32
    patch_ref = next(it) if ksize > 1 else None   # VMEM scratch (kk*Cin, Lout) bf16

    cin = xe_ref.shape[0]
    lext = xe_ref.shape[1]
    l_out = o_ref.shape[1]
    sh = (lext - l_out) // 2                      # halo length (0 for 1x1)

    # fused style affine: s_t[cin, n] = aff_w^T @ dlat^T + b   (all plain NN matmuls)
    s_t = jnp.dot(aff_wT_ref[...], dlatT_ref[...],
                  preferred_element_type=jnp.float32) + aff_b_ref[...]

    # modulation: broadcast style over (sample -> flat lane positions) via one-hot matmul
    seg = seg_ref[...]
    s_b = jnp.dot(s_t, seg, preferred_element_type=jnp.float32)    # (Cin, Lext)
    xs = xe_ref[...] * s_b                                          # modulated input, f32

    if ksize == 1:
        acc = jnp.dot(w_ref[...], xs.astype(jnp.bfloat16),
                      preferred_element_type=jnp.float32)
    else:
        # build tap-stacked patches in VMEM: one K = kk*Cin matmul feeds the MXU.
        for dy in range(ksize):
            for dx in range(ksize):
                t = dy * ksize + dx
                start = sh + (dy - ksize // 2) * wp + (dx - ksize // 2)
                patch_ref[t * cin:(t + 1) * cin, :] = (
                    xs[:, start:start + l_out].astype(jnp.bfloat16))
        acc = jnp.dot(w_ref[...], patch_ref[...],
                      preferred_element_type=jnp.float32)           # (Cout, Lout)

    if demodulate:
        # d[cout, n] = rsqrt(sum_cin w2[cout,cin] * s[n,cin]^2 + eps), f32 throughout
        dsq = jnp.dot(w2_ref[...], s_t * s_t,
                      preferred_element_type=jnp.float32)           # (Cout, N)
        d = lax.rsqrt(dsq + 1e-8)
        acc = acc * jnp.dot(d, seg[:, sh:sh + l_out],
                            preferred_element_type=jnp.float32)     # per-sample demod

    acc = acc + b_ref[...]
    if act:
        acc = jnp.where(acc >= 0.0, acc, LRELU_SLOPE * acc) * LRELU_GAIN
    if has_skip:
        acc = acc + yskip_ref[...]
    o_ref[...] = acc


def modulated_conv2d(x, dlat, p, *, ksize, demodulate, act, y_skip=None):
    """x: (Cin, N, H, W) f32 ; dlat: (N, D) ; returns (Cout, N, H, W) f32."""
    cin, n, h, w = x.shape
    cout = p["b"].shape[0]
    dsz = p["aff_wT"].shape[1]
    kk = ksize * ksize
    pad = ksize // 2
    hp, wp = h + 2 * pad, w + 2 * pad
    sh = (wp + 1) * pad                      # halo in flat coords (0 for 1x1)
    pper = hp * wp
    l_out = n * pper
    lext = l_out + 2 * sh

    xpad = jnp.pad(x, ((0, 0), (0, 0), (pad, pad), (pad, pad))) if pad else x
    xe = xpad.reshape(cin, l_out)            # channel-major padded-flat (~1.3-2.3x x, not 9x)
    if sh:
        xe = jnp.pad(xe, ((0, 0), (sh, sh)))

    # per-sample one-hot over the extended flat axis (constant-folded under jit)
    pos = jnp.arange(lext, dtype=jnp.int32)
    sid = (pos - sh) // pper
    seg = (sid[None, :] == jnp.arange(n, dtype=jnp.int32)[:, None]).astype(jnp.float32)

    args = [xe, seg, p["w_flat"], p["aff_wT"], p["aff_b"], dlat.T, p["b"]]
    if demodulate:
        args.append(p["w2"])
    if y_skip is not None:
        args.append(y_skip.reshape(cout, l_out))
    scratch = []
    if ksize > 1:
        scratch.append(pltpu.VMEM((kk * cin, l_out), jnp.bfloat16))

    flops = (2 * cout * kk * cin * l_out            # main matmul
             + 2 * cin * n * lext + cin * lext      # style broadcast + modulation
             + 2 * cin * dsz * n                    # style affine
             + (2 * cout * cin * n + 2 * cout * n * l_out if demodulate else 0))
    bytes_accessed = (4 * cin * lext + 4 * n * lext + 2 * cout * kk * cin
                      + 4 * cout * l_out
                      + (4 * cout * l_out if y_skip is not None else 0))
    ce = pl.CostEstimate(flops=flops,
                         transcendentals=cout * n if demodulate else 0,
                         bytes_accessed=bytes_accessed)

    kern = functools.partial(_modconv_kernel, ksize=ksize, wp=wp,
                             demodulate=demodulate, act=act,
                             has_skip=y_skip is not None)
    out = pl.pallas_call(
        kern,
        out_shape=jax.ShapeDtypeStruct((cout, l_out), jnp.float32),
        scratch_shapes=scratch,
        cost_estimate=ce,
    )(*args)

    out = out.reshape(cout, n, hp, wp)
    if pad:
        out = out[:, :, pad:pad + h, pad:pad + w]   # drop garbage ring (padded positions)
    return out


def upsample2(x):
    # TODO(synk): GSynthesisBlock source not provided; blur/resample_kernel replaced by
    # nearest-neighbor 2x upsample (plain JAX glue on tiny channel-major activations).
    return jnp.repeat(jnp.repeat(x, 2, axis=2), 2, axis=3)


# --------------------------------------------------------------------------------------
# Deterministic parameter construction (shapes follow the module __init__)
# --------------------------------------------------------------------------------------
def init_params(key, *, latent_size=64, dlatent_size=64, mapping_fmaps=64,
                mapping_layers=8, mapping_lrmul=0.01, resolution=16, num_channels=3,
                fmap_base=64, fmap_decay=1.0, fmap_min=1, fmap_max=64):
    assert latent_size == mapping_fmaps == dlatent_size  # keeps mapping weights stackable
    res_log2 = int(np.log2(resolution))
    num_layers = (res_log2 - 1) * 2

    def nf(stage):
        return int(np.clip(int(fmap_base / 2.0 ** (stage * fmap_decay)), fmap_min, fmap_max))

    keys = iter(jax.random.split(key, 256))
    rnd = lambda shape: jax.random.normal(next(keys), shape, jnp.float32)

    # mapping: equalized dense, runtime scale = lrmul / sqrt(fan_in), bias*lrmul (=0)
    map_scale = mapping_lrmul / math.sqrt(latent_size)
    map_w = rnd((mapping_layers, latent_size, mapping_fmaps)) * map_scale
    map_b = jnp.zeros((mapping_layers, 1, mapping_fmaps), jnp.float32)

    def conv_params(cin, cout, k):
        scale = 1.0 / math.sqrt(cin * k * k)
        w_taps = rnd((k * k, cout, cin)) * scale            # f32 master copy (he-scaled)
        return dict(
            # MXU operand: (Cout, kk*Cin), tap-major K layout, stored bf16
            w_flat=jnp.transpose(w_taps, (1, 0, 2)).reshape(cout, k * k * cin)
                      .astype(jnp.bfloat16),
            # f32 sum_t w_t^2 for demodulation
            w2=jnp.sum(w_taps * w_taps, axis=0),            # (Cout, Cin)
            b=jnp.zeros((cout, 1), jnp.float32),
            aff_wT=jnp.transpose(rnd((dlatent_size, cin)) / math.sqrt(dlatent_size)),
            aff_b=jnp.ones((cin, 1), jnp.float32),
        )

    nf1 = nf(1)
    init = dict(
        const=rnd((nf1, 1, 4, 4)),                          # channel-major const input
        conv=conv_params(nf1, nf1, 3),
        rgb=conv_params(nf1, num_channels, 1),
    )
    blocks = []
    for res in range(3, res_log2 + 1):
        cin, cout = nf(res - 2), nf(res - 1)
        blocks.append(dict(
            c0=conv_params(cin, cout, 3),
            c1=conv_params(cout, cout, 3),
            rgb=conv_params(cout, num_channels, 1),
        ))
    return dict(map_w=map_w, map_b=map_b, init=init, blocks=blocks,
                num_layers=num_layers, num_channels=num_channels)


# --------------------------------------------------------------------------------------
# Generator forward (mapping -> broadcast W -> synthesis, 'skip' architecture)
# --------------------------------------------------------------------------------------
def generator_forward(latents, params, return_dlatents=False):
    n = latents.shape[0]
    wlat = g_mapping(latents, params["map_w"], params["map_b"])        # (N, dlatent)
    dlat = jnp.broadcast_to(wlat[:, None, :],
                            (n, params["num_layers"], wlat.shape[-1]))
    # TODO(synk): truncation trick / style-mixing are training-time features not used in
    # the provided forward(); dlatents are consumed directly, matching the reference.

    def mc(x, p, idx, k, demod, act, y_skip=None):
        return modulated_conv2d(x, dlat[:, idx], p, ksize=k,
                                demodulate=demod, act=act, y_skip=y_skip)

    # init block (4x4)
    ip = params["init"]
    x = jnp.broadcast_to(ip["const"], (ip["const"].shape[0], n, 4, 4))  # (C, N, 4, 4)
    x = mc(x, ip["conv"], 0, 3, True, True)
    # TODO(synk): randomize_noise=True noise injection skipped (noise_strength init = 0).
    y = mc(x, ip["rgb"], 1, 1, False, False)

    # progressive blocks (8x8 ... resolution)
    for bi, bp in enumerate(params["blocks"]):
        res = bi + 3
        x = upsample2(x)
        x = mc(x, bp["c0"], res * 2 - 5, 3, True, True)
        x = mc(x, bp["c1"], res * 2 - 4, 3, True, True)
        y = mc(x, bp["rgb"], res * 2 - 3, 1, False, False, y_skip=upsample2(y))

    images = jnp.transpose(y, (1, 0, 2, 3))                # back to NCHW
    if return_dlatents:
        return images, dlat
    return images


if __name__ == "__main__":
    key = jax.random.PRNGKey(0)
    pkey, zkey = jax.random.split(key)

    BATCH = 2
    LATENT = 64
    RESOLUTION = 16

    params = init_params(pkey, latent_size=LATENT, dlatent_size=LATENT,
                         mapping_fmaps=LATENT, mapping_layers=8,
                         resolution=RESOLUTION, num_channels=3,
                         fmap_base=64, fmap_max=64)
    latents_in = jax.random.normal(zkey, (BATCH, LATENT), jnp.float32)

    fwd = jax.jit(lambda z: generator_forward(z, params))
    images = jax.block_until_ready(fwd(latents_in))

    assert images.shape == (BATCH, 3, RESOLUTION, RESOLUTION), images.shape
    assert bool(jnp.all(jnp.isfinite(images)))
    print("KERNEL_OK")
</pallas_src>

<mosaic_0001>
module attributes {stable_mosaic.version = 11 : i64} {
  func.func @_mapping_kernel(%arg0: memref<2x64xf32, #tpu.memory_space<vmem>>, %arg1: memref<8x64x64xf32, #tpu.memory_space<vmem>>, %arg2: memref<8x1x64xf32, #tpu.memory_space<vmem>>, %arg3: memref<2x64xf32, #tpu.memory_space<vmem>>) attributes {dimension_semantics = [], scalar_prefetch = 0 : i64, scratch_operands = 0 : i64, tpu.core_type = #tpu.core_type<tc>} {
    %c0 = arith.constant 0 : index
    %c0_0 = arith.constant 0 : index
    %0 = vector.load %arg0[%c0, %c0_0] : memref<2x64xf32, #tpu.memory_space<vmem>>, vector<2x64xf32>
    %1 = arith.mulf %0, %0 : vector<2x64xf32>
    %cst = arith.constant dense<0.000000e+00> : vector<2xf32>
    %2 = vector.multi_reduction <add>, %1, %cst [1] : vector<2x64xf32> to vector<2xf32>
    %3 = vector.shape_cast %2 : vector<2xf32> to vector<2x1xf32>
    %cst_1 = arith.constant 6.400000e+01 : f32
    %4 = vector.broadcast %cst_1 : f32 to vector<2x1xf32>
    %5 = arith.divf %3, %4 : vector<2x1xf32>
    %cst_2 = arith.constant 9.99999993E-9 : f32
    %6 = vector.broadcast %cst_2 : f32 to vector<2x1xf32>
    %7 = arith.addf %5, %6 : vector<2x1xf32>
    %8 = math.rsqrt %7 : vector<2x1xf32>
    %9 = vector.broadcast %8 : vector<2x1xf32> to vector<2x64xf32>
    %10 = arith.mulf %0, %9 : vector<2x64xf32>
    %c0_3 = arith.constant 0 : index
    %c0_4 = arith.constant 0 : index
    %c0_5 = arith.constant 0 : index
    %11 = vector.load %arg1[%c0_3, %c0_4, %c0_5] : memref<8x64x64xf32, #tpu.memory_space<vmem>>, vector<1x64x64xf32>
    %12 = vector.shape_cast %11 : vector<1x64x64xf32> to vector<64x64xf32>
    %13 = arith.truncf %12 : vector<64x64xf32> to vector<64x64xbf16>
    %c0_6 = arith.constant 0 : index
    %c0_7 = arith.constant 0 : index
    %c0_8 = arith.constant 0 : index
    %14 = vector.load %arg2[%c0_6, %c0_7, %c0_8] : memref<8x1x64xf32, #tpu.memory_space<vmem>>, vector<1x1x64xf32>
    %15 = vector.shape_cast %14 : vector<1x1x64xf32> to vector<1x64xf32>
    %16 = arith.truncf %10 : vector<2x64xf32> to vector<2x64xbf16>
    %cst_9 = arith.constant dense<0.000000e+00> : vector<2x64xf32>
    %17 = tpu.matmul %16, %13, %cst_9 {dimension_numbers = #tpu.dot_dimension_numbers<[1], [0], [0], [1], [0, 0, 1, 1], [], []>} : vector<2x64xbf16>, vector<64x64xbf16>, vector<2x64xf32> -> vector<2x64xf32>
    %18 = vector.broadcast %15 : vector<1x64xf32> to vector<2x64xf32>
    %19 = arith.addf %17, %18 : vector<2x64xf32>
    %cst_10 = arith.constant 0.000000e+00 : f32
    %20 = vector.broadcast %cst_10 : f32 to vector<2x64xf32>
    %21 = arith.cmpf oge, %19, %20 : vector<2x64xf32>
    %cst_11 = arith.constant 2.000000e-01 : f32
    %22 = vector.broadcast %cst_11 : f32 to vector<2x64xf32>
    %23 = arith.mulf %22, %19 : vector<2x64xf32>
    %24 = arith.select %21, %19, %23 : vector<2x64xi1>, vector<2x64xf32>
    %cst_12 = arith.constant 1.41421354 : f32
    %25 = vector.broadcast %cst_12 : f32 to vector<2x64xf32>
    %26 = arith.mulf %24, %25 : vector<2x64xf32>
    %c1 = arith.constant 1 : index
    %c0_13 = arith.constant 0 : index
    %c0_14 = arith.constant 0 : index
    %27 = vector.load %arg1[%c1, %c0_13, %c0_14] : memref<8x64x64xf32, #tpu.memory_space<vmem>>, vector<1x64x64xf32>
    %28 = vector.shape_cast %27 : vector<1x64x64xf32> to vector<64x64xf32>
    %29 = arith.truncf %28 : vector<64x64xf32> to vector<64x64xbf16>
    %c1_15 = arith.constant 1 : index
    %c0_16 = arith.constant 0 : index
    %c0_17 = arith.constant 0 : index
    %30 = vector.load %arg2[%c1_15, %c0_16, %c0_17] : memref<8x1x64xf32, #tpu.memory_space<vmem>>, vector<1x1x64xf32>
    %31 = vector.shape_cast %30 : vector<1x1x64xf32> to vector<1x64xf32>
    %32 = arith.truncf %26 : vector<2x64xf32> to vector<2x64xbf16>
    %cst_18 = arith.constant dense<0.000000e+00> : vector<2x64xf32>
    %33 = tpu.matmul %32, %29, %cst_18 {dimension_numbers = #tpu.dot_dimension_numbers<[1], [0], [0], [1], [0, 0, 1, 1], [], []>} : vector<2x64xbf16>, vector<64x64xbf16>, vector<2x64xf32> -> vector<2x64xf32>
    %34 = vector.broadcast %31 : vector<1x64xf32> to vector<2x64xf32>
    %35 = arith.addf %33, %34 : vector<2x64xf32>
    %cst_19 = arith.constant 0.000000e+00 : f32
    %36 = vector.broadcast %cst_19 : f32 to vector<2x64xf32>
    %37 = arith.cmpf oge, %35, %36 : vector<2x64xf32>
    %cst_20 = arith.constant 2.000000e-01 : f32
    %38 = vector.broadcast %cst_20 : f32 to vector<2x64xf32>
    %39 = arith.mulf %38, %35 : vector<2x64xf32>
    %40 = arith.select %37, %35, %39 : vector<2x64xi1>, vector<2x64xf32>
    %cst_21 = arith.constant 1.41421354 : f32
    %41 = vector.broadcast %cst_21 : f32 to vector<2x64xf32>
    %42 = arith.mulf %40, %41 : vector<2x64xf32>
    %c2 = arith.constant 2 : index
    %c0_22 = arith.constant 0 : index
    %c0_23 = arith.constant 0 : index
    %43 = vector.load %arg1[%c2, %c0_22, %c0_23] : memref<8x64x64xf32, #tpu.memory_space<vmem>>, vector<1x64x64xf32>
    %44 = vector.shape_cast %43 : vector<1x64x64xf32> to vector<64x64xf32>
    %45 = arith.truncf %44 : vector<64x64xf32> to vector<64x64xbf16>
    %c2_24 = arith.constant 2 : index
    %c0_25 = arith.constant 0 : index
    %c0_26 = arith.constant 0 : index
    %46 = vector.load %arg2[%c2_24, %c0_25, %c0_26] : memref<8x1x64xf32, #tpu.memory_space<vmem>>, vector<1x1x64xf32>
    %47 = vector.shape_cast %46 : vector<1x1x64xf32> to vector<1x64xf32>
    %48 = arith.truncf %42 : vector<2x64xf32> to vector<2x64xbf16>
    %cst_27 = arith.constant dense<0.000000e+00> : vector<2x64xf32>
    %49 = tpu.matmul %48, %45, %cst_27 {dimension_numbers = #tpu.dot_dimension_numbers<[1], [0], [0], [1], [0, 0, 1, 1], [], []>} : vector<2x64xbf16>, vector<64x64xbf16>, vector<2x64xf32> -> vector<2x64xf32>
    %50 = vector.broadcast %47 : vector<1x64xf32> to vector<2x64xf32>
    %51 = arith.addf %49, %50 : vector<2x64xf32>
    %cst_28 = arith.constant 0.000000e+00 : f32
    %52 = vector.broadcast %cst_28 : f32 to vector<2x64xf32>
    %53 = arith.cmpf oge, %51, %52 : vector<2x64xf32>
    %cst_29 = arith.constant 2.000000e-01 : f32
    %54 = vector.broadcast %cst_29 : f32 to vector<2x64xf32>
    %55 = arith.mulf %54, %51 : vector<2x64xf32>
    %56 = arith.select %53, %51, %55 : vector<2x64xi1>, vector<2x64xf32>
    %cst_30 = arith.constant 1.41421354 : f32
    %57 = vector.broadcast %cst_30 : f32 to vector<2x64xf32>
    %58 = arith.mulf %56, %57 : vector<2x64xf32>
    %c3 = arith.constant 3 : index
    %c0_31 = arith.constant 0 : index
    %c0_32 = arith.constant 0 : index
    %59 = vector.load %arg1[%c3, %c0_31, %c0_32] : memref<8x64x64xf32, #tpu.memory_space<vmem>>, vector<1x64x64xf32>
    %60 = vector.shape_cast %59 : vector<1x64x64xf32> to vector<64x64xf32>
    %61 = arith.truncf %60 : vector<64x64xf32> to vector<64x64xbf16>
    %c3_33 = arith.constant 3 : index
    %c0_34 = arith.constant 0 : index
    %c0_35 = arith.constant 0 : index
    %62 = vector.load %arg2[%c3_33, %c0_34, %c0_35] : memref<8x1x64xf32, #tpu.memory_space<vmem>>, vector<1x1x64xf32>
    %63 = vector.shape_cast %62 : vector<1x1x64xf32> to vector<1x64xf32>
    %64 = arith.truncf %58 : vector<2x64xf32> to vector<2x64xbf16>
    %cst_36 = arith.constant dense<0.000000e+00> : vector<2x64xf32>
    %65 = tpu.matmul %64, %61, %cst_36 {dimension_numbers = #tpu.dot_dimension_numbers<[1], [0], [0], [1], [0, 0, 1, 1], [], []>} : vector<2x64xbf16>, vector<64x64xbf16>, vector<2x64xf32> -> vector<2x64xf32>
    %66 = vector.broadcast %63 : vector<1x64xf32> to vector<2x64xf32>
    %67 = arith.addf %65, %66 : vector<2x64xf32>
    %cst_37 = arith.constant 0.000000e+00 : f32
    %68 = vector.broadcast %cst_37 : f32 to vector<2x64xf32>
    %69 = arith.cmpf oge, %67, %68 : vector<2x64xf32>
    %cst_38 = arith.constant 2.000000e-01 : f32
    %70 = vector.broadcast %cst_38 : f32 to vector<2x64xf32>
    %71 = arith.mulf %70, %67 : vector<2x64xf32>
    %72 = arith.select %69, %67, %71 : vector<2x64xi1>, vector<2x64xf32>
    %cst_39 = arith.constant 1.41421354 : f32
    %73 = vector.broadcast %cst_39 : f32 to vector<2x64xf32>
    %74 = arith.mulf %72, %73 : vector<2x64xf32>
    %c4 = arith.constant 4 : index
    %c0_40 = arith.constant 0 : index
    %c0_41 = arith.constant 0 : index
    %75 = vector.load %arg1[%c4, %c0_40, %c0_41] : memref<8x64x64xf32, #tpu.memory_space<vmem>>, vector<1x64x64xf32>
    %76 = vector.shape_cast %75 : vector<1x64x64xf32> to vector<64x64xf32>
    %77 = arith.truncf %76 : vector<64x64xf32> to vector<64x64xbf16>
    %c4_42 = arith.constant 4 : index
    %c0_43 = arith.constant 0 : index
    %c0_44 = arith.constant 0 : index
    %78 = vector.load %arg2[%c4_42, %c0_43, %c0_44] : memref<8x1x64xf32, #tpu.memory_space<vmem>>, vector<1x1x64xf32>
    %79 = vector.shape_cast %78 : vector<1x1x64xf32> to vector<1x64xf32>
    %80 = arith.truncf %74 : vector<2x64xf32> to vector<2x64xbf16>
    %cst_45 = arith.constant dense<0.000000e+00> : vector<2x64xf32>
    %81 = tpu.matmul %80, %77, %cst_45 {dimension_numbers = #tpu.dot_dimension_numbers<[1], [0], [0], [1], [0, 0, 1, 1], [], []>} : vector<2x64xbf16>, vector<64x64xbf16>, vector<2x64xf32> -> vector<2x64xf32>
    %82 = vector.broadcast %79 : vector<1x64xf32> to vector<2x64xf32>
    %83 = arith.addf %81, %82 : vector<2x64xf32>
    %cst_46 = arith.constant 0.000000e+00 : f32
    %84 = vector.broadcast %cst_46 : f32 to vector<2x64xf32>
    %85 = arith.cmpf oge, %83, %84 : vector<2x64xf32>
    %cst_47 = arith.constant 2.000000e-01 : f32
    %86 = vector.broadcast %cst_47 : f32 to vector<2x64xf32>
    %87 = arith.mulf %86, %83 : vector<2x64xf32>
    %88 = arith.select %85, %83, %87 : vector<2x64xi1>, vector<2x64xf32>
    %cst_48 = arith.constant 1.41421354 : f32
    %89 = vector.broadcast %cst_48 : f32 to vector<2x64xf32>
    %90 = arith.mulf %88, %89 : vector<2x64xf32>
    %c5 = arith.constant 5 : index
    %c0_49 = arith.constant 0 : index
    %c0_50 = arith.constant 0 : index
    %91 = vector.load %arg1[%c5, %c0_49, %c0_50] : memref<8x64x64xf32, #tpu.memory_space<vmem>>, vector<1x64x64xf32>
    %92 = vector.shape_cast %91 : vector<1x64x64xf32> to vector<64x64xf32>
    %93 = arith.truncf %92 : vector<64x64xf32> to vector<64x64xbf16>
    %c5_51 = arith.constant 5 : index
    %c0_52 = arith.constant 0 : index
    %c0_53 = arith.constant 0 : index
    %94 = vector.load %arg2[%c5_51, %c0_52, %c0_53] : memref<8x1x64xf32, #tpu.memory_space<vmem>>, vector<1x1x64xf32>
    %95 = vector.shape_cast %94 : vector<1x1x64xf32> to vector<1x64xf32>
    %96 = arith.truncf %90 : vector<2x64xf32> to vector<2x64xbf16>
    %cst_54 = arith.constant dense<0.000000e+00> : vector<2x64xf32>
    %97 = tpu.matmul %96, %93, %cst_54 {dimension_numbers = #tpu.dot_dimension_numbers<[1], [0], [0], [1], [0, 0, 1, 1], [], []>} : vector<2x64xbf16>, vector<64x64xbf16>, vector<2x64xf32> -> vector<2x64xf32>
    %98 = vector.broadcast %95 : vector<1x64xf32> to vector<2x64xf32>
    %99 = arith.addf %97, %98 : vector<2x64xf32>
    %cst_55 = arith.constant 0.000000e+00 : f32
    %100 = vector.broadcast %cst_55 : f32 to vector<2x64xf32>
    %101 = arith.cmpf oge, %99, %100 : vector<2x64xf32>
    %cst_56 = arith.constant 2.000000e-01 : f32
    %102 = vector.broadcast %cst_56 : f32 to vector<2x64xf32>
    %103 = arith.mulf %102, %99 : vector<2x64xf32>
    %104 = arith.select %101, %99, %103 : vector<2x64xi1>, vector<2x64xf32>
    %cst_57 = arith.constant 1.41421354 : f32
    %105 = vector.broadcast %cst_57 : f32 to vector<2x64xf32>
    %106 = arith.mulf %104, %105 : vector<2x64xf32>
    %c6 = arith.constant 6 : index
    %c0_58 = arith.constant 0 : index
    %c0_59 = arith.constant 0 : index
    %107 = vector.load %arg1[%c6, %c0_58, %c0_59] : memref<8x64x64xf32, #tpu.memory_space<vmem>>, vector<1x64x64xf32>
    %108 = vector.shape_cast %107 : vector<1x64x64xf32> to vector<64x64xf32>
    %109 = arith.truncf %108 : vector<64x64xf32> to vector<64x64xbf16>
    %c6_60 = arith.constant 6 : index
    %c0_61 = arith.constant 0 : index
    %c0_62 = arith.constant 0 : index
    %110 = vector.load %arg2[%c6_60, %c0_61, %c0_62] : memref<8x1x64xf32, #tpu.memory_space<vmem>>, vector<1x1x64xf32>
    %111 = vector.shape_cast %110 : vector<1x1x64xf32> to vector<1x64xf32>
    %112 = arith.truncf %106 : vector<2x64xf32> to vector<2x64xbf16>
    %cst_63 = arith.constant dense<0.000000e+00> : vector<2x64xf32>
    %113 = tpu.matmul %112, %109, %cst_63 {dimension_numbers = #tpu.dot_dimension_numbers<[1], [0], [0], [1], [0, 0, 1, 1], [], []>} : vector<2x64xbf16>, vector<64x64xbf16>, vector<2x64xf32> -> vector<2x64xf32>
    %114 = vector.broadcast %111 : vector<1x64xf32> to vector<2x64xf32>
    %115 = arith.addf %113, %114 : vector<2x64xf32>
    %cst_64 = arith.constant 0.000000e+00 : f32
    %116 = vector.broadcast %cst_64 : f32 to vector<2x64xf32>
    %117 = arith.cmpf oge, %115, %116 : vector<2x64xf32>
    %cst_65 = arith.constant 2.000000e-01 : f32
    %118 = vector.broadcast %cst_65 : f32 to vector<2x64xf32>
    %119 = arith.mulf %118, %115 : vector<2x64xf32>
    %120 = arith.select %117, %115, %119 : vector<2x64xi1>, vector<2x64xf32>
    %cst_66 = arith.constant 1.41421354 : f32
    %121 = vector.broadcast %cst_66 : f32 to vector<2x64xf32>
    %122 = arith.mulf %120, %121 : vector<2x64xf32>
    %c7 = arith.constant 7 : index
    %c0_67 = arith.constant 0 : index
    %c0_68 = arith.constant 0 : index
    %123 = vector.load %arg1[%c7, %c0_67, %c0_68] : memref<8x64x64xf32, #tpu.memory_space<vmem>>, vector<1x64x64xf32>
    %124 = vector.shape_cast %123 : vector<1x64x64xf32> to vector<64x64xf32>
    %125 = arith.truncf %124 : vector<64x64xf32> to vector<64x64xbf16>
    %c7_69 = arith.constant 7 : index
    %c0_70 = arith.constant 0 : index
    %c0_71 = arith.constant 0 : index
    %126 = vector.load %arg2[%c7_69, %c0_70, %c0_71] : memref<8x1x64xf32, #tpu.memory_space<vmem>>, vector<1x1x64xf32>
    %127 = vector.shape_cast %126 : vector<1x1x64xf32> to vector<1x64xf32>
    %128 = arith.truncf %122 : vector<2x64xf32> to vector<2x64xbf16>
    %cst_72 = arith.constant dense<0.000000e+00> : vector<2x64xf32>
    %129 = tpu.matmul %128, %125, %cst_72 {dimension_numbers = #tpu.dot_dimension_numbers<[1], [0], [0], [1], [0, 0, 1, 1], [], []>} : vector<2x64xbf16>, vector<64x64xbf16>, vector<2x64xf32> -> vector<2x64xf32>
    %130 = vector.broadcast %127 : vector<1x64xf32> to vector<2x64xf32>
    %131 = arith.addf %129, %130 : vector<2x64xf32>
    %cst_73 = arith.constant 0.000000e+00 : f32
    %132 = vector.broadcast %cst_73 : f32 to vector<2x64xf32>
    %133 = arith.cmpf oge, %131, %132 : vector<2x64xf32>
    %cst_74 = arith.constant 2.000000e-01 : f32
    %134 = vector.broadcast %cst_74 : f32 to vector<2x64xf32>
    %135 = arith.mulf %134, %131 : vector<2x64xf32>
    %136 = arith.select %133, %131, %135 : vector<2x64xi1>, vector<2x64xf32>
    %cst_75 = arith.constant 1.41421354 : f32
    %137 = vector.broadcast %cst_75 : f32 to vector<2x64xf32>
    %138 = arith.mulf %136, %137 : vector<2x64xf32>
    %c0_76 = arith.constant 0 : index
    %c0_77 = arith.constant 0 : index
    %139 = vector.load %arg3[%c0_76, %c0_77] : memref<2x64xf32, #tpu.memory_space<vmem>>, vector<2x64xf32>
    tpu.vector_store %arg3[%c0_76, %c0_77], %138 {strides = array<i32>} : memref<2x64xf32, #tpu.memory_space<vmem>>, vector<2x64xf32>,
    return
  }
}

module attributes {stable_mosaic.version = 11 : i64} {
  func.func @_modconv_kernel(%arg0: memref<32x86xf32, #tpu.memory_space<vmem>>, %arg1: memref<2x86xf32, #tpu.memory_space<vmem>>, %arg2: memref<32x288xbf16, #tpu.memory_space<vmem>>, %arg3: memref<32x64xf32, #tpu.memory_space<vmem>>, %arg4: memref<32x1xf32, #tpu.memory_space<vmem>>, %arg5: memref<64x2xf32, #tpu.memory_space<vmem>>, %arg6: memref<32x1xf32, #tpu.memory_space<vmem>>, %arg7: memref<32x32xf32, #tpu.memory_space<vmem>>, %arg8: memref<32x72xf32, #tpu.memory_space<vmem>>, %arg9: memref<288x72xbf16, #tpu.memory_space<vmem>>) attributes {dimension_semantics = [], scalar_prefetch = 0 : i64, scratch_operands = 1 : i64, tpu.core_type = #tpu.core_type<tc>} {
    %c0 = arith.constant 0 : index
    %c0_0 = arith.constant 0 : index
    %0 = vector.load %arg3[%c0, %c0_0] : memref<32x64xf32, #tpu.memory_space<vmem>>, vector<32x64xf32>
    %c0_1 = arith.constant 0 : index
    %c0_2 = arith.constant 0 : index
    %1 = vector.load %arg5[%c0_1, %c0_2] : memref<64x2xf32, #tpu.memory_space<vmem>>, vector<64x2xf32>
    %cst = arith.constant dense<0.000000e+00> : vector<32x2xf32>
    %2 = tpu.matmul %0, %1, %cst {dimension_numbers = #tpu.dot_dimension_numbers<[1], [0], [0], [1], [0, 0, 1, 1], [], []>} : vector<32x64xf32>, vector<64x2xf32>, vector<32x2xf32> -> vector<32x2xf32>
    %c0_3 = arith.constant 0 : index
    %c0_4 = arith.constant 0 : index
    %3 = vector.load %arg4[%c0_3, %c0_4] : memref<32x1xf32, #tpu.memory_space<vmem>>, vector<32x1xf32>
    %4 = vector.broadcast %3 : vector<32x1xf32> to vector<32x2xf32>
    %5 = arith.addf %2, %4 : vector<32x2xf32>
    %c0_5 = arith.constant 0 : index
    %c0_6 = arith.constant 0 : index
    %6 = vector.load %arg1[%c0_5, %c0_6] : memref<2x86xf32, #tpu.memory_space<vmem>>, vector<2x86xf32>
    %cst_7 = arith.constant dense<0.000000e+00> : vector<32x86xf32>
    %7 = tpu.matmul %5, %6, %cst_7 {dimension_numbers = #tpu.dot_dimension_numbers<[1], [0], [0], [1], [0, 0, 1, 1], [], []>} : vector<32x2xf32>, vector<2x86xf32>, vector<32x86xf32> -> vector<32x86xf32>
    %c0_8 = arith.constant 0 : index
    %c0_9 = arith.constant 0 : index
    %8 = vector.load %arg0[%c0_8, %c0_9] : memref<32x86xf32, #tpu.memory_space<vmem>>, vector<32x86xf32>
    %9 = arith.mulf %8, %7 : vector<32x86xf32>
    %10 = vector.extract_strided_slice %9 {offsets = [0, 0], sizes = [32, 72], strides = [1, 1]} : vector<32x86xf32> to vector<32x72xf32>
    %11 = arith.truncf %10 : vector<32x72xf32> to vector<32x72xbf16>
    %c0_10 = arith.constant 0 : index
    %c0_11 = arith.constant 0 : index
    %12 = vector.load %arg9[%c0_10, %c0_11] : memref<288x72xbf16, #tpu.memory_space<vmem>>, vector<32x72xbf16>
    tpu.vector_store %arg9[%c0_10, %c0_11], %11 {strides = array<i32>} : memref<288x72xbf16, #tpu.memory_space<vmem>>, vector<32x72xbf16>,
    %13 = vector.extract_strided_slice %9 {offsets = [0, 1], sizes = [32, 72], strides = [1, 1]} : vector<32x86xf32> to vector<32x72xf32>
    %14 = arith.truncf %13 : vector<32x72xf32> to vector<32x72xbf16>
    %c32 = arith.constant 32 : index
    %c0_12 = arith.constant 0 : index
    %15 = vector.load %arg9[%c32, %c0_12] : memref<288x72xbf16, #tpu.memory_space<vmem>>, vector<32x72xbf16>
    tpu.vector_store %arg9[%c32, %c0_12], %14 {strides = array<i32>} : memref<288x72xbf16, #tpu.memory_space<vmem>>, vector<32x72xbf16>,
    %16 = vector.extract_strided_slice %9 {offsets = [0, 2], sizes = [32, 72], strides = [1, 1]} : vector<32x86xf32> to vector<32x72xf32>
    %17 = arith.truncf %16 : vector<32x72xf32> to vector<32x72xbf16>
    %c64 = arith.constant 64 : index
    %c0_13 = arith.constant 0 : index
    %18 = vector.load %arg9[%c64, %c0_13] : memref<288x72xbf16, #tpu.memory_space<vmem>>, vector<32x72xbf16>
    tpu.vector_store %arg9[%c64, %c0_13], %17 {strides = array<i32>} : memref<288x72xbf16, #tpu.memory_space<vmem>>, vector<32x72xbf16>,
    %19 = vector.extract_strided_slice %9 {offsets = [0, 6], sizes = [32, 72], strides = [1, 1]} : vector<32x86xf32> to vector<32x72xf32>
    %20 = arith.truncf %19 : vector<32x72xf32> to vector<32x72xbf16>
    %c96 = arith.constant 96 : index
    %c0_14 = arith.constant 0 : index
    %21 = vector.load %arg9[%c96, %c0_14] : memref<288x72xbf16, #tpu.memory_space<vmem>>, vector<32x72xbf16>
    tpu.vector_store %arg9[%c96, %c0_14], %20 {strides = array<i32>} : memref<288x72xbf16, #tpu.memory_space<vmem>>, vector<32x72xbf16>,
    %22 = vector.extract_strided_slice %9 {offsets = [0, 7], sizes = [32, 72], strides = [1, 1]} : vector<32x86xf32> to vector<32x72xf32>
    %23 = arith.truncf %22 : vector<32x72xf32> to vector<32x72xbf16>
    %c128 = arith.constant 128 : index
    %c0_15 = arith.constant 0 : index
    %24 = vector.load %arg9[%c128, %c0_15] : memref<288x72xbf16, #tpu.memory_space<vmem>>, vector<32x72xbf16>
    tpu.vector_store %arg9[%c128, %c0_15], %23 {strides = array<i32>} : memref<288x72xbf16, #tpu.memory_space<vmem>>, vector<32x72xbf16>,
    %25 = vector.extract_strided_slice %9 {offsets = [0, 8], sizes = [32, 72], strides = [1, 1]} : vector<32x86xf32> to vector<32x72xf32>
    %26 = arith.truncf %25 : vector<32x72xf32> to vector<32x72xbf16>
    %c160 = arith.constant 160 : index
    %c0_16 = arith.constant 0 : index
    %27 = vector.load %arg9[%c160, %c0_16] : memref<288x72xbf16, #tpu.memory_space<vmem>>, vector<32x72xbf16>
    tpu.vector_store %arg9[%c160, %c0_16], %26 {strides = array<i32>} : memref<288x72xbf16, #tpu.memory_space<vmem>>, vector<32x72xbf16>,
    %28 = vector.extract_strided_slice %9 {offsets = [0, 12], sizes = [32, 72], strides = [1, 1]} : vector<32x86xf32> to vector<32x72xf32>
    %29 = arith.truncf %28 : vector<32x72xf32> to vector<32x72xbf16>
    %c192 = arith.constant 192 : index
    %c0_17 = arith.constant 0 : index
    %30 = vector.load %arg9[%c192, %c0_17] : memref<288x72xbf16, #tpu.memory_space<vmem>>, vector<32x72xbf16>
    tpu.vector_store %arg9[%c192, %c0_17], %29 {strides = array<i32>} : memref<288x72xbf16, #tpu.memory_space<vmem>>, vector<32x72xbf16>,
    %31 = vector.extract_strided_slice %9 {offsets = [0, 13], sizes = [32, 72], strides = [1, 1]} : vector<32x86xf32> to vector<32x72xf32>
    %32 = arith.truncf %31 : vector<32x72xf32> to vector<32x72xbf16>
    %c224 = arith.constant 224 : index
    %c0_18 = arith.constant 0 : index
    %33 = vector.load %arg9[%c224, %c0_18] : memref<288x72xbf16, #tpu.memory_space<vmem>>, vector<32x72xbf16>
    tpu.vector_store %arg9[%c224, %c0_18], %32 {strides = array<i32>} : memref<288x72xbf16, #tpu.memory_space<vmem>>, vector<32x72xbf16>,
    %34 = vector.extract_strided_slice %9 {offsets = [0, 14], sizes = [32, 72], strides = [1, 1]} : vector<32x86xf32> to vector<32x72xf32>
    %35 = arith.truncf %34 : vector<32x72xf32> to vector<32x72xbf16>
    %c256 = arith.constant 256 : index
    %c0_19 = arith.constant 0 : index
    %36 = vector.load %arg9[%c256, %c0_19] : memref<288x72xbf16, #tpu.memory_space<vmem>>, vector<32x72xbf16>
    tpu.vector_store %arg9[%c256, %c0_19], %35 {strides = array<i32>} : memref<288x72xbf16, #tpu.memory_space<vmem>>, vector<32x72xbf16>,
    %c0_20 = arith.constant 0 : index
    %c0_21 = arith.constant 0 : index
    %37 = vector.load %arg2[%c0_20, %c0_21] : memref<32x288xbf16, #tpu.memory_space<vmem>>, vector<32x288xbf16>
    %c0_22 = arith.constant 0 : index
    %c0_23 = arith.constant 0 : index
    %38 = vector.load %arg9[%c0_22, %c0_23] : memref<288x72xbf16, #tpu.memory_space<vmem>>, vector<288x72xbf16>
    %cst_24 = arith.constant dense<0.000000e+00> : vector<32x72xf32>
    %39 = tpu.matmul %37, %38, %cst_24 {dimension_numbers = #tpu.dot_dimension_numbers<[1], [0], [0], [1], [0, 0, 1, 1], [], []>} : vector<32x288xbf16>, vector<288x72xbf16>, vector<32x72xf32> -> vector<32x72xf32>
    %c0_25 = arith.constant 0 : index
    %c0_26 = arith.constant 0 : index
    %40 = vector.load %arg7[%c0_25, %c0_26] : memref<32x32xf32, #tpu.memory_space<vmem>>, vector<32x32xf32>
    %41 = arith.mulf %5, %5 : vector<32x2xf32>
    %cst_27 = arith.constant dense<0.000000e+00> : vector<32x2xf32>
    %42 = tpu.matmul %40, %41, %cst_27 {dimension_numbers = #tpu.dot_dimension_numbers<[1], [0], [0], [1], [0, 0, 1, 1], [], []>} : vector<32x32xf32>, vector<32x2xf32>, vector<32x2xf32> -> vector<32x2xf32>
    %cst_28 = arith.constant 9.99999993E-9 : f32
    %43 = vector.broadcast %cst_28 : f32 to vector<32x2xf32>
    %44 = arith.addf %42, %43 : vector<32x2xf32>
    %45 = math.rsqrt %44 : vector<32x2xf32>
    %46 = vector.extract_strided_slice %6 {offsets = [0, 7], sizes = [2, 72], strides = [1, 1]} : vector<2x86xf32> to vector<2x72xf32>
    %cst_29 = arith.constant dense<0.000000e+00> : vector<32x72xf32>
    %47 = tpu.matmul %45, %46, %cst_29 {dimension_numbers = #tpu.dot_dimension_numbers<[1], [0], [0], [1], [0, 0, 1, 1], [], []>} : vector<32x2xf32>, vector<2x72xf32>, vector<32x72xf32> -> vector<32x72xf32>
    %48 = arith.mulf %39, %47 : vector<32x72xf32>
    %c0_30 = arith.constant 0 : index
    %c0_31 = arith.constant 0 : index
    %49 = vector.load %arg6[%c0_30, %c0_31] : memref<32x1xf32, #tpu.memory_space<vmem>>, vector<32x1xf32>
    %50 = vector.broadcast %49 : vector<32x1xf32> to vector<32x72xf32>
    %51 = arith.addf %48, %50 : vector<32x72xf32>
    %cst_32 = arith.constant 0.000000e+00 : f32
    %52 = vector.broadcast %cst_32 : f32 to vector<32x72xf32>
    %53 = arith.cmpf oge, %51, %52 : vector<32x72xf32>
    %cst_33 = arith.constant 2.000000e-01 : f32
    %54 = vector.broadcast %cst_33 : f32 to vector<32x72xf32>
    %55 = arith.mulf %54, %51 : vector<32x72xf32>
    %56 = arith.select %53, %51, %55 : vector<32x72xi1>, vector<32x72xf32>
    %cst_34 = arith.constant 1.41421354 : f32
    %57 = vector.broadcast %cst_34 : f32 to vector<32x72xf32>
    %58 = arith.mulf %56, %57 : vector<32x72xf32>
    %c0_35 = arith.constant 0 : index
    %c0_36 = arith.constant 0 : index
    %59 = vector.load %arg8[%c0_35, %c0_36] : memref<32x72xf32, #tpu.memory_space<vmem>>, vector<32x72xf32>
    tpu.vector_store %arg8[%c0_35, %c0_36], %58 {strides = array<i32>} : memref<32x72xf32, #tpu.memory_space<vmem>>, vector<32x72xf32>,
    return
  }
}

module attributes {stable_mosaic.version = 11 : i64} {
  func.func @_modconv_kernel(%arg0: memref<32x222xf32, #tpu.memory_space<vmem>>, %arg1: memref<2x222xf32, #tpu.memory_space<vmem>>, %arg2: memref<16x288xbf16, #tpu.memory_space<vmem>>, %arg3: memref<32x64xf32, #tpu.memory_space<vmem>>, %arg4: memref<32x1xf32, #tpu.memory_space<vmem>>, %arg5: memref<64x2xf32, #tpu.memory_space<vmem>>, %arg6: memref<16x1xf32, #tpu.memory_space<vmem>>, %arg7: memref<16x32xf32, #tpu.memory_space<vmem>>, %arg8: memref<16x200xf32, #tpu.memory_space<vmem>>, %arg9: memref<288x200xbf16, #tpu.memory_space<vmem>>) attributes {dimension_semantics = [], scalar_prefetch = 0 : i64, scratch_operands = 1 : i64, tpu.core_type = #tpu.core_type<tc>} {
    %c0 = arith.constant 0 : index
    %c0_0 = arith.constant 0 : index
    %0 = vector.load %arg3[%c0, %c0_0] : memref<32x64xf32, #tpu.memory_space<vmem>>, vector<32x64xf32>
    %c0_1 = arith.constant 0 : index
    %c0_2 = arith.constant 0 : index
    %1 = vector.load %arg5[%c0_1, %c0_2] : memref<64x2xf32, #tpu.memory_space<vmem>>, vector<64x2xf32>
    %cst = arith.constant dense<0.000000e+00> : vector<32x2xf32>
    %2 = tpu.matmul %0, %1, %cst {dimension_numbers = #tpu.dot_dimension_numbers<[1], [0], [0], [1], [0, 0, 1, 1], [], []>} : vector<32x64xf32>, vector<64x2xf32>, vector<32x2xf32> -> vector<32x2xf32>
    %c0_3 = arith.constant 0 : index
    %c0_4 = arith.constant 0 : index
    %3 = vector.load %arg4[%c0_3, %c0_4] : memref<32x1xf32, #tpu.memory_space<vmem>>, vector<32x1xf32>
    %4 = vector.broadcast %3 : vector<32x1xf32> to vector<32x2xf32>
    %5 = arith.addf %2, %4 : vector<32x2xf32>
    %c0_5 = arith.constant 0 : index
    %c0_6 = arith.constant 0 : index
    %6 = vector.load %arg1[%c0_5, %c0_6] : memref<2x222xf32, #tpu.memory_space<vmem>>, vector<2x222xf32>
    %cst_7 = arith.constant dense<0.000000e+00> : vector<32x222xf32>
    %7 = tpu.matmul %5, %6, %cst_7 {dimension_numbers = #tpu.dot_dimension_numbers<[1], [0], [0], [1], [0, 0, 1, 1], [], []>} : vector<32x2xf32>, vector<2x222xf32>, vector<32x222xf32> -> vector<32x222xf32>
    %c0_8 = arith.constant 0 : index
    %c0_9 = arith.constant 0 : index
    %8 = vector.load %arg0[%c0_8, %c0_9] : memref<32x222xf32, #tpu.memory_space<vmem>>, vector<32x222xf32>
    %9 = arith.mulf %8, %7 : vector<32x222xf32>
    %10 = vector.extract_strided_slice %9 {offsets = [0, 0], sizes = [32, 200], strides = [1, 1]} : vector<32x222xf32> to vector<32x200xf32>
    %11 = arith.truncf %10 : vector<32x200xf32> to vector<32x200xbf16>
    %c0_10 = arith.constant 0 : index
    %c0_11 = arith.constant 0 : index
    %12 = vector.load %arg9[%c0_10, %c0_11] : memref<288x200xbf16, #tpu.memory_space<vmem>>, vector<32x200xbf16>
    tpu.vector_store %arg9[%c0_10, %c0_11], %11 {strides = array<i32>} : memref<288x200xbf16, #tpu.memory_space<vmem>>, vector<32x200xbf16>,
    %13 = vector.extract_strided_slice %9 {offsets = [0, 1], sizes = [32, 200], strides = [1, 1]} : vector<32x222xf32> to vector<32x200xf32>
    %14 = arith.truncf %13 : vector<32x200xf32> to vector<32x200xbf16>
    %c32 = arith.constant 32 : index
    %c0_12 = arith.constant 0 : index
    %15 = vector.load %arg9[%c32, %c0_12] : memref<288x200xbf16, #tpu.memory_space<vmem>>, vector<32x200xbf16>
    tpu.vector_store %arg9[%c32, %c0_12], %14 {strides = array<i32>} : memref<288x200xbf16, #tpu.memory_space<vmem>>, vector<32x200xbf16>,
    %16 = vector.extract_strided_slice %9 {offsets = [0, 2], sizes = [32, 200], strides = [1, 1]} : vector<32x222xf32> to vector<32x200xf32>
    %17 = arith.truncf %16 : vector<32x200xf32> to vector<32x200xbf16>
    %c64 = arith.constant 64 : index
    %c0_13 = arith.constant 0 : index
    %18 = vector.load %arg9[%c64, %c0_13] : memref<288x200xbf16, #tpu.memory_space<vmem>>, vector<32x200xbf16>
    tpu.vector_store %arg9[%c64, %c0_13], %17 {strides = array<i32>} : memref<288x200xbf16, #tpu.memory_space<vmem>>, vector<32x200xbf16>,
    %19 = vector.extract_strided_slice %9 {offsets = [0, 10], sizes = [32, 200], strides = [1, 1]} : vector<32x222xf32> to vector<32x200xf32>
    %20 = arith.truncf %19 : vector<32x200xf32> to vector<32x200xbf16>
    %c96 = arith.constant 96 : index
    %c0_14 = arith.constant 0 : index
    %21 = vector.load %arg9[%c96, %c0_14] : memref<288x200xbf16, #tpu.memory_space<vmem>>, vector<32x200xbf16>
    tpu.vector_store %arg9[%c96, %c0_14], %20 {strides = array<i32>} : memref<288x200xbf16, #tpu.memory_space<vmem>>, vector<32x200xbf16>,
    %22 = vector.extract_strided_slice %9 {offsets = [0, 11], sizes = [32, 200], strides = [1, 1]} : vector<32x222xf32> to vector<32x200xf32>
    %23 = arith.truncf %22 : vector<32x200xf32> to vector<32x200xbf16>
    %c128 = arith.constant 128 : index
    %c0_15 = arith.constant 0 : index
    %24 = vector.load %arg9[%c128, %c0_15] : memref<288x200xbf16, #tpu.memory_space<vmem>>, vector<32x200xbf16>
    tpu.vector_store %arg9[%c128, %c0_15], %23 {strides = array<i32>} : memref<288x200xbf16, #tpu.memory_space<vmem>>, vector<32x200xbf16>,
    %25 = vector.extract_strided_slice %9 {offsets = [0, 12], sizes = [32, 200], strides = [1, 1]} : vector<32x222xf32> to vector<32x200xf32>
    %26 = arith.truncf %25 : vector<32x200xf32> to vector<32x200xbf16>
    %c160 = arith.constant 160 : index
    %c0_16 = arith.constant 0 : index
    %27 = vector.load %arg9[%c160, %c0_16] : memref<288x200xbf16, #tpu.memory_space<vmem>>, vector<32x200xbf16>
    tpu.vector_store %arg9[%c160, %c0_16], %26 {strides = array<i32>} : memref<288x200xbf16, #tpu.memory_space<vmem>>, vector<32x200xbf16>,
    %28 = vector.extract_strided_slice %9 {offsets = [0, 20], sizes = [32, 200], strides = [1, 1]} : vector<32x222xf32> to vector<32x200xf32>
    %29 = arith.truncf %28 : vector<32x200xf32> to vector<32x200xbf16>
    %c192 = arith.constant 192 : index
    %c0_17 = arith.constant 0 : index
    %30 = vector.load %arg9[%c192, %c0_17] : memref<288x200xbf16, #tpu.memory_space<vmem>>, vector<32x200xbf16>
    tpu.vector_store %arg9[%c192, %c0_17], %29 {strides = array<i32>} : memref<288x200xbf16, #tpu.memory_space<vmem>>, vector<32x200xbf16>,
    %31 = vector.extract_strided_slice %9 {offsets = [0, 21], sizes = [32, 200], strides = [1, 1]} : vector<32x222xf32> to vector<32x200xf32>
    %32 = arith.truncf %31 : vector<32x200xf32> to vector<32x200xbf16>
    %c224 = arith.constant 224 : index
    %c0_18 = arith.constant 0 : index
    %33 = vector.load %arg9[%c224, %c0_18] : memref<288x200xbf16, #tpu.memory_space<vmem>>, vector<32x200xbf16>
    tpu.vector_store %arg9[%c224, %c0_18], %32 {strides = array<i32>} : memref<288x200xbf16, #tpu.memory_space<vmem>>, vector<32x200xbf16>,
    %34 = vector.extract_strided_slice %9 {offsets = [0, 22], sizes = [32, 200], strides = [1, 1]} : vector<32x222xf32> to vector<32x200xf32>
    %35 = arith.truncf %34 : vector<32x200xf32> to vector<32x200xbf16>
    %c256 = arith.constant 256 : index
    %c0_19 = arith.constant 0 : index
    %36 = vector.load %arg9[%c256, %c0_19] : memref<288x200xbf16, #tpu.memory_space<vmem>>, vector<32x200xbf16>
    tpu.vector_store %arg9[%c256, %c0_19], %35 {strides = array<i32>} : memref<288x200xbf16, #tpu.memory_space<vmem>>, vector<32x200xbf16>,
    %c0_20 = arith.constant 0 : index
    %c0_21 = arith.constant 0 : index
    %37 = vector.load %arg2[%c0_20, %c0_21] : memref<16x288xbf16, #tpu.memory_space<vmem>>, vector<16x288xbf16>
    %c0_22 = arith.constant 0 : index
    %c0_23 = arith.constant 0 : index
    %38 = vector.load %arg9[%c0_22, %c0_23] : memref<288x200xbf16, #tpu.memory_space<vmem>>, vector<288x200xbf16>
    %cst_24 = arith.constant dense<0.000000e+00> : vector<16x200xf32>
    %39 = tpu.matmul %37, %38, %cst_24 {dimension_numbers = #tpu.dot_dimension_numbers<[1], [0], [0], [1], [0, 0, 1, 1], [], []>} : vector<16x288xbf16>, vector<288x200xbf16>, vector<16x200xf32> -> vector<16x200xf32>
    %c0_25 = arith.constant 0 : index
    %c0_26 = arith.constant 0 : index
    %40 = vector.load %arg7[%c0_25, %c0_26] : memref<16x32xf32, #tpu.memory_space<vmem>>, vector<16x32xf32>
    %41 = arith.mulf %5, %5 : vector<32x2xf32>
    %cst_27 = arith.constant dense<0.000000e+00> : vector<16x2xf32>
    %42 = tpu.matmul %40, %41, %cst_27 {dimension_numbers = #tpu.dot_dimension_numbers<[1], [0], [0], [1], [0, 0, 1, 1], [], []>} : vector<16x32xf32>, vector<32x2xf32>, vector<16x2xf32> -> vector<16x2xf32>
    %cst_28 = arith.constant 9.99999993E-9 : f32
    %43 = vector.broadcast %cst_28 : f32 to vector<16x2xf32>
    %44 = arith.addf %42, %43 : vector<16x2xf32>
    %45 = math.rsqrt %44 : vector<16x2xf32>
    %46 = vector.extract_strided_slice %6 {offsets = [0, 11], sizes = [2, 200], strides = [1, 1]} : vector<2x222xf32> to vector<2x200xf32>
    %cst_29 = arith.constant dense<0.000000e+00> : vector<16x200xf32>
    %47 = tpu.matmul %45, %46, %cst_29 {dimension_numbers = #tpu.dot_dimension_numbers<[1], [0], [0], [1], [0, 0, 1, 1], [], []>} : vector<16x2xf32>, vector<2x200xf32>, vector<16x200xf32> -> vector<16x200xf32>
    %48 = arith.mulf %39, %47 : vector<16x200xf32>
    %c0_30 = arith.constant 0 : index
    %c0_31 = arith.constant 0 : index
    %49 = vector.load %arg6[%c0_30, %c0_31] : memref<16x1xf32, #tpu.memory_space<vmem>>, vector<16x1xf32>
    %50 = vector.broadcast %49 : vector<16x1xf32> to vector<16x200xf32>
    %51 = arith.addf %48, %50 : vector<16x200xf32>
    %cst_32 = arith.constant 0.000000e+00 : f32
    %52 = vector.broadcast %cst_32 : f32 to vector<16x200xf32>
    %53 = arith.cmpf oge, %51, %52 : vector<16x200xf32>
    %cst_33 = arith.constant 2.000000e-01 : f32
    %54 = vector.broadcast %cst_33 : f32 to vector<16x200xf32>
    %55 = arith.mulf %54, %51 : vector<16x200xf32>
    %56 = arith.select %53, %51, %55 : vector<16x200xi1>, vector<16x200xf32>
    %cst_34 = arith.constant 1.41421354 : f32
    %57 = vector.broadcast %cst_34 : f32 to vector<16x200xf32>
    %58 = arith.mulf %56, %57 : vector<16x200xf32>
    %c0_35 = arith.constant 0 : index
    %c0_36 = arith.constant 0 : index
    %59 = vector.load %arg8[%c0_35, %c0_36] : memref<16x200xf32, #tpu.memory_space<vmem>>, vector<16x200xf32>
    tpu.vector_store %arg8[%c0_35, %c0_36], %58 {strides = array<i32>} : memref<16x200xf32, #tpu.memory_space<vmem>>, vector<16x200xf32>,
    return
  }
}

module attributes {stable_mosaic.version = 11 : i64} {
  func.func @_modconv_kernel(%arg0: memref<16x222xf32, #tpu.memory_space<vmem>>, %arg1: memref<2x222xf32, #tpu.memory_space<vmem>>, %arg2: memref<16x144xbf16, #tpu.memory_space<vmem>>, %arg3: memref<16x64xf32, #tpu.memory_space<vmem>>, %arg4: memref<16x1xf32, #tpu.memory_space<vmem>>, %arg5: memref<64x2xf32, #tpu.memory_space<vmem>>, %arg6: memref<16x1xf32, #tpu.memory_space<vmem>>, %arg7: memref<16x16xf32, #tpu.memory_space<vmem>>, %arg8: memref<16x200xf32, #tpu.memory_space<vmem>>, %arg9: memref<144x200xbf16, #tpu.memory_space<vmem>>) attributes {dimension_semantics = [], scalar_prefetch = 0 : i64, scratch_operands = 1 : i64, tpu.core_type = #tpu.core_type<tc>} {
    %c0 = arith.constant 0 : index
    %c0_0 = arith.constant 0 : index
    %0 = vector.load %arg3[%c0, %c0_0] : memref<16x64xf32, #tpu.memory_space<vmem>>, vector<16x64xf32>
    %c0_1 = arith.constant 0 : index
    %c0_2 = arith.constant 0 : index
    %1 = vector.load %arg5[%c0_1, %c0_2] : memref<64x2xf32, #tpu.memory_space<vmem>>, vector<64x2xf32>
    %cst = arith.constant dense<0.000000e+00> : vector<16x2xf32>
    %2 = tpu.matmul %0, %1, %cst {dimension_numbers = #tpu.dot_dimension_numbers<[1], [0], [0], [1], [0, 0, 1, 1], [], []>} : vector<16x64xf32>, vector<64x2xf32>, vector<16x2xf32> -> vector<16x2xf32>
    %c0_3 = arith.constant 0 : index
    %c0_4 = arith.constant 0 : index
    %3 = vector.load %arg4[%c0_3, %c0_4] : memref<16x1xf32, #tpu.memory_space<vmem>>, vector<16x1xf32>
    %4 = vector.broadcast %3 : vector<16x1xf32> to vector<16x2xf32>
    %5 = arith.addf %2, %4 : vector<16x2xf32>
    %c0_5 = arith.constant 0 : index
    %c0_6 = arith.constant 0 : index
    %6 = vector.load %arg1[%c0_5, %c0_6] : memref<2x222xf32, #tpu.memory_space<vmem>>, vector<2x222xf32>
    %cst_7 = arith.constant dense<0.000000e+00> : vector<16x222xf32>
    %7 = tpu.matmul %5, %6, %cst_7 {dimension_numbers = #tpu.dot_dimension_numbers<[1], [0], [0], [1], [0, 0, 1, 1], [], []>} : vector<16x2xf32>, vector<2x222xf32>, vector<16x222xf32> -> vector<16x222xf32>
    %c0_8 = arith.constant 0 : index
    %c0_9 = arith.constant 0 : index
    %8 = vector.load %arg0[%c0_8, %c0_9] : memref<16x222xf32, #tpu.memory_space<vmem>>, vector<16x222xf32>
    %9 = arith.mulf %8, %7 : vector<16x222xf32>
    %10 = vector.extract_strided_slice %9 {offsets = [0, 0], sizes = [16, 200], strides = [1, 1]} : vector<16x222xf32> to vector<16x200xf32>
    %11 = arith.truncf %10 : vector<16x200xf32> to vector<16x200xbf16>
    %c0_10 = arith.constant 0 : index
    %c0_11 = arith.constant 0 : index
    %12 = vector.load %arg9[%c0_10, %c0_11] : memref<144x200xbf16, #tpu.memory_space<vmem>>, vector<16x200xbf16>
    tpu.vector_store %arg9[%c0_10, %c0_11], %11 {strides = array<i32>} : memref<144x200xbf16, #tpu.memory_space<vmem>>, vector<16x200xbf16>,
    %13 = vector.extract_strided_slice %9 {offsets = [0, 1], sizes = [16, 200], strides = [1, 1]} : vector<16x222xf32> to vector<16x200xf32>
    %14 = arith.truncf %13 : vector<16x200xf32> to vector<16x200xbf16>
    %c16 = arith.constant 16 : index
    %c0_12 = arith.constant 0 : index
    %15 = vector.load %arg9[%c16, %c0_12] : memref<144x200xbf16, #tpu.memory_space<vmem>>, vector<16x200xbf16>
    tpu.vector_store %arg9[%c16, %c0_12], %14 {strides = array<i32>} : memref<144x200xbf16, #tpu.memory_space<vmem>>, vector<16x200xbf16>,
    %16 = vector.extract_strided_slice %9 {offsets = [0, 2], sizes = [16, 200], strides = [1, 1]} : vector<16x222xf32> to vector<16x200xf32>
    %17 = arith.truncf %16 : vector<16x200xf32> to vector<16x200xbf16>
    %c32 = arith.constant 32 : index
    %c0_13 = arith.constant 0 : index
    %18 = vector.load %arg9[%c32, %c0_13] : memref<144x200xbf16, #tpu.memory_space<vmem>>, vector<16x200xbf16>
    tpu.vector_store %arg9[%c32, %c0_13], %17 {strides = array<i32>} : memref<144x200xbf16, #tpu.memory_space<vmem>>, vector<16x200xbf16>,
    %19 = vector.extract_strided_slice %9 {offsets = [0, 10], sizes = [16, 200], strides = [1, 1]} : vector<16x222xf32> to vector<16x200xf32>
    %20 = arith.truncf %19 : vector<16x200xf32> to vector<16x200xbf16>
    %c48 = arith.constant 48 : index
    %c0_14 = arith.constant 0 : index
    %21 = vector.load %arg9[%c48, %c0_14] : memref<144x200xbf16, #tpu.memory_space<vmem>>, vector<16x200xbf16>
    tpu.vector_store %arg9[%c48, %c0_14], %20 {strides = array<i32>} : memref<144x200xbf16, #tpu.memory_space<vmem>>, vector<16x200xbf16>,
    %22 = vector.extract_strided_slice %9 {offsets = [0, 11], sizes = [16, 200], strides = [1, 1]} : vector<16x222xf32> to vector<16x200xf32>
    %23 = arith.truncf %22 : vector<16x200xf32> to vector<16x200xbf16>
    %c64 = arith.constant 64 : index
    %c0_15 = arith.constant 0 : index
    %24 = vector.load %arg9[%c64, %c0_15] : memref<144x200xbf16, #tpu.memory_space<vmem>>, vector<16x200xbf16>
    tpu.vector_store %arg9[%c64, %c0_15], %23 {strides = array<i32>} : memref<144x200xbf16, #tpu.memory_space<vmem>>, vector<16x200xbf16>,
    %25 = vector.extract_strided_slice %9 {offsets = [0, 12], sizes = [16, 200], strides = [1, 1]} : vector<16x222xf32> to vector<16x200xf32>
    %26 = arith.truncf %25 : vector<16x200xf32> to vector<16x200xbf16>
    %c80 = arith.constant 80 : index
    %c0_16 = arith.constant 0 : index
    %27 = vector.load %arg9[%c80, %c0_16] : memref<144x200xbf16, #tpu.memory_space<vmem>>, vector<16x200xbf16>
    tpu.vector_store %arg9[%c80, %c0_16], %26 {strides = array<i32>} : memref<144x200xbf16, #tpu.memory_space<vmem>>, vector<16x200xbf16>,
    %28 = vector.extract_strided_slice %9 {offsets = [0, 20], sizes = [16, 200], strides = [1, 1]} : vector<16x222xf32> to vector<16x200xf32>
    %29 = arith.truncf %28 : vector<16x200xf32> to vector<16x200xbf16>
    %c96 = arith.constant 96 : index
    %c0_17 = arith.constant 0 : index
    %30 = vector.load %arg9[%c96, %c0_17] : memref<144x200xbf16, #tpu.memory_space<vmem>>, vector<16x200xbf16>
    tpu.vector_store %arg9[%c96, %c0_17], %29 {strides = array<i32>} : memref<144x200xbf16, #tpu.memory_space<vmem>>, vector<16x200xbf16>,
    %31 = vector.extract_strided_slice %9 {offsets = [0, 21], sizes = [16, 200], strides = [1, 1]} : vector<16x222xf32> to vector<16x200xf32>
    %32 = arith.truncf %31 : vector<16x200xf32> to vector<16x200xbf16>
    %c112 = arith.constant 112 : index
    %c0_18 = arith.constant 0 : index
    %33 = vector.load %arg9[%c112, %c0_18] : memref<144x200xbf16, #tpu.memory_space<vmem>>, vector<16x200xbf16>
    tpu.vector_store %arg9[%c112, %c0_18], %32 {strides = array<i32>} : memref<144x200xbf16, #tpu.memory_space<vmem>>, vector<16x200xbf16>,
    %34 = vector.extract_strided_slice %9 {offsets = [0, 22], sizes = [16, 200], strides = [1, 1]} : vector<16x222xf32> to vector<16x200xf32>
    %35 = arith.truncf %34 : vector<16x200xf32> to vector<16x200xbf16>
    %c128 = arith.constant 128 : index
    %c0_19 = arith.constant 0 : index
    %36 = vector.load %arg9[%c128, %c0_19] : memref<144x200xbf16, #tpu.memory_space<vmem>>, vector<16x200xbf16>
    tpu.vector_store %arg9[%c128, %c0_19], %35 {strides = array<i32>} : memref<144x200xbf16, #tpu.memory_space<vmem>>, vector<16x200xbf16>,
    %c0_20 = arith.constant 0 : index
    %c0_21 = arith.constant 0 : index
    %37 = vector.load %arg2[%c0_20, %c0_21] : memref<16x144xbf16, #tpu.memory_space<vmem>>, vector<16x144xbf16>
    %c0_22 = arith.constant 0 : index
    %c0_23 = arith.constant 0 : index
    %38 = vector.load %arg9[%c0_22, %c0_23] : memref<144x200xbf16, #tpu.memory_space<vmem>>, vector<144x200xbf16>
    %cst_24 = arith.constant dense<0.000000e+00> : vector<16x200xf32>
    %39 = tpu.matmul %37, %38, %cst_24 {dimension_numbers = #tpu.dot_dimension_numbers<[1], [0], [0], [1], [0, 0, 1, 1], [], []>} : vector<16x144xbf16>, vector<144x200xbf16>, vector<16x200xf32> -> vector<16x200xf32>
    %c0_25 = arith.constant 0 : index
    %c0_26 = arith.constant 0 : index
    %40 = vector.load %arg7[%c0_25, %c0_26] : memref<16x16xf32, #tpu.memory_space<vmem>>, vector<16x16xf32>
    %41 = arith.mulf %5, %5 : vector<16x2xf32>
    %cst_27 = arith.constant dense<0.000000e+00> : vector<16x2xf32>
    %42 = tpu.matmul %40, %41, %cst_27 {dimension_numbers = #tpu.dot_dimension_numbers<[1], [0], [0], [1], [0, 0, 1, 1], [], []>} : vector<16x16xf32>, vector<16x2xf32>, vector<16x2xf32> -> vector<16x2xf32>
    %cst_28 = arith.constant 9.99999993E-9 : f32
    %43 = vector.broadcast %cst_28 : f32 to vector<16x2xf32>
    %44 = arith.addf %42, %43 : vector<16x2xf32>
    %45 = math.rsqrt %44 : vector<16x2xf32>
    %46 = vector.extract_strided_slice %6 {offsets = [0, 11], sizes = [2, 200], strides = [1, 1]} : vector<2x222xf32> to vector<2x200xf32>
    %cst_29 = arith.constant dense<0.000000e+00> : vector<16x200xf32>
    %47 = tpu.matmul %45, %46, %cst_29 {dimension_numbers = #tpu.dot_dimension_numbers<[1], [0], [0], [1], [0, 0, 1, 1], [], []>} : vector<16x2xf32>, vector<2x200xf32>, vector<16x200xf32> -> vector<16x200xf32>
    %48 = arith.mulf %39, %47 : vector<16x200xf32>
    %c0_30 = arith.constant 0 : index
    %c0_31 = arith.constant 0 : index
    %49 = vector.load %arg6[%c0_30, %c0_31] : memref<16x1xf32, #tpu.memory_space<vmem>>, vector<16x1xf32>
    %50 = vector.broadcast %49 : vector<16x1xf32> to vector<16x200xf32>
    %51 = arith.addf %48, %50 : vector<16x200xf32>
    %cst_32 = arith.constant 0.000000e+00 : f32
    %52 = vector.broadcast %cst_32 : f32 to vector<16x200xf32>
    %53 = arith.cmpf oge, %51, %52 : vector<16x200xf32>
    %cst_33 = arith.constant 2.000000e-01 : f32
    %54 = vector.broadcast %cst_33 : f32 to vector<16x200xf32>
    %55 = arith.mulf %54, %51 : vector<16x200xf32>
    %56 = arith.select %53, %51, %55 : vector<16x200xi1>, vector<16x200xf32>
    %cst_34 = arith.constant 1.41421354 : f32
    %57 = vector.broadcast %cst_34 : f32 to vector<16x200xf32>
    %58 = arith.mulf %56, %57 : vector<16x200xf32>
    %c0_35 = arith.constant 0 : index
    %c0_36 = arith.constant 0 : index
    %59 = vector.load %arg8[%c0_35, %c0_36] : memref<16x200xf32, #tpu.memory_space<vmem>>, vector<16x200xf32>
    tpu.vector_store %arg8[%c0_35, %c0_36], %58 {strides = array<i32>} : memref<16x200xf32, #tpu.memory_space<vmem>>, vector<16x200xf32>,
    return
  }
}

module attributes {stable_mosaic.version = 11 : i64} {
  func.func @_modconv_kernel(%arg0: memref<32x32xf32, #tpu.memory_space<vmem>>, %arg1: memref<2x32xf32, #tpu.memory_space<vmem>>, %arg2: memref<3x32xbf16, #tpu.memory_space<vmem>>, %arg3: memref<32x64xf32, #tpu.memory_space<vmem>>, %arg4: memref<32x1xf32, #tpu.memory_space<vmem>>, %arg5: memref<64x2xf32, #tpu.memory_space<vmem>>, %arg6: memref<3x1xf32, #tpu.memory_space<vmem>>, %arg7: memref<3x32xf32, #tpu.memory_space<vmem>>) attributes {dimension_semantics = [], scalar_prefetch = 0 : i64, scratch_operands = 0 : i64, tpu.core_type = #tpu.core_type<tc>} {
    %c0 = arith.constant 0 : index
    %c0_0 = arith.constant 0 : index
    %0 = vector.load %arg3[%c0, %c0_0] : memref<32x64xf32, #tpu.memory_space<vmem>>, vector<32x64xf32>
    %c0_1 = arith.constant 0 : index
    %c0_2 = arith.constant 0 : index
    %1 = vector.load %arg5[%c0_1, %c0_2] : memref<64x2xf32, #tpu.memory_space<vmem>>, vector<64x2xf32>
    %cst = arith.constant dense<0.000000e+00> : vector<32x2xf32>
    %2 = tpu.matmul %0, %1, %cst {dimension_numbers = #tpu.dot_dimension_numbers<[1], [0], [0], [1], [0, 0, 1, 1], [], []>} : vector<32x64xf32>, vector<64x2xf32>, vector<32x2xf32> -> vector<32x2xf32>
    %c0_3 = arith.constant 0 : index
    %c0_4 = arith.constant 0 : index
    %3 = vector.load %arg4[%c0_3, %c0_4] : memref<32x1xf32, #tpu.memory_space<vmem>>, vector<32x1xf32>
    %4 = vector.broadcast %3 : vector<32x1xf32> to vector<32x2xf32>
    %5 = arith.addf %2, %4 : vector<32x2xf32>
    %c0_5 = arith.constant 0 : index
    %c0_6 = arith.constant 0 : index
    %6 = vector.load %arg1[%c0_5, %c0_6] : memref<2x32xf32, #tpu.memory_space<vmem>>, vector<2x32xf32>
    %cst_7 = arith.constant dense<0.000000e+00> : vector<32x32xf32>
    %7 = tpu.matmul %5, %6, %cst_7 {dimension_numbers = #tpu.dot_dimension_numbers<[1], [0], [0], [1], [0, 0, 1, 1], [], []>} : vector<32x2xf32>, vector<2x32xf32>, vector<32x32xf32> -> vector<32x32xf32>
    %c0_8 = arith.constant 0 : index
    %c0_9 = arith.constant 0 : index
    %8 = vector.load %arg0[%c0_8, %c0_9] : memref<32x32xf32, #tpu.memory_space<vmem>>, vector<32x32xf32>
    %9 = arith.mulf %8, %7 : vector<32x32xf32>
    %c0_10 = arith.constant 0 : index
    %c0_11 = arith.constant 0 : index
    %10 = vector.load %arg2[%c0_10, %c0_11] : memref<3x32xbf16, #tpu.memory_space<vmem>>, vector<3x32xbf16>
    %11 = arith.truncf %9 : vector<32x32xf32> to vector<32x32xbf16>
    %cst_12 = arith.constant dense<0.000000e+00> : vector<3x32xf32>
    %12 = tpu.matmul %10, %11, %cst_12 {dimension_numbers = #tpu.dot_dimension_numbers<[1], [0], [0], [1], [0, 0, 1, 1], [], []>} : vector<3x32xbf16>, vector<32x32xbf16>, vector<3x32xf32> -> vector<3x32xf32>
    %c0_13 = arith.constant 0 : index
    %c0_14 = arith.constant 0 : index
    %13 = vector.load %arg6[%c0_13, %c0_14] : memref<3x1xf32, #tpu.memory_space<vmem>>, vector<3x1xf32>
    %14 = vector.broadcast %13 : vector<3x1xf32> to vector<3x32xf32>
    %15 = arith.addf %12, %14 : vector<3x32xf32>
    %c0_15 = arith.constant 0 : index
    %c0_16 = arith.constant 0 : index
    %16 = vector.load %arg7[%c0_15, %c0_16] : memref<3x32xf32, #tpu.memory_space<vmem>>, vector<3x32xf32>
    tpu.vector_store %arg7[%c0_15, %c0_16], %15 {strides = array<i32>} : memref<3x32xf32, #tpu.memory_space<vmem>>, vector<3x32xf32>,
    return
  }
}

module attributes {stable_mosaic.version = 11 : i64} {
  func.func @_modconv_kernel(%arg0: memref<16x128xf32, #tpu.memory_space<vmem>>, %arg1: memref<2x128xf32, #tpu.memory_space<vmem>>, %arg2: memref<3x16xbf16, #tpu.memory_space<vmem>>, %arg3: memref<16x64xf32, #tpu.memory_space<vmem>>, %arg4: memref<16x1xf32, #tpu.memory_space<vmem>>, %arg5: memref<64x2xf32, #tpu.memory_space<vmem>>, %arg6: memref<3x1xf32, #tpu.memory_space<vmem>>, %arg7: memref<3x128xf32, #tpu.memory_space<vmem>>, %arg8: memref<3x128xf32, #tpu.memory_space<vmem>>) attributes {dimension_semantics = [], scalar_prefetch = 0 : i64, scratch_operands = 0 : i64, tpu.core_type = #tpu.core_type<tc>} {
    %c0 = arith.constant 0 : index
    %c0_0 = arith.constant 0 : index
    %0 = vector.load %arg3[%c0, %c0_0] : memref<16x64xf32, #tpu.memory_space<vmem>>, vector<16x64xf32>
    %c0_1 = arith.constant 0 : index
    %c0_2 = arith.constant 0 : index
    %1 = vector.load %arg5[%c0_1, %c0_2] : memref<64x2xf32, #tpu.memory_space<vmem>>, vector<64x2xf32>
    %cst = arith.constant dense<0.000000e+00> : vector<16x2xf32>
    %2 = tpu.matmul %0, %1, %cst {dimension_numbers = #tpu.dot_dimension_numbers<[1], [0], [0], [1], [0, 0, 1, 1], [], []>} : vector<16x64xf32>, vector<64x2xf32>, vector<16x2xf32> -> vector<16x2xf32>
    %c0_3 = arith.constant 0 : index
    %c0_4 = arith.constant 0 : index
    %3 = vector.load %arg4[%c0_3, %c0_4] : memref<16x1xf32, #tpu.memory_space<vmem>>, vector<16x1xf32>
    %4 = vector.broadcast %3 : vector<16x1xf32> to vector<16x2xf32>
    %5 = arith.addf %2, %4 : vector<16x2xf32>
    %c0_5 = arith.constant 0 : index
    %c0_6 = arith.constant 0 : index
    %6 = vector.load %arg1[%c0_5, %c0_6] : memref<2x128xf32, #tpu.memory_space<vmem>>, vector<2x128xf32>
    %cst_7 = arith.constant dense<0.000000e+00> : vector<16x128xf32>
    %7 = tpu.matmul %5, %6, %cst_7 {dimension_numbers = #tpu.dot_dimension_numbers<[1], [0], [0], [1], [0, 0, 1, 1], [], []>} : vector<16x2xf32>, vector<2x128xf32>, vector<16x128xf32> -> vector<16x128xf32>
    %c0_8 = arith.constant 0 : index
    %c0_9 = arith.constant 0 : index
    %8 = vector.load %arg0[%c0_8, %c0_9] : memref<16x128xf32, #tpu.memory_space<vmem>>, vector<16x128xf32>
    %9 = arith.mulf %8, %7 : vector<16x128xf32>
    %c0_10 = arith.constant 0 : index
    %c0_11 = arith.constant 0 : index
    %10 = vector.load %arg2[%c0_10, %c0_11] : memref<3x16xbf16, #tpu.memory_space<vmem>>, vector<3x16xbf16>
    %11 = arith.truncf %9 : vector<16x128xf32> to vector<16x128xbf16>
    %cst_12 = arith.constant dense<0.000000e+00> : vector<3x128xf32>
    %12 = tpu.matmul %10, %11, %cst_12 {dimension_numbers = #tpu.dot_dimension_numbers<[1], [0], [0], [1], [0, 0, 1, 1], [], []>} : vector<3x16xbf16>, vector<16x128xbf16>, vector<3x128xf32> -> vector<3x128xf32>
    %c0_13 = arith.constant 0 : index
    %c0_14 = arith.constant 0 : index
    %13 = vector.load %arg6[%c0_13, %c0_14] : memref<3x1xf32, #tpu.memory_space<vmem>>, vector<3x1xf32>
    %14 = vector.broadcast %13 : vector<3x1xf32> to vector<3x128xf32>
    %15 = arith.addf %12, %14 : vector<3x128xf32>
    %c0_15 = arith.constant 0 : index
    %c0_16 = arith.constant 0 : index
    %16 = vector.load %arg7[%c0_15, %c0_16] : memref<3x128xf32, #tpu.memory_space<vmem>>, vector<3x128xf32>
    %17 = arith.addf %15, %16 : vector<3x128xf32>
    %c0_17 = arith.constant 0 : index
    %c0_18 = arith.constant 0 : index
    %18 = vector.load %arg8[%c0_17, %c0_18] : memref<3x128xf32, #tpu.memory_space<vmem>>, vector<3x128xf32>
    tpu.vector_store %arg8[%c0_17, %c0_18], %17 {strides = array<i32>} : memref<3x128xf32, #tpu.memory_space<vmem>>, vector<3x128xf32>,
    return
  }
}

module attributes {stable_mosaic.version = 11 : i64} {
  func.func @_modconv_kernel(%arg0: memref<16x686xf32, #tpu.memory_space<vmem>>, %arg1: memref<2x686xf32, #tpu.memory_space<vmem>>, %arg2: memref<8x144xbf16, #tpu.memory_space<vmem>>, %arg3: memref<16x64xf32, #tpu.memory_space<vmem>>, %arg4: memref<16x1xf32, #tpu.memory_space<vmem>>, %arg5: memref<64x2xf32, #tpu.memory_space<vmem>>, %arg6: memref<8x1xf32, #tpu.memory_space<vmem>>, %arg7: memref<8x16xf32, #tpu.memory_space<vmem>>, %arg8: memref<8x648xf32, #tpu.memory_space<vmem>>, %arg9: memref<144x648xbf16, #tpu.memory_space<vmem>>) attributes {dimension_semantics = [], scalar_prefetch = 0 : i64, scratch_operands = 1 : i64, tpu.core_type = #tpu.core_type<tc>} {
    %c0 = arith.constant 0 : index
    %c0_0 = arith.constant 0 : index
    %0 = vector.load %arg3[%c0, %c0_0] : memref<16x64xf32, #tpu.memory_space<vmem>>, vector<16x64xf32>
    %c0_1 = arith.constant 0 : index
    %c0_2 = arith.constant 0 : index
    %1 = vector.load %arg5[%c0_1, %c0_2] : memref<64x2xf32, #tpu.memory_space<vmem>>, vector<64x2xf32>
    %cst = arith.constant dense<0.000000e+00> : vector<16x2xf32>
    %2 = tpu.matmul %0, %1, %cst {dimension_numbers = #tpu.dot_dimension_numbers<[1], [0], [0], [1], [0, 0, 1, 1], [], []>} : vector<16x64xf32>, vector<64x2xf32>, vector<16x2xf32> -> vector<16x2xf32>
    %c0_3 = arith.constant 0 : index
    %c0_4 = arith.constant 0 : index
    %3 = vector.load %arg4[%c0_3, %c0_4] : memref<16x1xf32, #tpu.memory_space<vmem>>, vector<16x1xf32>
    %4 = vector.broadcast %3 : vector<16x1xf32> to vector<16x2xf32>
    %5 = arith.addf %2, %4 : vector<16x2xf32>
    %c0_5 = arith.constant 0 : index
    %c0_6 = arith.constant 0 : index
    %6 = vector.load %arg1[%c0_5, %c0_6] : memref<2x686xf32, #tpu.memory_space<vmem>>, vector<2x686xf32>
    %cst_7 = arith.constant dense<0.000000e+00> : vector<16x686xf32>
    %7 = tpu.matmul %5, %6, %cst_7 {dimension_numbers = #tpu.dot_dimension_numbers<[1], [0], [0], [1], [0, 0, 1, 1], [], []>} : vector<16x2xf32>, vector<2x686xf32>, vector<16x686xf32> -> vector<16x686xf32>
    %c0_8 = arith.constant 0 : index
    %c0_9 = arith.constant 0 : index
    %8 = vector.load %arg0[%c0_8, %c0_9] : memref<16x686xf32, #tpu.memory_space<vmem>>, vector<16x686xf32>
    %9 = arith.mulf %8, %7 : vector<16x686xf32>
    %10 = vector.extract_strided_slice %9 {offsets = [0, 0], sizes = [16, 648], strides = [1, 1]} : vector<16x686xf32> to vector<16x648xf32>
    %11 = arith.truncf %10 : vector<16x648xf32> to vector<16x648xbf16>
    %c0_10 = arith.constant 0 : index
    %c0_11 = arith.constant 0 : index
    %12 = vector.load %arg9[%c0_10, %c0_11] : memref<144x648xbf16, #tpu.memory_space<vmem>>, vector<16x648xbf16>
    tpu.vector_store %arg9[%c0_10, %c0_11], %11 {strides = array<i32>} : memref<144x648xbf16, #tpu.memory_space<vmem>>, vector<16x648xbf16>,
    %13 = vector.extract_strided_slice %9 {offsets = [0, 1], sizes = [16, 648], strides = [1, 1]} : vector<16x686xf32> to vector<16x648xf32>
    %14 = arith.truncf %13 : vector<16x648xf32> to vector<16x648xbf16>
    %c16 = arith.constant 16 : index
    %c0_12 = arith.constant 0 : index
    %15 = vector.load %arg9[%c16, %c0_12] : memref<144x648xbf16, #tpu.memory_space<vmem>>, vector<16x648xbf16>
    tpu.vector_store %arg9[%c16, %c0_12], %14 {strides = array<i32>} : memref<144x648xbf16, #tpu.memory_space<vmem>>, vector<16x648xbf16>,
    %16 = vector.extract_strided_slice %9 {offsets = [0, 2], sizes = [16, 648], strides = [1, 1]} : vector<16x686xf32> to vector<16x648xf32>
    %17 = arith.truncf %16 : vector<16x648xf32> to vector<16x648xbf16>
    %c32 = arith.constant 32 : index
    %c0_13 = arith.constant 0 : index
    %18 = vector.load %arg9[%c32, %c0_13] : memref<144x648xbf16, #tpu.memory_space<vmem>>, vector<16x648xbf16>
    tpu.vector_store %arg9[%c32, %c0_13], %17 {strides = array<i32>} : memref<144x648xbf16, #tpu.memory_space<vmem>>, vector<16x648xbf16>,
    %19 = vector.extract_strided_slice %9 {offsets = [0, 18], sizes = [16, 648], strides = [1, 1]} : vector<16x686xf32> to vector<16x648xf32>
    %20 = arith.truncf %19 : vector<16x648xf32> to vector<16x648xbf16>
    %c48 = arith.constant 48 : index
    %c0_14 = arith.constant 0 : index
    %21 = vector.load %arg9[%c48, %c0_14] : memref<144x648xbf16, #tpu.memory_space<vmem>>, vector<16x648xbf16>
    tpu.vector_store %arg9[%c48, %c0_14], %20 {strides = array<i32>} : memref<144x648xbf16, #tpu.memory_space<vmem>>, vector<16x648xbf16>,
    %22 = vector.extract_strided_slice %9 {offsets = [0, 19], sizes = [16, 648], strides = [1, 1]} : vector<16x686xf32> to vector<16x648xf32>
    %23 = arith.truncf %22 : vector<16x648xf32> to vector<16x648xbf16>
    %c64 = arith.constant 64 : index
    %c0_15 = arith.constant 0 : index
    %24 = vector.load %arg9[%c64, %c0_15] : memref<144x648xbf16, #tpu.memory_space<vmem>>, vector<16x648xbf16>
    tpu.vector_store %arg9[%c64, %c0_15], %23 {strides = array<i32>} : memref<144x648xbf16, #tpu.memory_space<vmem>>, vector<16x648xbf16>,
    %25 = vector.extract_strided_slice %9 {offsets = [0, 20], sizes = [16, 648], strides = [1, 1]} : vector<16x686xf32> to vector<16x648xf32>
    %26 = arith.truncf %25 : vector<16x648xf32> to vector<16x648xbf16>
    %c80 = arith.constant 80 : index
    %c0_16 = arith.constant 0 : index
    %27 = vector.load %arg9[%c80, %c0_16] : memref<144x648xbf16, #tpu.memory_space<vmem>>, vector<16x648xbf16>
    tpu.vector_store %arg9[%c80, %c0_16], %26 {strides = array<i32>} : memref<144x648xbf16, #tpu.memory_space<vmem>>, vector<16x648xbf16>,
    %28 = vector.extract_strided_slice %9 {offsets = [0, 36], sizes = [16, 648], strides = [1, 1]} : vector<16x686xf32> to vector<16x648xf32>
    %29 = arith.truncf %28 : vector<16x648xf32> to vector<16x648xbf16>
    %c96 = arith.constant 96 : index
    %c0_17 = arith.constant 0 : index
    %30 = vector.load %arg9[%c96, %c0_17] : memref<144x648xbf16, #tpu.memory_space<vmem>>, vector<16x648xbf16>
    tpu.vector_store %arg9[%c96, %c0_17], %29 {strides = array<i32>} : memref<144x648xbf16, #tpu.memory_space<vmem>>, vector<16x648xbf16>,
    %31 = vector.extract_strided_slice %9 {offsets = [0, 37], sizes = [16, 648], strides = [1, 1]} : vector<16x686xf32> to vector<16x648xf32>
    %32 = arith.truncf %31 : vector<16x648xf32> to vector<16x648xbf16>
    %c112 = arith.constant 112 : index
    %c0_18 = arith.constant 0 : index
    %33 = vector.load %arg9[%c112, %c0_18] : memref<144x648xbf16, #tpu.memory_space<vmem>>, vector<16x648xbf16>
    tpu.vector_store %arg9[%c112, %c0_18], %32 {strides = array<i32>} : memref<144x648xbf16, #tpu.memory_space<vmem>>, vector<16x648xbf16>,
    %34 = vector.extract_strided_slice %9 {offsets = [0, 38], sizes = [16, 648], strides = [1, 1]} : vector<16x686xf32> to vector<16x648xf32>
    %35 = arith.truncf %34 : vector<16x648xf32> to vector<16x648xbf16>
    %c128 = arith.constant 128 : index
    %c0_19 = arith.constant 0 : index
    %36 = vector.load %arg9[%c128, %c0_19] : memref<144x648xbf16, #tpu.memory_space<vmem>>, vector<16x648xbf16>
    tpu.vector_store %arg9[%c128, %c0_19], %35 {strides = array<i32>} : memref<144x648xbf16, #tpu.memory_space<vmem>>, vector<16x648xbf16>,
    %c0_20 = arith.constant 0 : index
    %c0_21 = arith.constant 0 : index
    %37 = vector.load %arg2[%c0_20, %c0_21] : memref<8x144xbf16, #tpu.memory_space<vmem>>, vector<8x144xbf16>
    %c0_22 = arith.constant 0 : index
    %c0_23 = arith.constant 0 : index
    %38 = vector.load %arg9[%c0_22, %c0_23] : memref<144x648xbf16, #tpu.memory_space<vmem>>, vector<144x648xbf16>
    %cst_24 = arith.constant dense<0.000000e+00> : vector<8x648xf32>
    %39 = tpu.matmul %37, %38, %cst_24 {dimension_numbers = #tpu.dot_dimension_numbers<[1], [0], [0], [1], [0, 0, 1, 1], [], []>} : vector<8x144xbf16>, vector<144x648xbf16>, vector<8x648xf32> -> vector<8x648xf32>
    %c0_25 = arith.constant 0 : index
    %c0_26 = arith.constant 0 : index
    %40 = vector.load %arg7[%c0_25, %c0_26] : memref<8x16xf32, #tpu.memory_space<vmem>>, vector<8x16xf32>
    %41 = arith.mulf %5, %5 : vector<16x2xf32>
    %cst_27 = arith.constant dense<0.000000e+00> : vector<8x2xf32>
    %42 = tpu.matmul %40, %41, %cst_27 {dimension_numbers = #tpu.dot_dimension_numbers<[1], [0], [0], [1], [0, 0, 1, 1], [], []>} : vector<8x16xf32>, vector<16x2xf32>, vector<8x2xf32> -> vector<8x2xf32>
    %cst_28 = arith.constant 9.99999993E-9 : f32
    %43 = vector.broadcast %cst_28 : f32 to vector<8x2xf32>
    %44 = arith.addf %42, %43 : vector<8x2xf32>
    %45 = math.rsqrt %44 : vector<8x2xf32>
    %46 = vector.extract_strided_slice %6 {offsets = [0, 19], sizes = [2, 648], strides = [1, 1]} : vector<2x686xf32> to vector<2x648xf32>
    %cst_29 = arith.constant dense<0.000000e+00> : vector<8x648xf32>
    %47 = tpu.matmul %45, %46, %cst_29 {dimension_numbers = #tpu.dot_dimension_numbers<[1], [0], [0], [1], [0, 0, 1, 1], [], []>} : vector<8x2xf32>, vector<2x648xf32>, vector<8x648xf32> -> vector<8x648xf32>
    %48 = arith.mulf %39, %47 : vector<8x648xf32>
    %c0_30 = arith.constant 0 : index
    %c0_31 = arith.constant 0 : index
    %49 = vector.load %arg6[%c0_30, %c0_31] : memref<8x1xf32, #tpu.memory_space<vmem>>, vector<8x1xf32>
    %50 = vector.broadcast %49 : vector<8x1xf32> to vector<8x648xf32>
    %51 = arith.addf %48, %50 : vector<8x648xf32>
    %cst_32 = arith.constant 0.000000e+00 : f32
    %52 = vector.broadcast %cst_32 : f32 to vector<8x648xf32>
    %53 = arith.cmpf oge, %51, %52 : vector<8x648xf32>
    %cst_33 = arith.constant 2.000000e-01 : f32
    %54 = vector.broadcast %cst_33 : f32 to vector<8x648xf32>
    %55 = arith.mulf %54, %51 : vector<8x648xf32>
    %56 = arith.select %53, %51, %55 : vector<8x648xi1>, vector<8x648xf32>
    %cst_34 = arith.constant 1.41421354 : f32
    %57 = vector.broadcast %cst_34 : f32 to vector<8x648xf32>
    %58 = arith.mulf %56, %57 : vector<8x648xf32>
    %c0_35 = arith.constant 0 : index
    %c0_36 = arith.constant 0 : index
    %59 = vector.load %arg8[%c0_35, %c0_36] : memref<8x648xf32, #tpu.memory_space<vmem>>, vector<8x648xf32>
    tpu.vector_store %arg8[%c0_35, %c0_36], %58 {strides = array<i32>} : memref<8x648xf32, #tpu.memory_space<vmem>>, vector<8x648xf32>,
    return
  }
}

module attributes {stable_mosaic.version = 11 : i64} {
  func.func @_modconv_kernel(%arg0: memref<8x686xf32, #tpu.memory_space<vmem>>, %arg1: memref<2x686xf32, #tpu.memory_space<vmem>>, %arg2: memref<8x72xbf16, #tpu.memory_space<vmem>>, %arg3: memref<8x64xf32, #tpu.memory_space<vmem>>, %arg4: memref<8x1xf32, #tpu.memory_space<vmem>>, %arg5: memref<64x2xf32, #tpu.memory_space<vmem>>, %arg6: memref<8x1xf32, #tpu.memory_space<vmem>>, %arg7: memref<8x8xf32, #tpu.memory_space<vmem>>, %arg8: memref<8x648xf32, #tpu.memory_space<vmem>>, %arg9: memref<72x648xbf16, #tpu.memory_space<vmem>>) attributes {dimension_semantics = [], scalar_prefetch = 0 : i64, scratch_operands = 1 : i64, tpu.core_type = #tpu.core_type<tc>} {
    %c0 = arith.constant 0 : index
    %c0_0 = arith.constant 0 : index
    %0 = vector.load %arg3[%c0, %c0_0] : memref<8x64xf32, #tpu.memory_space<vmem>>, vector<8x64xf32>
    %c0_1 = arith.constant 0 : index
    %c0_2 = arith.constant 0 : index
    %1 = vector.load %arg5[%c0_1, %c0_2] : memref<64x2xf32, #tpu.memory_space<vmem>>, vector<64x2xf32>
    %cst = arith.constant dense<0.000000e+00> : vector<8x2xf32>
    %2 = tpu.matmul %0, %1, %cst {dimension_numbers = #tpu.dot_dimension_numbers<[1], [0], [0], [1], [0, 0, 1, 1], [], []>} : vector<8x64xf32>, vector<64x2xf32>, vector<8x2xf32> -> vector<8x2xf32>
    %c0_3 = arith.constant 0 : index
    %c0_4 = arith.constant 0 : index
    %3 = vector.load %arg4[%c0_3, %c0_4] : memref<8x1xf32, #tpu.memory_space<vmem>>, vector<8x1xf32>
    %4 = vector.broadcast %3 : vector<8x1xf32> to vector<8x2xf32>
    %5 = arith.addf %2, %4 : vector<8x2xf32>
    %c0_5 = arith.constant 0 : index
    %c0_6 = arith.constant 0 : index
    %6 = vector.load %arg1[%c0_5, %c0_6] : memref<2x686xf32, #tpu.memory_space<vmem>>, vector<2x686xf32>
    %cst_7 = arith.constant dense<0.000000e+00> : vector<8x686xf32>
    %7 = tpu.matmul %5, %6, %cst_7 {dimension_numbers = #tpu.dot_dimension_numbers<[1], [0], [0], [1], [0, 0, 1, 1], [], []>} : vector<8x2xf32>, vector<2x686xf32>, vector<8x686xf32> -> vector<8x686xf32>
    %c0_8 = arith.constant 0 : index
    %c0_9 = arith.constant 0 : index
    %8 = vector.load %arg0[%c0_8, %c0_9] : memref<8x686xf32, #tpu.memory_space<vmem>>, vector<8x686xf32>
    %9 = arith.mulf %8, %7 : vector<8x686xf32>
    %10 = vector.extract_strided_slice %9 {offsets = [0, 0], sizes = [8, 648], strides = [1, 1]} : vector<8x686xf32> to vector<8x648xf32>
    %11 = arith.truncf %10 : vector<8x648xf32> to vector<8x648xbf16>
    %c0_10 = arith.constant 0 : index
    %c0_11 = arith.constant 0 : index
    %12 = vector.load %arg9[%c0_10, %c0_11] : memref<72x648xbf16, #tpu.memory_space<vmem>>, vector<8x648xbf16>
    tpu.vector_store %arg9[%c0_10, %c0_11], %11 {strides = array<i32>} : memref<72x648xbf16, #tpu.memory_space<vmem>>, vector<8x648xbf16>,
    %13 = vector.extract_strided_slice %9 {offsets = [0, 1], sizes = [8, 648], strides = [1, 1]} : vector<8x686xf32> to vector<8x648xf32>
    %14 = arith.truncf %13 : vector<8x648xf32> to vector<8x648xbf16>
    %c8 = arith.constant 8 : index
    %c0_12 = arith.constant 0 : index
    %15 = vector.load %arg9[%c8, %c0_12] : memref<72x648xbf16, #tpu.memory_space<vmem>>, vector<8x648xbf16>
    tpu.vector_store %arg9[%c8, %c0_12], %14 {strides = array<i32>} : memref<72x648xbf16, #tpu.memory_space<vmem>>, vector<8x648xbf16>,
    %16 = vector.extract_strided_slice %9 {offsets = [0, 2], sizes = [8, 648], strides = [1, 1]} : vector<8x686xf32> to vector<8x648xf32>
    %17 = arith.truncf %16 : vector<8x648xf32> to vector<8x648xbf16>
    %c16 = arith.constant 16 : index
    %c0_13 = arith.constant 0 : index
    %18 = vector.load %arg9[%c16, %c0_13] : memref<72x648xbf16, #tpu.memory_space<vmem>>, vector<8x648xbf16>
    tpu.vector_store %arg9[%c16, %c0_13], %17 {strides = array<i32>} : memref<72x648xbf16, #tpu.memory_space<vmem>>, vector<8x648xbf16>,
    %19 = vector.extract_strided_slice %9 {offsets = [0, 18], sizes = [8, 648], strides = [1, 1]} : vector<8x686xf32> to vector<8x648xf32>
    %20 = arith.truncf %19 : vector<8x648xf32> to vector<8x648xbf16>
    %c24 = arith.constant 24 : index
    %c0_14 = arith.constant 0 : index
    %21 = vector.load %arg9[%c24, %c0_14] : memref<72x648xbf16, #tpu.memory_space<vmem>>, vector<8x648xbf16>
    tpu.vector_store %arg9[%c24, %c0_14], %20 {strides = array<i32>} : memref<72x648xbf16, #tpu.memory_space<vmem>>, vector<8x648xbf16>,
    %22 = vector.extract_strided_slice %9 {offsets = [0, 19], sizes = [8, 648], strides = [1, 1]} : vector<8x686xf32> to vector<8x648xf32>
    %23 = arith.truncf %22 : vector<8x648xf32> to vector<8x648xbf16>
    %c32 = arith.constant 32 : index
    %c0_15 = arith.constant 0 : index
    %24 = vector.load %arg9[%c32, %c0_15] : memref<72x648xbf16, #tpu.memory_space<vmem>>, vector<8x648xbf16>
    tpu.vector_store %arg9[%c32, %c0_15], %23 {strides = array<i32>} : memref<72x648xbf16, #tpu.memory_space<vmem>>, vector<8x648xbf16>,
    %25 = vector.extract_strided_slice %9 {offsets = [0, 20], sizes = [8, 648], strides = [1, 1]} : vector<8x686xf32> to vector<8x648xf32>
    %26 = arith.truncf %25 : vector<8x648xf32> to vector<8x648xbf16>
    %c40 = arith.constant 40 : index
    %c0_16 = arith.constant 0 : index
    %27 = vector.load %arg9[%c40, %c0_16] : memref<72x648xbf16, #tpu.memory_space<vmem>>, vector<8x648xbf16>
    tpu.vector_store %arg9[%c40, %c0_16], %26 {strides = array<i32>} : memref<72x648xbf16, #tpu.memory_space<vmem>>, vector<8x648xbf16>,
    %28 = vector.extract_strided_slice %9 {offsets = [0, 36], sizes = [8, 648], strides = [1, 1]} : vector<8x686xf32> to vector<8x648xf32>
    %29 = arith.truncf %28 : vector<8x648xf32> to vector<8x648xbf16>
    %c48 = arith.constant 48 : index
    %c0_17 = arith.constant 0 : index
    %30 = vector.load %arg9[%c48, %c0_17] : memref<72x648xbf16, #tpu.memory_space<vmem>>, vector<8x648xbf16>
    tpu.vector_store %arg9[%c48, %c0_17], %29 {strides = array<i32>} : memref<72x648xbf16, #tpu.memory_space<vmem>>, vector<8x648xbf16>,
    %31 = vector.extract_strided_slice %9 {offsets = [0, 37], sizes = [8, 648], strides = [1, 1]} : vector<8x686xf32> to vector<8x648xf32>
    %32 = arith.truncf %31 : vector<8x648xf32> to vector<8x648xbf16>
    %c56 = arith.constant 56 : index
    %c0_18 = arith.constant 0 : index
    %33 = vector.load %arg9[%c56, %c0_18] : memref<72x648xbf16, #tpu.memory_space<vmem>>, vector<8x648xbf16>
    tpu.vector_store %arg9[%c56, %c0_18], %32 {strides = array<i32>} : memref<72x648xbf16, #tpu.memory_space<vmem>>, vector<8x648xbf16>,
    %34 = vector.extract_strided_slice %9 {offsets = [0, 38], sizes = [8, 648], strides = [1, 1]} : vector<8x686xf32> to vector<8x648xf32>
    %35 = arith.truncf %34 : vector<8x648xf32> to vector<8x648xbf16>
    %c64 = arith.constant 64 : index
    %c0_19 = arith.constant 0 : index
    %36 = vector.load %arg9[%c64, %c0_19] : memref<72x648xbf16, #tpu.memory_space<vmem>>, vector<8x648xbf16>
    tpu.vector_store %arg9[%c64, %c0_19], %35 {strides = array<i32>} : memref<72x648xbf16, #tpu.memory_space<vmem>>, vector<8x648xbf16>,
    %c0_20 = arith.constant 0 : index
    %c0_21 = arith.constant 0 : index
    %37 = vector.load %arg2[%c0_20, %c0_21] : memref<8x72xbf16, #tpu.memory_space<vmem>>, vector<8x72xbf16>
    %c0_22 = arith.constant 0 : index
    %c0_23 = arith.constant 0 : index
    %38 = vector.load %arg9[%c0_22, %c0_23] : memref<72x648xbf16, #tpu.memory_space<vmem>>, vector<72x648xbf16>
    %cst_24 = arith.constant dense<0.000000e+00> : vector<8x648xf32>
    %39 = tpu.matmul %37, %38, %cst_24 {dimension_numbers = #tpu.dot_dimension_numbers<[1], [0], [0], [1], [0, 0, 1, 1], [], []>} : vector<8x72xbf16>, vector<72x648xbf16>, vector<8x648xf32> -> vector<8x648xf32>
    %c0_25 = arith.constant 0 : index
    %c0_26 = arith.constant 0 : index
    %40 = vector.load %arg7[%c0_25, %c0_26] : memref<8x8xf32, #tpu.memory_space<vmem>>, vector<8x8xf32>
    %41 = arith.mulf %5, %5 : vector<8x2xf32>
    %cst_27 = arith.constant dense<0.000000e+00> : vector<8x2xf32>
    %42 = tpu.matmul %40, %41, %cst_27 {dimension_numbers = #tpu.dot_dimension_numbers<[1], [0], [0], [1], [0, 0, 1, 1], [], []>} : vector<8x8xf32>, vector<8x2xf32>, vector<8x2xf32> -> vector<8x2xf32>
    %cst_28 = arith.constant 9.99999993E-9 : f32
    %43 = vector.broadcast %cst_28 : f32 to vector<8x2xf32>
    %44 = arith.addf %42, %43 : vector<8x2xf32>
    %45 = math.rsqrt %44 : vector<8x2xf32>
    %46 = vector.extract_strided_slice %6 {offsets = [0, 19], sizes = [2, 648], strides = [1, 1]} : vector<2x686xf32> to vector<2x648xf32>
    %cst_29 = arith.constant dense<0.000000e+00> : vector<8x648xf32>
    %47 = tpu.matmul %45, %46, %cst_29 {dimension_numbers = #tpu.dot_dimension_numbers<[1], [0], [0], [1], [0, 0, 1, 1], [], []>} : vector<8x2xf32>, vector<2x648xf32>, vector<8x648xf32> -> vector<8x648xf32>
    %48 = arith.mulf %39, %47 : vector<8x648xf32>
    %c0_30 = arith.constant 0 : index
    %c0_31 = arith.constant 0 : index
    %49 = vector.load %arg6[%c0_30, %c0_31] : memref<8x1xf32, #tpu.memory_space<vmem>>, vector<8x1xf32>
    %50 = vector.broadcast %49 : vector<8x1xf32> to vector<8x648xf32>
    %51 = arith.addf %48, %50 : vector<8x648xf32>
    %cst_32 = arith.constant 0.000000e+00 : f32
    %52 = vector.broadcast %cst_32 : f32 to vector<8x648xf32>
    %53 = arith.cmpf oge, %51, %52 : vector<8x648xf32>
    %cst_33 = arith.constant 2.000000e-01 : f32
    %54 = vector.broadcast %cst_33 : f32 to vector<8x648xf32>
    %55 = arith.mulf %54, %51 : vector<8x648xf32>
    %56 = arith.select %53, %51, %55 : vector<8x648xi1>, vector<8x648xf32>
    %cst_34 = arith.constant 1.41421354 : f32
    %57 = vector.broadcast %cst_34 : f32 to vector<8x648xf32>
    %58 = arith.mulf %56, %57 : vector<8x648xf32>
    %c0_35 = arith.constant 0 : index
    %c0_36 = arith.constant 0 : index
    %59 = vector.load %arg8[%c0_35, %c0_36] : memref<8x648xf32, #tpu.memory_space<vmem>>, vector<8x648xf32>
    tpu.vector_store %arg8[%c0_35, %c0_36], %58 {strides = array<i32>} : memref<8x648xf32, #tpu.memory_space<vmem>>, vector<8x648xf32>,
    return
  }
}

module attributes {stable_mosaic.version = 11 : i64} {
  func.func @_modconv_kernel(%arg0: memref<8x512xf32, #tpu.memory_space<vmem>>, %arg1: memref<2x512xf32, #tpu.memory_space<vmem>>, %arg2: memref<3x8xbf16, #tpu.memory_space<vmem>>, %arg3: memref<8x64xf32, #tpu.memory_space<vmem>>, %arg4: memref<8x1xf32, #tpu.memory_space<vmem>>, %arg5: memref<64x2xf32, #tpu.memory_space<vmem>>, %arg6: memref<3x1xf32, #tpu.memory_space<vmem>>, %arg7: memref<3x512xf32, #tpu.memory_space<vmem>>, %arg8: memref<3x512xf32, #tpu.memory_space<vmem>>) attributes {dimension_semantics = [], scalar_prefetch = 0 : i64, scratch_operands = 0 : i64, tpu.core_type = #tpu.core_type<tc>} {
    %c0 = arith.constant 0 : index
    %c0_0 = arith.constant 0 : index
    %0 = vector.load %arg3[%c0, %c0_0] : memref<8x64xf32, #tpu.memory_space<vmem>>, vector<8x64xf32>
    %c0_1 = arith.constant 0 : index
    %c0_2 = arith.constant 0 : index
    %1 = vector.load %arg5[%c0_1, %c0_2] : memref<64x2xf32, #tpu.memory_space<vmem>>, vector<64x2xf32>
    %cst = arith.constant dense<0.000000e+00> : vector<8x2xf32>
    %2 = tpu.matmul %0, %1, %cst {dimension_numbers = #tpu.dot_dimension_numbers<[1], [0], [0], [1], [0, 0, 1, 1], [], []>} : vector<8x64xf32>, vector<64x2xf32>, vector<8x2xf32> -> vector<8x2xf32>
    %c0_3 = arith.constant 0 : index
    %c0_4 = arith.constant 0 : index
    %3 = vector.load %arg4[%c0_3, %c0_4] : memref<8x1xf32, #tpu.memory_space<vmem>>, vector<8x1xf32>
    %4 = vector.broadcast %3 : vector<8x1xf32> to vector<8x2xf32>
    %5 = arith.addf %2, %4 : vector<8x2xf32>
    %c0_5 = arith.constant 0 : index
    %c0_6 = arith.constant 0 : index
    %6 = vector.load %arg1[%c0_5, %c0_6] : memref<2x512xf32, #tpu.memory_space<vmem>>, vector<2x512xf32>
    %cst_7 = arith.constant dense<0.000000e+00> : vector<8x512xf32>
    %7 = tpu.matmul %5, %6, %cst_7 {dimension_numbers = #tpu.dot_dimension_numbers<[1], [0], [0], [1], [0, 0, 1, 1], [], []>} : vector<8x2xf32>, vector<2x512xf32>, vector<8x512xf32> -> vector<8x512xf32>
    %c0_8 = arith.constant 0 : index
    %c0_9 = arith.constant 0 : index
    %8 = vector.load %arg0[%c0_8, %c0_9] : memref<8x512xf32, #tpu.memory_space<vmem>>, vector<8x512xf32>
    %9 = arith.mulf %8, %7 : vector<8x512xf32>
    %c0_10 = arith.constant 0 : index
    %c0_11 = arith.constant 0 : index
    %10 = vector.load %arg2[%c0_10, %c0_11] : memref<3x8xbf16, #tpu.memory_space<vmem>>, vector<3x8xbf16>
    %11 = arith.truncf %9 : vector<8x512xf32> to vector<8x512xbf16>
    %cst_12 = arith.constant dense<0.000000e+00> : vector<3x512xf32>
    %12 = tpu.matmul %10, %11, %cst_12 {dimension_numbers = #tpu.dot_dimension_numbers<[1], [0], [0], [1], [0, 0, 1, 1], [], []>} : vector<3x8xbf16>, vector<8x512xbf16>, vector<3x512xf32> -> vector<3x512xf32>
    %c0_13 = arith.constant 0 : index
    %c0_14 = arith.constant 0 : index
    %13 = vector.load %arg6[%c0_13, %c0_14] : memref<3x1xf32, #tpu.memory_space<vmem>>, vector<3x1xf32>
    %14 = vector.broadcast %13 : vector<3x1xf32> to vector<3x512xf32>
    %15 = arith.addf %12, %14 : vector<3x512xf32>
    %c0_15 = arith.constant 0 : index
    %c0_16 = arith.constant 0 : index
    %16 = vector.load %arg7[%c0_15, %c0_16] : memref<3x512xf32, #tpu.memory_space<vmem>>, vector<3x512xf32>
    %17 = arith.addf %15, %16 : vector<3x512xf32>
    %c0_17 = arith.constant 0 : index
    %c0_18 = arith.constant 0 : index
    %18 = vector.load %arg8[%c0_17, %c0_18] : memref<3x512xf32, #tpu.memory_space<vmem>>, vector<3x512xf32>
    tpu.vector_store %arg8[%c0_17, %c0_18], %17 {strides = array<i32>} : memref<3x512xf32, #tpu.memory_space<vmem>>, vector<3x512xf32>,
    return
  }
}

</mosaic_0001>

<bundles_post_ra>
// kernel: _lambda_.9
= control target key start
LH: loop header
LB: loop body
LE: loop exit
PB: predicated region body
PF: predicated region fallthrough
CT: control target
= control target key end

     0   :  { %8 = vsyncpa [#allocation3], 0  ;;  %s787_s12 = smov [#allocation2]   ;;  %s912_s0 = inlined_call_operand.vmem [shape: f32[2,64], index: 0, kind: input, shape index: {}]   ;;  %s913_s1 = inlined_call_operand.hbm [shape: f32[8,64,64], index: 1, kind: input, shape index: {}]   ;;  %s914_s2 = inlined_call_operand.vmem [shape: f32[8,1,64], index: 2, kind: input, shape index: {}]   ;;  %s915_s3 = inlined_call_operand.vmem [shape: f32[2,64], index: 3, kind: output, shape index: {}]  }
   0x1   :  { %s16_s13 = sshll.u32 %s787_s12, 4  ;;  %s763_s16 = scalar_lea.hbm %s913_s1, 8192  ;;  %s17_s13 = int_to_ptr.vmem [resolvable:$true] %s16_s13 }
   0x2   :  { %p764_p0 = scmp.ne.s32.totalorder %s913_s1, %s763_s16  ;;  %p767_p1 = scmp.lt.u32.totalorder %s763_s16, %s913_s1 }
   0x4   :  { %p769_p2 = pnand %p767_p1, %p764_p0 }
   0x6   :  { %772 = shalt.err (!%p769_p2)
}
   0x7   :  { %s773_s21 = scalar_lea.vmem %s17_s13, 8192  ;;  %p778_p4 = scmp.lt.s32.totalorder %s17_s13, %s17_s13 }
   0x8   :  { %p774_p3 = scmp.ne.s32.totalorder %s17_s13, %s773_s21  ;;  %p779_p5 = scmp.lt.s32.totalorder %s773_s21, %s773_s21 }
   0xa   :  { %p780_p6 = por %p779_p5, %p778_p4 }
   0xc   :  { %p781_p7 = pnand %p780_p6, %p774_p3 }
   0xe   :  { %784 = shalt.err (!%p781_p7)
}
   0xf   :  { %s788_s22 = smov 128   ;;  %s789_s23 = smov 8  }
  0x10   :  { %22 = dma.hbm_to_vmem [thread:$0]  %s913_s1, 8192, %s17_s13, [#allocation3], %s788_s22, %s788_s22, %s789_s23  }
  0x11   :  { %785 = dma.done.wait [#allocation3], 8192  }
  0x12   :  { %786 = vsyncadd [#allocation3], 4294959104  ;;  %v29_v0 = vld [vmem:[%s912_s0] sm:$0x3]  ;;  %vm31_vm0 = vcmask 517120   ;;  %v41_v4 = vld [vmem:[#allocation2 + $0x8] sm:$0xff] }
  0x13   :  { %v30_v1 = vmul.f32 %v29_v0, %v29_v0  ;;  %v40_v3 = vld [vmem:[#allocation2] sm:$0xff]  ;;  %v790_v6 = vmov 0.0   ;;  %v42_v7 = vld [vmem:[#allocation2 + $0x10] sm:$0xff]  ;;  %v43_v8 = vld [vmem:[#allocation2 + $0x18] sm:$0xff]  ;;  %vm791_vm1 = vmmov 0   ;;  %vm60_vm2 = vcmask 523264  }
  0x14   :  { %v48_v5 = vpack.c.bf16 %v41_v4, %v40_v3  ;;  %660 = vmatprep.subr.bf16.mxu0 %v790_v6  ;;  %672 = vmatprep.subr.bf16.mxu1 %v790_v6  ;;  %v49_v9 = vpack.c.bf16 %v43_v8, %v42_v7  ;;  %v44_v10 = vld [vmem:[#allocation2 + $0x20] sm:$0xff]  ;;  %v45_v11 = vld [vmem:[#allocation2 + $0x28] sm:$0xff]  ;;  %v46_v13 = vld [vmem:[#allocation2 + $0x30] sm:$0xff] }
  0x15   :  { %v32_v2 = vsel %vm31_vm0, %v30_v1, 0.0  ;;  %668 = vmatprep.mubr.msk.bf16.mxu0 %vm791_vm1, %v790_v6  ;;  %680 = vmatprep.mubr.msk.bf16.mxu1 %vm791_vm1, %v790_v6  ;;  %v50_v12 = vpack.c.bf16 %v45_v11, %v44_v10  ;;  %v47_v14 = vld [vmem:[#allocation2 + $0x38] sm:$0xff]  ;;  %v109_v16 = vld [vmem:[#allocation2 + $0x40] sm:$0xff]  ;;  %v110_v17 = vld [vmem:[#allocation2 + $0x48] sm:$0xff] }
  0x16   :  { %33 = vadd.xlane.f32.xlu0 %v32_v2  ;;  %661 = vmatpush3.bf16.msra.mxu0 %v48_v5  ;;  %v51_v15 = vpack.c.bf16 %v47_v14, %v46_v13  ;;  %v111_v18 = vld [vmem:[#allocation2 + $0x50] sm:$0xff]  ;;  %v117_v19 = vpack.c.bf16 %v110_v17, %v109_v16  ;;  %v112_v20 = vld [vmem:[#allocation2 + $0x58] sm:$0xff]  ;;  %v113_v28 = vld [vmem:[#allocation2 + $0x60] sm:$0xff] }
  0x17   :  { %662 = vmatprep.subr.bf16.mxu0 %v790_v6  ;;  %v118_v21 = vpack.c.bf16 %v112_v20, %v111_v18  ;;  %v114_v29 = vld [vmem:[#allocation2 + $0x68] sm:$0xff]  ;;  %v115_v31 = vld [vmem:[#allocation2 + $0x70] sm:$0xff]  ;;  %v116_v32 = vld [vmem:[#allocation2 + $0x78] sm:$0xff] }
  0x18   :  { %673 = vmatpush3.bf16.msra.mxu1 %v117_v19  ;;  %v119_v30 = vpack.c.bf16 %v114_v29, %v113_v28  ;;  %v120_v33 = vpack.c.bf16 %v116_v32, %v115_v31  ;;  %v178_v34 = vld [vmem:[#allocation2 + $0x80] sm:$0xff]  ;;  %v179_v35 = vld [vmem:[#allocation2 + $0x88] sm:$0xff]  ;;  %v180_v36 = vld [vmem:[#allocation2 + $0x90] sm:$0xff] }
  0x19   :  { %674 = vmatprep.subr.bf16.mxu1 %v790_v6  ;;  %v186_v37 = vpack.c.bf16 %v179_v35, %v178_v34  ;;  %v181_v38 = vld [vmem:[#allocation2 + $0x98] sm:$0xff]  ;;  %v597_v40 = vld [vmem:[%s914_s2] ss:$0 sm:$0xff]  ;;  %v183_v51 = vld [vmem:[#allocation2 + $0xa8] sm:$0xff] }
  0x1a   :  { %663 = vmatpush3.bf16.msra.mxu0 %v49_v9  ;;  %v187_v39 = vpack.c.bf16 %v181_v38, %v180_v36  ;;  %v182_v50 = vld [vmem:[#allocation2 + $0xa0] sm:$0xff]  ;;  %v184_v53 = vld [vmem:[#allocation2 + $0xb0] sm:$0xff]  ;;  %v185_v54 = vld [vmem:[#allocation2 + $0xb8] sm:$0xff] }
  0x1b   :  { %664 = vmatprep.subr.bf16.mxu0 %v790_v6  ;;  %v188_v52 = vpack.c.bf16 %v183_v51, %v182_v50  ;;  %v189_v55 = vpack.c.bf16 %v185_v54, %v184_v53  ;;  %v247_v56 = vld [vmem:[#allocation2 + $0xc0] sm:$0xff]  ;;  %v248_v57 = vld [vmem:[#allocation2 + $0xc8] sm:$0xff]  ;;  %v249_v58 = vld [vmem:[#allocation2 + $0xd0] sm:$0xff] }
  0x1c   :  { %675 = vmatpush3.bf16.msra.mxu1 %v118_v21  ;;  %v255_v59 = vpack.c.bf16 %v248_v57, %v247_v56  ;;  %v250_v60 = vld [vmem:[#allocation2 + $0xd8] sm:$0xff]  ;;  %v600_v62 = vld [vmem:[%s914_s2 + $0x1] ss:$0 sm:$0xff]  ;;  %v252_v10 = vld [vmem:[#allocation2 + $0xe8] sm:$0xff] }
  0x1d   :  { %676 = vmatprep.subr.bf16.mxu1 %v790_v6  ;;  %v256_v61 = vpack.c.bf16 %v250_v60, %v249_v58  ;;  %v251_v9 = vld [vmem:[#allocation2 + $0xe0] sm:$0xff]  ;;  %v254_v13 = vld [vmem:[#allocation2 + $0xf8] sm:$0xff]  ;;  %v317_v16 = vld [vmem:[#allocation2 + $0x108] sm:$0xff] }
  0x1e   :  { %665 = vmatpush3.bf16.msra.mxu0 %v50_v12  ;;  %v257_v11 = vpack.c.bf16 %v252_v10, %v251_v9  ;;  %v253_v12 = vld [vmem:[#allocation2 + $0xf0] sm:$0xff]  ;;  %v319_v19 = vld [vmem:[#allocation2 + $0x118] sm:$0xff]  ;;  %v603_v21 = vld [vmem:[%s914_s2 + $0x2] ss:$0 sm:$0xff] }
  0x1f   :  { %666 = vmatprep.subr.bf16.mxu0 %v790_v6  ;;  %v258_v14 = vpack.c.bf16 %v254_v13, %v253_v12  ;;  %v318_v17 = vld [vmem:[#allocation2 + $0x110] sm:$0xff]  ;;  %v320_v31 = vld [vmem:[#allocation2 + $0x120] sm:$0xff]  ;;  %v321_v32 = vld [vmem:[#allocation2 + $0x128] sm:$0xff] }
  0x20   :  { %677 = vmatpush3.bf16.msra.mxu1 %v119_v30  ;;  %v325_v20 = vpack.c.bf16 %v319_v19, %v318_v17  ;;  %v322_v34 = vld [vmem:[#allocation2 + $0x130] sm:$0xff]  ;;  %v323_v35 = vld [vmem:[#allocation2 + $0x138] sm:$0xff]  ;;  %v386_v38 = vld [vmem:[#allocation2 + $0x148] sm:$0xff] }
  0x21   :  { %678 = vmatprep.subr.bf16.mxu1 %v790_v6  ;;  %v327_v36 = vpack.c.bf16 %v323_v35, %v322_v34  ;;  %v389_v53 = vld [vmem:[#allocation2 + $0x160] sm:$0xff]  ;;  %v390_v54 = vld [vmem:[#allocation2 + $0x168] sm:$0xff]  ;;  %v391_v56 = vld [vmem:[#allocation2 + $0x170] sm:$0xff] }
  0x22   :  { %667 = vmatpush3.bf16.msra.mxu0 %v51_v15  ;;  %v316_v15 = vld [vmem:[#allocation2 + $0x100] sm:$0xff]  ;;  %v392_v57 = vld [vmem:[#allocation2 + $0x178] sm:$0xff]  ;;  %v455_v60 = vld [vmem:[#allocation2 + $0x188] sm:$0xff] }
  0x23   :  { %684 = vmatprep.subr.bf16.mxu0 %v790_v6  ;;  %v324_v18 = vpack.c.bf16 %v317_v16, %v316_v15  ;;  %v396_v58 = vpack.c.bf16 %v392_v57, %v391_v56  ;;  %v458_v12 = vld [vmem:[#allocation2 + $0x1a0] sm:$0xff]  ;;  %v459_v13 = vld [vmem:[#allocation2 + $0x1a8] sm:$0xff]  ;;  %v460_v15 = vld [vmem:[#allocation2 + $0x1b0] sm:$0xff] }
  0x24   :  { %679 = vmatpush3.bf16.msra.mxu1 %v120_v33  ;;  %v326_v33 = vpack.c.bf16 %v321_v32, %v320_v31  ;;  %v461_v16 = vld [vmem:[#allocation2 + $0x1b8] sm:$0xff]  ;;  %v524_v19 = vld [vmem:[#allocation2 + $0x1c8] sm:$0xff]  ;;  %v527_v34 = vld [vmem:[#allocation2 + $0x1e0] sm:$0xff] }
  0x25   :  { %696 = vmatprep.subr.bf16.mxu1 %v790_v6  ;;  %v465_v17 = vpack.c.bf16 %v461_v16, %v460_v15  ;;  %v528_v35 = vld [vmem:[#allocation2 + $0x1e8] sm:$0xff] }
  0xa3   :  { %v34_v22 = vpop.xlane.xlu0 %33 }
  0xa4   :  { %v36_v23 = vmul.f32 0.015625, %v34_v22 }
  0xa6   :  { %v37_v24 = vadd.f32 1e-08, %v36_v23 }
  0xa8   :  { %761 = vrsqrt.f32 %v37_v24 }
  0xb2   :  { %v762_v25 = vpop.eup %761 }
  0xb3   :  { %v39_v26 = vmul.f32 %v762_v25, %v29_v0 }
  0xb5   :  { %v53_v27 = vpack.c.bf16 %v39_v26, %v39_v26 }
  0xb7   :  { %669 = vmatmul.mubr.msk.bf16.vlgmr.msra.gmra.mrb[0].mxu0 %vm60_vm2, %v53_v27 }
  0xb8   :  { %692 = vmatprep.mubr.msk.bf16.mxu0 %vm791_vm1, %v790_v6  ;;  %685 = vmatpush3.bf16.msra.mxu0 %v186_v37  ;;  %v385_v37 = vld [vmem:[#allocation2 + $0x140] sm:$0xff] }
  0xb9   :  { %686 = vmatprep.subr.bf16.mxu0 %v790_v6 }
  0xbc   :  { %687 = vmatpush3.bf16.msra.mxu0 %v187_v39  ;;  %v387_v39 = vld [vmem:[#allocation2 + $0x150] sm:$0xff] }
  0xbd   :  { %688 = vmatprep.subr.bf16.mxu0 %v790_v6 }
  0xc0   :  { %689 = vmatpush3.bf16.msra.mxu0 %v188_v52 }
  0xc1   :  { %690 = vmatprep.subr.bf16.mxu0 %v790_v6 }
  0xc4   :  { %691 = vmatpush3.bf16.msra.mxu0 %v189_v55  ;;  %v395_v55 = vpack.c.bf16 %v390_v54, %v389_v53 }
  0xc5   :  { %708 = vmatprep.subr.bf16.mxu0 %v790_v6 }
 0x18a   :  { %v98_v41 = vpop.f32.mrb[0].mxu0 }
 0x18b   :  { %v99_v42 = vadd.f32 %v597_v40, %v98_v41  ;;  %v670_v43 = vpop.f32.mrb[1].mxu0  ;;  %v393_v40 = vpack.c.bf16 %v386_v38, %v385_v37  ;;  %v388_v41 = vld [vmem:[#allocation2 + $0x158] sm:$0xff]  ;;  %v529_v37 = vld [vmem:[#allocation2 + $0x1f0] sm:$0xff] }
 0x18c   :  { %v101_v44 = vpop.f32.mrb[2].mxu0  ;;  %v606_v43 = vld [vmem:[%s914_s2 + $0x3] ss:$0 sm:$0xff]  ;;  %v530_v38 = vld [vmem:[#allocation2 + $0x1f8] sm:$0xff] }
 0x18d   :  { %vm104_vm3 = vcmp.ge.f32.partialorder %v99_v42, 0.0  ;;  %v105_v45 = vmul.f32 0.2, %v99_v42  ;;  %v671_v46 = vpop.f32.mrb[3].mxu0 }
 0x18f   :  { %v106_v47 = vsel %vm104_vm3, %v99_v42, %v105_v45  ;;  %v394_v42 = vpack.c.bf16 %v388_v41, %v387_v39  ;;  %v534_v39 = vpack.c.bf16 %v530_v38, %v529_v37 }
 0x190   :  { %v107_v48 = vmul.f32 1.4142135, %v106_v47 }
 0x192   :  { %v123_v49 = vpack.c.bf16 %v107_v48, %v107_v48 }
 0x194   :  { %681 = vmatmul.mubr.msk.bf16.vlgmr.msra.gmra.mrb[0].mxu1 %vm60_vm2, %v123_v49 }
 0x195   :  { %704 = vmatprep.mubr.msk.bf16.mxu1 %vm791_vm1, %v790_v6  ;;  %697 = vmatpush3.bf16.msra.mxu1 %v255_v59  ;;  %v454_v59 = vld [vmem:[#allocation2 + $0x180] sm:$0xff] }
 0x196   :  { %698 = vmatprep.subr.bf16.mxu1 %v790_v6 }
 0x199   :  { %699 = vmatpush3.bf16.msra.mxu1 %v256_v61  ;;  %v456_v61 = vld [vmem:[#allocation2 + $0x190] sm:$0xff] }
 0x19a   :  { %700 = vmatprep.subr.bf16.mxu1 %v790_v6 }
 0x19d   :  { %701 = vmatpush3.bf16.msra.mxu1 %v257_v11 }
 0x19e   :  { %702 = vmatprep.subr.bf16.mxu1 %v790_v6 }
 0x1a1   :  { %703 = vmatpush3.bf16.msra.mxu1 %v258_v14  ;;  %v464_v14 = vpack.c.bf16 %v459_v13, %v458_v12 }
 0x1a2   :  { %720 = vmatprep.subr.bf16.mxu1 %v790_v6 }
 0x267   :  { %v167_v63 = vpop.f32.mrb[0].mxu1 }
 0x268   :  { %v168_v0 = vadd.f32 %v600_v62, %v167_v63  ;;  %v682_v1 = vpop.f32.mrb[1].mxu1  ;;  %v462_v62 = vpack.c.bf16 %v455_v60, %v454_v59  ;;  %v457_v63 = vld [vmem:[#allocation2 + $0x198] sm:$0xff] }
 0x269   :  { %v170_v2 = vpop.f32.mrb[2].mxu1  ;;  %v609_v1 = vld [vmem:[%s914_s2 + $0x4] ss:$0 sm:$0xff] }
 0x26a   :  { %vm173_vm4 = vcmp.ge.f32.partialorder %v168_v0, 0.0  ;;  %v174_v3 = vmul.f32 0.2, %v168_v0  ;;  %v683_v4 = vpop.f32.mrb[3].mxu1 }
 0x26c   :  { %v175_v5 = vsel %vm173_vm4, %v168_v0, %v174_v3  ;;  %v463_v0 = vpack.c.bf16 %v457_v63, %v456_v61 }
 0x26d   :  { %v176_v7 = vmul.f32 1.4142135, %v175_v5 }
 0x26f   :  { %v192_v8 = vpack.c.bf16 %v176_v7, %v176_v7 }
 0x271   :  { %693 = vmatmul.mubr.msk.bf16.vlgmr.msra.gmra.mrb[4].mxu0 %vm60_vm2, %v192_v8 }
 0x272   :  { %716 = vmatprep.mubr.msk.bf16.mxu0 %vm791_vm1, %v790_v6  ;;  %709 = vmatpush3.bf16.msra.mxu0 %v324_v18  ;;  %v523_v18 = vld [vmem:[#allocation2 + $0x1c0] sm:$0xff] }
 0x273   :  { %710 = vmatprep.subr.bf16.mxu0 %v790_v6 }
 0x276   :  { %711 = vmatpush3.bf16.msra.mxu0 %v325_v20  ;;  %v525_v20 = vld [vmem:[#allocation2 + $0x1d0] sm:$0xff] }
 0x277   :  { %712 = vmatprep.subr.bf16.mxu0 %v790_v6 }
 0x27a   :  { %713 = vmatpush3.bf16.msra.mxu0 %v326_v33 }
 0x27b   :  { %714 = vmatprep.subr.bf16.mxu0 %v790_v6 }
 0x27e   :  { %715 = vmatpush3.bf16.msra.mxu0 %v327_v36  ;;  %v533_v36 = vpack.c.bf16 %v528_v35, %v527_v34 }
 0x27f   :  { %732 = vmatprep.subr.bf16.mxu0 %v790_v6 }
 0x344   :  { %v236_v22 = vpop.f32.mrb[4].mxu0 }
 0x345   :  { %v237_v23 = vadd.f32 %v603_v21, %v236_v22  ;;  %v694_v24 = vpop.f32.mrb[5].mxu0  ;;  %v531_v21 = vpack.c.bf16 %v524_v19, %v523_v18  ;;  %v526_v22 = vld [vmem:[#allocation2 + $0x1d8] sm:$0xff] }
 0x346   :  { %v239_v25 = vpop.f32.mrb[6].mxu0  ;;  %v612_v24 = vld [vmem:[%s914_s2 + $0x5] ss:$0 sm:$0xff] }
 0x347   :  { %vm242_vm5 = vcmp.ge.f32.partialorder %v237_v23, 0.0  ;;  %v243_v26 = vmul.f32 0.2, %v237_v23  ;;  %v695_v27 = vpop.f32.mrb[7].mxu0 }
 0x349   :  { %v244_v28 = vsel %vm242_vm5, %v237_v23, %v243_v26  ;;  %v532_v23 = vpack.c.bf16 %v526_v22, %v525_v20 }
 0x34a   :  { %v245_v29 = vmul.f32 1.4142135, %v244_v28 }
 0x34c   :  { %v261_v30 = vpack.c.bf16 %v245_v29, %v245_v29 }
 0x34e   :  { %705 = vmatmul.mubr.msk.bf16.vlgmr.msra.gmra.mrb[4].mxu1 %vm60_vm2, %v261_v30 }
 0x34f   :  { %728 = vmatprep.mubr.msk.bf16.mxu1 %vm791_vm1, %v790_v6  ;;  %721 = vmatpush3.bf16.msra.mxu1 %v393_v40  ;;  %v615_v40 = vld [vmem:[%s914_s2 + $0x6] ss:$0 sm:$0xff] }
 0x350   :  { %722 = vmatprep.subr.bf16.mxu1 %v790_v6 }
 0x353   :  { %723 = vmatpush3.bf16.msra.mxu1 %v394_v42 }
 0x354   :  { %724 = vmatprep.subr.bf16.mxu1 %v790_v6 }
 0x357   :  { %725 = vmatpush3.bf16.msra.mxu1 %v395_v55 }
 0x358   :  { %726 = vmatprep.subr.bf16.mxu1 %v790_v6 }
 0x35b   :  { %727 = vmatpush3.bf16.msra.mxu1 %v396_v58 }
 0x35c   :  { %744 = vmatprep.subr.bf16.mxu1 %v790_v6 }
 0x421   :  { %v305_v44 = vpop.f32.mrb[4].mxu1 }
 0x422   :  { %v306_v45 = vadd.f32 %v606_v43, %v305_v44  ;;  %v706_v46 = vpop.f32.mrb[5].mxu1 }
 0x423   :  { %v308_v47 = vpop.f32.mrb[6].mxu1 }
 0x424   :  { %vm311_vm6 = vcmp.ge.f32.partialorder %v306_v45, 0.0  ;;  %v312_v48 = vmul.f32 0.2, %v306_v45  ;;  %v707_v49 = vpop.f32.mrb[7].mxu1 }
 0x426   :  { %v313_v50 = vsel %vm311_vm6, %v306_v45, %v312_v48 }
 0x427   :  { %v314_v51 = vmul.f32 1.4142135, %v313_v50 }
 0x429   :  { %v330_v52 = vpack.c.bf16 %v314_v51, %v314_v51 }
 0x42b   :  { %717 = vmatmul.mubr.msk.bf16.vlgmr.msra.gmra.mrb[8].mxu0 %vm60_vm2, %v330_v52 }
 0x42c   :  { %740 = vmatprep.mubr.msk.bf16.mxu0 %vm791_vm1, %v790_v6  ;;  %733 = vmatpush3.bf16.msra.mxu0 %v462_v62 }
 0x42d   :  { %734 = vmatprep.subr.bf16.mxu0 %v790_v6 }
 0x430   :  { %735 = vmatpush3.bf16.msra.mxu0 %v463_v0 }
 0x431   :  { %736 = vmatprep.subr.bf16.mxu0 %v790_v6 }
 0x434   :  { %737 = vmatpush3.bf16.msra.mxu0 %v464_v14 }
 0x435   :  { %738 = vmatprep.subr.bf16.mxu0 %v790_v6 }
 0x438   :  { %739 = vmatpush3.bf16.msra.mxu0 %v465_v17 }
 0x4fe   :  { %v374_v2 = vpop.f32.mrb[8].mxu0 }
 0x4ff   :  { %v375_v3 = vadd.f32 %v609_v1, %v374_v2  ;;  %v718_v4 = vpop.f32.mrb[9].mxu0 }
 0x500   :  { %v377_v5 = vpop.f32.mrb[10].mxu0 }
 0x501   :  { %vm380_vm7 = vcmp.ge.f32.partialorder %v375_v3, 0.0  ;;  %v381_v7 = vmul.f32 0.2, %v375_v3  ;;  %v719_v8 = vpop.f32.mrb[11].mxu0 }
 0x503   :  { %v382_v9 = vsel %vm380_vm7, %v375_v3, %v381_v7 }
 0x504   :  { %v383_v10 = vmul.f32 1.4142135, %v382_v9 }
 0x506   :  { %v399_v11 = vpack.c.bf16 %v383_v10, %v383_v10 }
 0x508   :  { %729 = vmatmul.mubr.msk.bf16.vlgmr.msra.gmra.mrb[8].mxu1 %vm60_vm2, %v399_v11 }
 0x509   :  { %752 = vmatprep.mubr.msk.bf16.mxu1 %vm791_vm1, %v790_v6  ;;  %745 = vmatpush3.bf16.msra.mxu1 %v531_v21 }
 0x50a   :  { %746 = vmatprep.subr.bf16.mxu1 %v790_v6 }
 0x50d   :  { %747 = vmatpush3.bf16.msra.mxu1 %v532_v23 }
 0x50e   :  { %748 = vmatprep.subr.bf16.mxu1 %v790_v6 }
 0x511   :  { %749 = vmatpush3.bf16.msra.mxu1 %v533_v36 }
 0x512   :  { %750 = vmatprep.subr.bf16.mxu1 %v790_v6  ;;  %v618_v6 = vld [vmem:[%s914_s2 + $0x7] ss:$0 sm:$0xff] }
 0x515   :  { %751 = vmatpush3.bf16.msra.mxu1 %v534_v39 }
 0x5db   :  { %v443_v25 = vpop.f32.mrb[8].mxu1 }
 0x5dc   :  { %v444_v26 = vadd.f32 %v612_v24, %v443_v25  ;;  %v730_v27 = vpop.f32.mrb[9].mxu1 }
 0x5dd   :  { %v446_v28 = vpop.f32.mrb[10].mxu1 }
 0x5de   :  { %vm449_vm8 = vcmp.ge.f32.partialorder %v444_v26, 0.0  ;;  %v450_v29 = vmul.f32 0.2, %v444_v26  ;;  %v731_v30 = vpop.f32.mrb[11].mxu1 }
 0x5e0   :  { %v451_v31 = vsel %vm449_vm8, %v444_v26, %v450_v29 }
 0x5e1   :  { %v452_v32 = vmul.f32 1.4142135, %v451_v31 }
 0x5e3   :  { %v468_v33 = vpack.c.bf16 %v452_v32, %v452_v32 }
 0x5e5   :  { %741 = vmatmul.mubr.msk.bf16.vlgmr.msra.gmra.mrb[12].mxu0 %vm60_vm2, %v468_v33 }
 0x6b8   :  { %v512_v41 = vpop.f32.mrb[12].mxu0 }
 0x6b9   :  { %v513_v42 = vadd.f32 %v615_v40, %v512_v41  ;;  %v742_v43 = vpop.f32.mrb[13].mxu0 }
 0x6ba   :  { %v515_v44 = vpop.f32.mrb[14].mxu0 }
 0x6bb   :  { %vm518_vm9 = vcmp.ge.f32.partialorder %v513_v42, 0.0  ;;  %v519_v45 = vmul.f32 0.2, %v513_v42  ;;  %v743_v46 = vpop.f32.mrb[15].mxu0 }
 0x6bd   :  { %v520_v47 = vsel %vm518_vm9, %v513_v42, %v519_v45 }
 0x6be   :  { %v521_v48 = vmul.f32 1.4142135, %v520_v47 }
 0x6c0   :  { %v537_v49 = vpack.c.bf16 %v521_v48, %v521_v48 }
 0x6c2   :  { %753 = vmatmul.mubr.msk.bf16.vlgmr.msra.gmra.mrb[12].mxu1 %vm60_vm2, %v537_v49 }
 0x795   :  { %v581_v50 = vpop.f32.mrb[12].mxu1 }
 0x796   :  { %v582_v51 = vadd.f32 %v618_v6, %v581_v50  ;;  %v754_v52 = vpop.f32.mrb[13].mxu1 }
 0x797   :  { %v584_v53 = vpop.f32.mrb[14].mxu1 }
 0x798   :  { %vm587_vm10 = vcmp.ge.f32.partialorder %v582_v51, 0.0  ;;  %v588_v54 = vmul.f32 0.2, %v582_v51  ;;  %v755_v55 = vpop.f32.mrb[15].mxu1 }
 0x79a   :  { %v589_v56 = vsel %vm587_vm10, %v582_v51, %v588_v54 }
 0x79b   :  { %v590_v57 = vmul.f32 1.4142135, %v589_v56 }
 0x79d   :  { %591 = vst.msk [vmem:[%s915_s3] sm:$0x3] %vm31_vm0, %v590_v57 }
 0x79e   :  { %596 = vsyncpa [#allocation3], 1 }

// kernel: _lambda_.10
= control target key start
LH: loop header
LB: loop body
LE: loop exit
PB: predicated region body
PF: predicated region fallthrough
CT: control target
= control target key end

     0   :  { %vm66_vm0 = vcmask 523264   ;;  %v972_v3 = vmov 0   ;;  %vm178_vm1 = vcmask 1041408   ;;  %vm165_vm2 = vcmask 15360   ;;  %s973_s21 = smov 114   ;;  %s975_s24 = smov 120   ;;  %s1200_s5 = inlined_call_operand.vmem [shape: f32[64,2], index: 5, kind: input, shape index: {}]   ;;  %s1201_s3 = inlined_call_operand.vmem [shape: f32[32,64], index: 3, kind: input, shape index: {}]   ;;  %s1202_s4 = inlined_call_operand.vmem [shape: f32[32,1], index: 4, kind: input, shape index: {}]   ;;  %s1203_s1 = inlined_call_operand.vmem [shape: f32[2,86], index: 1, kind: input, shape index: {}]   ;;  %s1204_s0 = inlined_call_operand.vmem [shape: f32[32,86], index: 0, kind: input, shape index: {}]   ;;  %s1205_s2 = inlined_call_operand.vmem [shape: bf16[32,288], index: 2, kind: input, shape index: {}]   ;;  %s1206_s6 = inlined_call_operand.vmem [shape: f32[32,1], index: 6, kind: input, shape index: {}]   ;;  %s1207_s7 = inlined_call_operand.vmem [shape: f32[32,32], index: 7, kind: input, shape index: {}]   ;;  %s1208_s8 = inlined_call_operand.vmem [shape: f32[32,72], index: 8, kind: output, shape index: {}]  }
   0x1   :  { %v34_v0 = vld [vmem:[%s1200_s5] sm:$0xff]  ;;  %v35_v1 = vld [vmem:[%s1200_s5 + $0x8] sm:$0xff]  ;;  %v36_v2 = vld [vmem:[%s1200_s5 + $0x10] sm:$0xff]  ;;  %954 = vset.pattern.permute.xlu0 %v972_v3  ;;  %955 = vset.pattern.permute.xlu1 %v972_v3  ;;  %vm277_vm3 = vcmask 588800   ;;  %vm402_vm4 = vcmask 261120   ;;  %s976_s25 = smov 127  }
   0x2   :  { %v921_v4 = vpack.c.bf16 %v35_v1, %v34_v0  ;;  %v37_v5 = vld [vmem:[%s1200_s5 + $0x18] sm:$0xff]  ;;  %v38_v7 = vld [vmem:[%s1200_s5 + $0x20] sm:$0xff]  ;;  %v39_v8 = vld [vmem:[%s1200_s5 + $0x28] sm:$0xff]  ;;  %s977_s26 = smov 116   ;;  %s978_s27 = smov 126  }
   0x3   :  { %v925_v6 = vpack.c.bf16 %v37_v5, %v36_v2  ;;  %v30_v9 = vld [vmem:[%s1201_s3] sm:$0xff]  ;;  %v44_v11 = vld [vmem:[%s1202_s4 + $0x10] sm:$0xff]  ;;  %v929_v12 = vpack.c.bf16 %v39_v8, %v38_v7  ;;  %v41_v14 = vld [vmem:[%s1200_s5 + $0x38] sm:$0xff]  ;;  %s979_s28 = smov 115   ;;  %s980_s29 = smov 122  }
   0x4   :  { %922 = vmatprep.subr.bf16.mxu0 %v921_v4  ;;  %877 = vmatprep.mubr.msk.f32.mxu0 %vm66_vm0, %v30_v9  ;;  %v42_v10 = vld [vmem:[%s1202_s4] sm:$0xff]  ;;  %v40_v13 = vld [vmem:[%s1200_s5 + $0x30] sm:$0xff]  ;;  %v43_v15 = vld [vmem:[%s1202_s4 + $0x8] sm:$0xff] }
   0x5   :  { %924 = vmatpush3.bf16.msra.mxu0 %v921_v4  ;;  %48 = vperm.xlu0 %954, %v42_v10   ;;  %v45_v16 = vld [vmem:[%s1202_s4 + $0x18] sm:$0xff]  ;;  %v933_v17 = vpack.c.bf16 %v41_v14, %v40_v13  ;;  %v31_v18 = vld [vmem:[%s1201_s3 + $0x8] sm:$0xff]  ;;  %v32_v19 = vld [vmem:[%s1201_s3 + $0x10] sm:$0xff] }
   0x6   :  { %926 = vmatprep.subr.bf16.mxu0 %v925_v6  ;;  %58 = vperm.xlu1 %955, %v44_v11   ;;  %v33_v20 = vld [vmem:[%s1201_s3 + $0x18] sm:$0xff]  ;;  %v1081_v21 = vld [vmem:[%s1203_s1] sm:$0x3]  ;;  %v268_v40 = vld [vmem:[%s1204_s0 + $0x8] sm:$0xff] }
   0x7   :  { %883 = vmatprep.subr.msk.mxu1 %vm178_vm1, %v1081_v21  ;;  %v267_v41 = vld [vmem:[%s1204_s0] sm:$0xff]  ;;  %v270_v46 = vld [vmem:[%s1204_s0 + $0x18] sm:$0xff]  ;;  %v269_v47 = vld [vmem:[%s1204_s0 + $0x10] sm:$0xff]  ;;  %s974_s0 = smov 121  }
   0x8   :  { %884 = vmatpush3.msk.msra.mxu1 %vm178_vm1, %v1081_v21  ;;  %v956_v53 = vld [vmem:[%s1205_s2 + $0x8] ss:$12 sps:$4 sm:$0xff]   ;;  %v960_v55 = vld [vmem:[%s1205_s2 + $0x4] ss:$12 sps:$4 sm:$0xff]   ;;  %v724_v59 = vld [vmem:[%s1206_s6 + $0x18] sm:$0xff] }
   0x9   :  { %928 = vmatpush3.bf16.msra.mxu0 %v925_v6  ;;  %53 = vperm.xlu0 %954, %v43_v15   ;;  %v721_v56 = vld [vmem:[%s1206_s6] sm:$0xff]  ;;  %v722_v57 = vld [vmem:[%s1206_s6 + $0x8] sm:$0xff]  ;;  %v723_v58 = vld [vmem:[%s1206_s6 + $0x10] sm:$0xff] }
   0xa   :  { %930 = vmatprep.subr.bf16.mxu0 %v929_v12  ;;  %63 = vperm.xlu1 %955, %v45_v16   ;;  %v957_v7 = vld [vmem:[%s1205_s2 + $0x20] ss:$12 sps:$4 sm:$0xff]  }
   0xd   :  { %932 = vmatpush3.bf16.msra.mxu0 %v929_v12  ;;  %v507_v12 = vld [vmem:[%s1207_s7] sm:$0xff] }
   0xe   :  { %934 = vmatprep.subr.bf16.mxu0 %v933_v17 }
  0x11   :  { %936 = vmatpush3.bf16.msra.mxu0 %v933_v17 }
  0x14   :  { %878 = vmatmul.mubr.msk.f32.vlgmr.msra.gmra.mrb[0].mxu0 %vm66_vm0, %v31_v18  ;;  %v508_v18 = vld [vmem:[%s1207_s7 + $0x8] sm:$0xff] }
  0x15   :  { %880 = vmatprep.mubr.msk.f32.mxu0 %vm66_vm0, %v32_v19  ;;  %v509_v19 = vld [vmem:[%s1207_s7 + $0x10] sm:$0xff] }
  0x18   :  { %881 = vmatmul.mubr.msk.f32.gmra.mrb[2].mxu0 %vm66_vm0, %v33_v20 }
  0x19   :  { %895 = vmatprep.mubr.msk.bf16.mxu0 %vm402_vm4, %v956_v53 }
  0x84   :  { %v49_v22 = vpop.permute.xlu0 %48 }
  0x85   :  { %v59_v23 = vpop.permute.xlu1 %58 }
  0x88   :  { %v54_v24 = vpop.permute.xlu0 %53 }
  0x89   :  { %v64_v31 = vpop.permute.xlu1 %63 }
  0xe7   :  { %v879_v25 = vpop.f32.mrb[0].mxu0 }
  0xe8   :  { %v151_v26 = vadd.f32 %v879_v25, %v54_v24  ;;  %v145_v27 = vpop.f32.mrb[1].mxu0  ;;  %v510_v24 = vld [vmem:[%s1207_s7 + $0x18] sm:$0xff] }
  0xe9   :  { %v146_v28 = vadd.f32 %v145_v27, %v49_v22 }
  0xea   :  { %v512_v29 = vmul.f32 %v151_v26, %v151_v26 }
  0xeb   :  { %v511_v30 = vmul.f32 %v146_v28, %v146_v28  ;;  %v882_v32 = vpop.f32.mrb[2].mxu0  ;;  %885 = vmatprep.mubr.msk.f32.mxu1 %vm165_vm2, %v146_v28 }
  0xec   :  { %v161_v33 = vadd.f32 %v882_v32, %v64_v31  ;;  %v155_v34 = vpop.f32.mrb[3].mxu0  ;;  %886 = vmatmul.mubr.msk.f32.vlgmr.msra.gmra.mrb[0].mxu1 %vm165_vm2, %v151_v26 }
  0xed   :  { %v156_v35 = vadd.f32 %v155_v34, %v59_v23  ;;  %v1089_v36 = vpack.c.bf16 %v512_v29, %v511_v30 }
  0xee   :  { %v514_v37 = vmul.f32 %v161_v33, %v161_v33 }
  0xef   :  { %v513_v38 = vmul.f32 %v156_v35, %v156_v35  ;;  %888 = vmatprep.mubr.msk.f32.mxu1 %vm165_vm2, %v156_v35 }
  0xf0   :  { %889 = vmatmul.mubr.msk.f32.gmra.mrb[2].mxu1 %vm165_vm2, %v161_v33 }
  0xf1   :  { %v1093_v39 = vpack.c.bf16 %v514_v37, %v513_v38  ;;  %441 = vmatprep.mubr.bf16.mxu1 %v960_v55  ;;  %v961_v37 = vld [vmem:[%s1205_s2 + $0x1c] ss:$12 sps:$4 sm:$0xff]   ;;  %v963_v38 = vld [vmem:[%s1205_s2 + $0x18] ss:$12 sps:$4 sm:$0xff]  }
 0x1bf   :  { %v887_v42 = vpop.f32.mrb[0].mxu1 }
 0x1c0   :  { %v272_v43 = vmul.f32 %v887_v42, %v268_v40  ;;  %v248_v44 = vpop.f32.mrb[1].mxu1 }
 0x1c1   :  { %v271_v45 = vmul.f32 %v267_v41, %v248_v44 }
 0x1c3   :  { %v275_v48 = vpack.c.bf16 %v272_v43, %v271_v45  ;;  %v890_v49 = vpop.f32.mrb[2].mxu1 }
 0x1c4   :  { %v274_v50 = vmul.f32 %v890_v49, %v270_v46  ;;  %v258_v51 = vpop.f32.mrb[3].mxu1 }
 0x1c5   :  { %v273_v52 = vmul.f32 %v269_v47, %v258_v51  ;;  %338 = vrot.lane.b32.xlu0 %v275_v48, %s973_s21  ;;  %278 = vst.msk [vmem:[#allocation2] sm:$0xff] %vm277_vm3, %v275_v48 }
 0x1c7   :  { %v276_v54 = vpack.c.bf16 %v274_v50, %v273_v52 }
 0x1c9   :  { %340 = vrot.lane.b32.xlu1 %v276_v54, %s973_s21  ;;  %306 = vrot.lane.b32.xlu0 %v275_v48, %s974_s0  ;;  %279 = vst.msk [vmem:[#allocation2 + $0x8] sm:$0xff] %vm277_vm3, %v276_v54 }
 0x1cc   :  { %v354_v6 = vld [vmem:[#allocation2] sm:$0xff] }
 0x1cd   :  { %308 = vrot.lane.b32.xlu1 %v276_v54, %s974_s0  ;;  %314 = vrot.lane.b32.xlu0 %v275_v48, %s975_s24 }
 0x1d0   :  { %v355_v11 = vld [vmem:[#allocation2 + $0x8] sm:$0xff] }
 0x1d1   :  { %282 = vrot.lane.b32.xlu1 %v275_v48, %s976_s25  ;;  %316 = vrot.lane.b32.xlu0 %v276_v54, %s975_s24 }
 0x1d5   :  { %284 = vrot.lane.b32.xlu1 %v276_v54, %s976_s25  ;;  %322 = vrot.lane.b32.xlu0 %v275_v48, %s977_s26 }
 0x1d9   :  { %290 = vrot.lane.b32.xlu1 %v275_v48, %s978_s27  ;;  %324 = vrot.lane.b32.xlu0 %v276_v54, %s977_s26 }
 0x1dd   :  { %292 = vrot.lane.b32.xlu1 %v276_v54, %s978_s27  ;;  %330 = vrot.lane.b32.xlu0 %v275_v48, %s979_s28 }
 0x1e1   :  { %298 = vrot.lane.b32.xlu1 %v275_v48, %s980_s29  ;;  %332 = vrot.lane.b32.xlu0 %v276_v54, %s979_s28 }
 0x1e5   :  { %300 = vrot.lane.b32.xlu1 %v276_v54, %s980_s29  ;;  %616 = vrot.lane.b32.xlu0 %v1081_v21, %s974_s0 }
 0x1e9   :  { %727 = vperm.xlu1 %955, %v721_v56   ;;  %732 = vperm.xlu0 %954, %v722_v57  }
 0x1ed   :  { %737 = vperm.xlu1 %955, %v723_v58   ;;  %742 = vperm.xlu0 %954, %v724_v59  }
 0x237   :  { %v339_v60 = vpop.permute.xlu0 %338 }
 0x238   :  { %344 = vst.msk [vmem:[#allocation2 + $0x80] sm:$0xff] %vm277_vm3, %v339_v60 }
 0x23b   :  { %v341_v61 = vpop.permute.xlu1 %340  ;;  %v307_v62 = vpop.permute.xlu0 %306 }
 0x23c   :  { %345 = vst.msk [vmem:[#allocation2 + $0x88] sm:$0xff] %vm277_vm3, %v341_v61  ;;  %312 = vst.msk [vmem:[#allocation2 + $0x40] sm:$0xff] %vm277_vm3, %v307_v62 }
 0x23f   :  { %v309_v63 = vpop.permute.xlu1 %308  ;;  %v315_v0 = vpop.permute.xlu0 %314  ;;  %v370_v1 = vld [vmem:[#allocation2 + $0x80] sm:$0xff] }
 0x240   :  { %313 = vst.msk [vmem:[#allocation2 + $0x48] sm:$0xff] %vm277_vm3, %v309_v63  ;;  %320 = vst.msk [vmem:[#allocation2 + $0x50] sm:$0xff] %vm277_vm3, %v315_v0  ;;  %891 = vmatprep.subr.bf16.mxu0 %v370_v1 }
 0x241   :  { %892 = vmatpush3.bf16.msra.mxu0 %v370_v1 }
 0x243   :  { %v283_v2 = vpop.permute.xlu1 %282  ;;  %v317_v3 = vpop.permute.xlu0 %316  ;;  %v362_v4 = vld [vmem:[#allocation2 + $0x40] sm:$0xff]  ;;  %v371_v5 = vld [vmem:[#allocation2 + $0x88] sm:$0xff] }
 0x244   :  { %288 = vst.msk [vmem:[#allocation2 + $0x10] sm:$0xff] %vm277_vm3, %v283_v2  ;;  %321 = vst.msk [vmem:[#allocation2 + $0x58] sm:$0xff] %vm277_vm3, %v317_v3  ;;  %816 = vmatprep.subr.bf16.mxu1 %v362_v4  ;;  %893 = vmatprep.subr.bf16.mxu0 %v371_v5 }
 0x245   :  { %817 = vmatpush3.bf16.msra.mxu1 %v354_v6  ;;  %894 = vmatpush3.bf16.msra.mxu0 %v371_v5 }
 0x246   :  { %938 = vmatprep.subr.bf16.mxu0 %v1089_v36 }
 0x247   :  { %v285_v8 = vpop.permute.xlu1 %284  ;;  %v323_v9 = vpop.permute.xlu0 %322  ;;  %v363_v10 = vld [vmem:[#allocation2 + $0x48] sm:$0xff]  ;;  %v364_v13 = vld [vmem:[#allocation2 + $0x50] sm:$0xff] }
 0x248   :  { %289 = vst.msk [vmem:[#allocation2 + $0x18] sm:$0xff] %vm277_vm3, %v285_v8  ;;  %328 = vst.msk [vmem:[#allocation2 + $0x60] sm:$0xff] %vm277_vm3, %v323_v9  ;;  %818 = vmatprep.subr.bf16.mxu1 %v363_v10  ;;  %896 = vmatmul.mubr.msk.bf16.vlgmr.msra.gmra.mrb[4].mxu0 %vm402_vm4, %v957_v7 }
 0x249   :  { %819 = vmatpush3.bf16.msra.mxu1 %v355_v11  ;;  %940 = vmatpush3.bf16.msra.mxu0 %v1089_v36  ;;  %v958_v36 = vld [vmem:[%s1205_s2] ss:$12 sps:$4 sm:$0xff]  }
 0x24a   :  { %820 = vmatprep.subr.bf16.mxu1 %v364_v13  ;;  %942 = vmatprep.subr.bf16.mxu0 %v1093_v39 }
 0x24b   :  { %v291_v14 = vpop.permute.xlu1 %290  ;;  %v325_v15 = vpop.permute.xlu0 %324  ;;  %v356_v16 = vld [vmem:[#allocation2 + $0x10] sm:$0xff]  ;;  %907 = vmatprep.mubr.msk.f32.mxu0 %vm402_vm4, %v507_v12  ;;  %v365_v17 = vld [vmem:[#allocation2 + $0x58] sm:$0xff] }
 0x24c   :  { %296 = vst.msk [vmem:[#allocation2 + $0x20] sm:$0xff] %vm277_vm3, %v291_v14  ;;  %329 = vst.msk [vmem:[#allocation2 + $0x68] sm:$0xff] %vm277_vm3, %v325_v15 }
 0x24d   :  { %821 = vmatpush3.bf16.msra.mxu1 %v356_v16  ;;  %944 = vmatpush3.bf16.msra.mxu0 %v1093_v39 }
 0x24e   :  { %822 = vmatprep.subr.bf16.mxu1 %v365_v17 }
 0x24f   :  { %v293_v20 = vpop.permute.xlu1 %292  ;;  %v331_v21 = vpop.permute.xlu0 %330  ;;  %v357_v22 = vld [vmem:[#allocation2 + $0x18] sm:$0xff]  ;;  %v366_v23 = vld [vmem:[#allocation2 + $0x60] sm:$0xff] }
 0x250   :  { %297 = vst.msk [vmem:[#allocation2 + $0x28] sm:$0xff] %vm277_vm3, %v293_v20  ;;  %336 = vst.msk [vmem:[#allocation2 + $0x70] sm:$0xff] %vm277_vm3, %v331_v21  ;;  %908 = vmatmul.mubr.msk.f32.vlgmr.msra.gmra.mrb[8].mxu0 %vm402_vm4, %v508_v18 }
 0x251   :  { %823 = vmatpush3.bf16.msra.mxu1 %v357_v22  ;;  %910 = vmatprep.mubr.msk.f32.mxu0 %vm402_vm4, %v509_v19 }
 0x252   :  { %824 = vmatprep.subr.bf16.mxu1 %v366_v23 }
 0x253   :  { %v299_v25 = vpop.permute.xlu1 %298  ;;  %v333_v26 = vpop.permute.xlu0 %332  ;;  %v358_v27 = vld [vmem:[#allocation2 + $0x20] sm:$0xff]  ;;  %v367_v28 = vld [vmem:[#allocation2 + $0x68] sm:$0xff] }
 0x254   :  { %304 = vst.msk [vmem:[#allocation2 + $0x30] sm:$0xff] %vm277_vm3, %v299_v25  ;;  %337 = vst.msk [vmem:[#allocation2 + $0x78] sm:$0xff] %vm277_vm3, %v333_v26  ;;  %911 = vmatmul.mubr.msk.f32.gmra.mrb[10].mxu0 %vm402_vm4, %v510_v24 }
 0x255   :  { %825 = vmatpush3.bf16.msra.mxu1 %v358_v27 }
 0x256   :  { %826 = vmatprep.subr.bf16.mxu1 %v367_v28 }
 0x257   :  { %v301_v29 = vpop.permute.xlu1 %300  ;;  %v359_v30 = vld [vmem:[#allocation2 + $0x28] sm:$0xff]  ;;  %v617_v31 = vpop.permute.xlu0 %616  ;;  %v368_v32 = vld [vmem:[#allocation2 + $0x70] sm:$0xff] }
 0x258   :  { %305 = vst.msk [vmem:[#allocation2 + $0x38] sm:$0xff] %vm277_vm3, %v301_v29  ;;  %913 = vmatprep.subr.msk.mxu0 %vm178_vm1, %v617_v31 }
 0x259   :  { %827 = vmatpush3.bf16.msra.mxu1 %v359_v30  ;;  %914 = vmatpush3.msk.msra.mxu0 %vm178_vm1, %v617_v31 }
 0x25a   :  { %828 = vmatprep.subr.bf16.mxu1 %v368_v32 }
 0x25b   :  { %v360_v33 = vld [vmem:[#allocation2 + $0x30] sm:$0xff]  ;;  %v369_v34 = vld [vmem:[#allocation2 + $0x78] sm:$0xff] }
 0x25d   :  { %829 = vmatpush3.bf16.msra.mxu1 %v360_v33 }
 0x25e   :  { %830 = vmatprep.subr.bf16.mxu1 %v369_v34 }
 0x25f   :  { %v361_v35 = vld [vmem:[#allocation2 + $0x38] sm:$0xff] }
 0x261   :  { %831 = vmatpush3.bf16.msra.mxu1 %v361_v35 }
 0x264   :  { %442 = vmatmul.mubr.bf16.vlgmr.msra.gmra.mrb[4].mxu1 %v958_v36 }
 0x265   :  { %449 = vmatprep.mubr.bf16.mxu1 %v961_v37 }
 0x268   :  { %v733_v7 = vpop.permute.xlu0 %732  ;;  %v728_v9 = vpop.permute.xlu1 %727 }
 0x26c   :  { %450 = vmatmul.mubr.bf16.gmra.mrb[8].mxu1 %v963_v38  ;;  %v743_v19 = vpop.permute.xlu0 %742  ;;  %v738_v22 = vpop.permute.xlu1 %737 }
 0x31b   :  { %v897_v39 = vpop.f32.mrb[4].mxu0 }
 0x31c   :  { %v492_v40 = vpop.f32.mrb[5].mxu0 }
 0x31d   :  { %v898_v41 = vpop.f32.mrb[6].mxu0 }
 0x31e   :  { %v495_v42 = vpop.f32.mrb[7].mxu0 }
 0x323   :  { %v909_v43 = vpop.f32.mrb[8].mxu0 }
 0x324   :  { %v599_v44 = vadd.f32 1e-08, %v909_v43  ;;  %v593_v45 = vpop.f32.mrb[9].mxu0 }
 0x325   :  { %v594_v46 = vadd.f32 1e-08, %v593_v45 }
 0x327   :  { %964 = vrsqrt.f32 %v594_v46  ;;  %v912_v47 = vpop.f32.mrb[10].mxu0 }
 0x328   :  { %966 = vrsqrt.f32 %v599_v44  ;;  %v609_v48 = vadd.f32 1e-08, %v912_v47  ;;  %v603_v49 = vpop.f32.mrb[11].mxu0 }
 0x329   :  { %v604_v50 = vadd.f32 1e-08, %v603_v49 }
 0x32b   :  { %968 = vrsqrt.f32 %v604_v50 }
 0x32c   :  { %970 = vrsqrt.f32 %v609_v48 }
 0x331   :  { %v965_v51 = vpop.eup %964 }
 0x332   :  { %v967_v52 = vpop.eup %966  ;;  %915 = vmatprep.mubr.msk.f32.mxu0 %vm165_vm2, %v965_v51 }
 0x333   :  { %916 = vmatmul.mubr.msk.f32.vlgmr.msra.gmra.mrb[12].mxu0 %vm165_vm2, %v967_v52 }
 0x335   :  { %v969_v53 = vpop.eup %968 }
 0x336   :  { %v971_v54 = vpop.eup %970  ;;  %918 = vmatprep.mubr.msk.f32.mxu0 %vm165_vm2, %v969_v53 }
 0x337   :  { %v832_v55 = vpop.f32.mrb[4].mxu1  ;;  %919 = vmatmul.mubr.msk.f32.gmra.mrb[14].mxu0 %vm165_vm2, %v971_v54 }
 0x338   :  { %v833_v56 = vpop.f32.mrb[5].mxu1 }
 0x339   :  { %v834_v57 = vadd.f32 %v833_v56, %v832_v55  ;;  %v835_v58 = vpop.f32.mrb[6].mxu1 }
 0x33a   :  { %v836_v59 = vpop.f32.mrb[7].mxu1 }
 0x33b   :  { %v837_v60 = vadd.f32 %v836_v59, %v835_v58  ;;  %v493_v61 = vadd.f32 %v834_v57, %v492_v40 }
 0x33d   :  { %v496_v62 = vadd.f32 %v837_v60, %v495_v42 }
 0x33f   :  { %v838_v63 = vpop.f32.mrb[8].mxu1 }
 0x340   :  { %v839_v0 = vpop.f32.mrb[9].mxu1 }
 0x341   :  { %v840_v1 = vadd.f32 %v839_v0, %v838_v63  ;;  %v841_v2 = vpop.f32.mrb[10].mxu1 }
 0x342   :  { %v842_v3 = vpop.f32.mrb[11].mxu1 }
 0x343   :  { %v843_v4 = vadd.f32 %v842_v3, %v841_v2  ;;  %v501_v5 = vadd.f32 %v897_v39, %v840_v1 }
 0x345   :  { %v504_v6 = vadd.f32 %v898_v41, %v843_v4 }
 0x406   :  { %v917_v8 = vpop.f32.mrb[12].mxu0 }
 0x407   :  { %v718_v10 = vmul.f32 %v917_v8, %v496_v62  ;;  %v698_v11 = vpop.f32.mrb[13].mxu0 }
 0x408   :  { %v717_v12 = vmul.f32 %v698_v11, %v493_v61 }
 0x409   :  { %v746_v13 = vadd.f32 %v733_v7, %v718_v10 }
 0x40a   :  { %v745_v14 = vadd.f32 %v728_v9, %v717_v12  ;;  %v920_v15 = vpop.f32.mrb[14].mxu0 }
 0x40b   :  { %vm750_vm5 = vcmp.ge.f32.partialorder %v746_v13, 0.0  ;;  %v754_v16 = vmul.f32 0.2, %v746_v13  ;;  %v720_v17 = vmul.f32 %v920_v15, %v504_v6  ;;  %v708_v18 = vpop.f32.mrb[15].mxu0 }
 0x40c   :  { %vm749_vm6 = vcmp.ge.f32.partialorder %v745_v14, 0.0  ;;  %v753_v20 = vmul.f32 0.2, %v745_v14  ;;  %v719_v21 = vmul.f32 %v708_v18, %v501_v5 }
 0x40d   :  { %v758_v23 = vsel %vm750_vm5, %v746_v13, %v754_v16  ;;  %v748_v24 = vadd.f32 %v743_v19, %v720_v17 }
 0x40e   :  { %v762_v25 = vmul.f32 1.4142135, %v758_v23  ;;  %v757_v26 = vsel %vm749_vm6, %v745_v14, %v753_v20  ;;  %v747_v27 = vadd.f32 %v738_v22, %v719_v21 }
 0x40f   :  { %v761_v28 = vmul.f32 1.4142135, %v757_v26  ;;  %vm752_vm7 = vcmp.ge.f32.partialorder %v748_v24, 0.0  ;;  %v756_v29 = vmul.f32 0.2, %v748_v24 }
 0x410   :  { %766 = vst.msk [vmem:[%s1208_s8 + $0x8] sm:$0xff] %vm277_vm3, %v762_v25  ;;  %vm751_vm8 = vcmp.ge.f32.partialorder %v747_v27, 0.0  ;;  %v755_v30 = vmul.f32 0.2, %v747_v27 }
 0x411   :  { %765 = vst.msk [vmem:[%s1208_s8] sm:$0xff] %vm277_vm3, %v761_v28  ;;  %v760_v31 = vsel %vm752_vm7, %v748_v24, %v756_v29 }
 0x412   :  { %v764_v32 = vmul.f32 1.4142135, %v760_v31  ;;  %v759_v33 = vsel %vm751_vm8, %v747_v27, %v755_v30 }
 0x413   :  { %v763_v34 = vmul.f32 1.4142135, %v759_v33 }
 0x414   :  { %768 = vst.msk [vmem:[%s1208_s8 + $0x18] sm:$0xff] %vm277_vm3, %v764_v32 }
 0x415   :  { %767 = vst.msk [vmem:[%s1208_s8 + $0x10] sm:$0xff] %vm277_vm3, %v763_v34 }

// kernel: _lambda_.12
= control target key start
LH: loop header
LB: loop body
LE: loop exit
PB: predicated region body
PF: predicated region fallthrough
CT: control target
= control target key end

     0   :  { %vm66_vm0 = vcmask 523264   ;;  %v953_v3 = vmov 0   ;;  %vm187_vm1 = vcmask 1041408   ;;  %v954_v23 = vmov 0.0   ;;  %s955_s21 = smov 106   ;;  %s956_s30 = smov 127   ;;  %s1185_s5 = inlined_call_operand.vmem [shape: f32[64,2], index: 5, kind: input, shape index: {}]   ;;  %s1186_s3 = inlined_call_operand.vmem [shape: f32[32,64], index: 3, kind: input, shape index: {}]   ;;  %s1187_s4 = inlined_call_operand.vmem [shape: f32[32,1], index: 4, kind: input, shape index: {}]   ;;  %s1188_s1 = inlined_call_operand.vmem [shape: f32[2,222], index: 1, kind: input, shape index: {}]   ;;  %s1189_s0 = inlined_call_operand.vmem [shape: f32[32,222], index: 0, kind: input, shape index: {}]   ;;  %s1190_s2 = inlined_call_operand.vmem [shape: bf16[16,288], index: 2, kind: input, shape index: {}]   ;;  %s1191_s6 = inlined_call_operand.vmem [shape: f32[16,1], index: 6, kind: input, shape index: {}]   ;;  %s1192_s7 = inlined_call_operand.vmem [shape: f32[16,32], index: 7, kind: input, shape index: {}]   ;;  %s1193_s8 = inlined_call_operand.vmem [shape: f32[16,200], index: 8, kind: output, shape index: {}]  }
   0x1   :  { %v34_v0 = vld [vmem:[%s1185_s5] sm:$0xff]  ;;  %v35_v1 = vld [vmem:[%s1185_s5 + $0x8] sm:$0xff]  ;;  %v36_v2 = vld [vmem:[%s1185_s5 + $0x10] sm:$0xff]  ;;  %943 = vset.pattern.permute.xlu0 %v953_v3  ;;  %944 = vset.pattern.permute.xlu1 %v953_v3  ;;  %vm174_vm2 = vcmask 15360   ;;  %vm302_vm3 = vcmask 588800   ;;  %s958_s9 = smov 118  }
   0x2   :  { %v905_v4 = vpack.c.bf16 %v35_v1, %v34_v0  ;;  %v37_v5 = vld [vmem:[%s1185_s5 + $0x18] sm:$0xff]  ;;  %v38_v7 = vld [vmem:[%s1185_s5 + $0x20] sm:$0xff]  ;;  %v39_v8 = vld [vmem:[%s1185_s5 + $0x28] sm:$0xff]  ;;  %s959_s10 = smov 117   ;;  %s961_s11 = smov 108   ;;  %vm451_vm4 = vcmask 867328  }
   0x3   :  { %v909_v6 = vpack.c.bf16 %v37_v5, %v36_v2  ;;  %v30_v9 = vld [vmem:[%s1186_s3] sm:$0xff]  ;;  %v44_v11 = vld [vmem:[%s1187_s4 + $0x10] sm:$0xff]  ;;  %v913_v12 = vpack.c.bf16 %v39_v8, %v38_v7  ;;  %v41_v14 = vld [vmem:[%s1185_s5 + $0x38] sm:$0xff]  ;;  %vm318_vm5 = vcmask 1039360   ;;  %vm337_vm6 = vcmask 1031168  }
   0x4   :  { %906 = vmatprep.subr.bf16.mxu0 %v905_v4  ;;  %888 = vmatprep.mubr.msk.f32.mxu0 %vm66_vm0, %v30_v9  ;;  %v42_v10 = vld [vmem:[%s1187_s4] sm:$0xff]  ;;  %v40_v13 = vld [vmem:[%s1185_s5 + $0x30] sm:$0xff]  ;;  %v43_v15 = vld [vmem:[%s1187_s4 + $0x8] sm:$0xff]  ;;  %s960_s5 = smov 116   ;;  %vm517_vm7 = vcmask 261120   ;;  %vm356_vm8 = vcmask 965632  }
   0x5   :  { %908 = vmatpush3.bf16.msra.mxu0 %v905_v4  ;;  %48 = vperm.xlu0 %943, %v42_v10   ;;  %v45_v16 = vld [vmem:[%s1187_s4 + $0x18] sm:$0xff]  ;;  %v917_v17 = vpack.c.bf16 %v41_v14, %v40_v13  ;;  %v31_v18 = vld [vmem:[%s1186_s3 + $0x8] sm:$0xff]  ;;  %v32_v19 = vld [vmem:[%s1186_s3 + $0x10] sm:$0xff]  ;;  %s962_s4 = smov 107   ;;  %vm375_vm9 = vcmask 957440   ;;  %vm394_vm10 = vcmask 949248  }
   0x6   :  { %910 = vmatprep.subr.bf16.mxu0 %v909_v6  ;;  %58 = vperm.xlu1 %944, %v44_v11   ;;  %v33_v20 = vld [vmem:[%s1186_s3 + $0x18] sm:$0xff]  ;;  %v1065_v21 = vld.sshfl [vmem:[%s1188_s1] sm:$0x33 pattern:$0x76325410]  ;;  %v283_v45 = vld [vmem:[%s1189_s0 + $0x10] sm:$0xff] }
   0x7   :  { %v1069_v22 = vcombine.high %v1065_v21, %v1065_v21  ;;  %v281_v44 = vld [vmem:[%s1189_s0] sm:$0xff]  ;;  %v282_v46 = vld [vmem:[%s1189_s0 + $0x8] sm:$0xff]  ;;  %v284_v47 = vld [vmem:[%s1189_s0 + $0x18] sm:$0xff]  ;;  %vm413_vm11 = vcmask 883712   ;;  %vm432_vm12 = vcmask 875520  }
   0x8   :  { %v285_v58 = vld [vmem:[%s1189_s0 + $0x20] sm:$0xff]  ;;  %v287_v59 = vld [vmem:[%s1189_s0 + $0x30] sm:$0xff]  ;;  %v286_v60 = vld [vmem:[%s1189_s0 + $0x28] sm:$0xff] }
   0x9   :  { %912 = vmatpush3.bf16.msra.mxu0 %v909_v6  ;;  %53 = vperm.xlu0 %943, %v43_v15   ;;  %v288_v61 = vld [vmem:[%s1189_s0 + $0x38] sm:$0xff]  ;;  %s957_s0 = smov 126   ;;  %v948_v8 = vld [vmem:[%s1190_s2 + $0x4] ss:$12 sps:$4 sm:$0xff]   ;;  %v794_v10 = vld [vmem:[%s1191_s6 + $0x8] sm:$0xff] }
   0xa   :  { %914 = vmatprep.subr.bf16.mxu0 %v913_v12  ;;  %63 = vperm.xlu1 %944, %v45_v16   ;;  %v793_v9 = vld [vmem:[%s1191_s6] sm:$0xff] }
   0xb   :  { %553 = vmatprep.mubr.bf16.mxu1 %v948_v8 }
   0xd   :  { %916 = vmatpush3.bf16.msra.mxu0 %v913_v12 }
   0xe   :  { %918 = vmatprep.subr.bf16.mxu0 %v917_v17 }
  0x11   :  { %920 = vmatpush3.bf16.msra.mxu0 %v917_v17 }
  0x12   :  { %838 = vmatprep.subr.msk.mxu0 %vm187_vm1, %v1069_v22 }
  0x14   :  { %889 = vmatmul.mubr.msk.f32.vlgmr.msra.gmra.mrb[0].mxu0 %vm66_vm0, %v31_v18 }
  0x15   :  { %891 = vmatprep.mubr.msk.f32.mxu0 %vm66_vm0, %v32_v19  ;;  %839 = vmatpush1.msk.msra.mxu0 %vm187_vm1, %v1065_v21 }
  0x18   :  { %892 = vmatmul.mubr.msk.f32.gmra.mrb[2].mxu0 %vm66_vm0, %v33_v20 }
  0x19   :  { %256 = vmatprep.mubr.f32.mxu0 %v954_v23 }
  0x84   :  { %v49_v24 = vpop.permute.xlu0 %48 }
  0x85   :  { %v59_v25 = vpop.permute.xlu1 %58 }
  0x88   :  { %v54_v26 = vpop.permute.xlu0 %53 }
  0x89   :  { %v64_v31 = vpop.permute.xlu1 %63 }
  0xe7   :  { %v890_v27 = vpop.f32.mrb[0].mxu0 }
  0xe8   :  { %v151_v28 = vadd.f32 %v890_v27, %v54_v26  ;;  %v145_v29 = vpop.f32.mrb[1].mxu0  ;;  %v945_v26 = vld [vmem:[%s1190_s2 + $0x8] ss:$12 sps:$4 sm:$0xff]  }
  0xe9   :  { %v146_v30 = vadd.f32 %v145_v29, %v49_v24 }
  0xea   :  { %v610_v32 = vmul.f32 %v151_v28, %v151_v28 }
  0xeb   :  { %v609_v33 = vmul.f32 %v146_v30, %v146_v30  ;;  %840 = vmatmul.mubr.msk.f32.vlgmr.msra.gmra.mrb[4].mxu0 %vm174_vm2, %v146_v30  ;;  %v893_v34 = vpop.f32.mrb[2].mxu0  ;;  %v607_v30 = vld [vmem:[%s1192_s7] sm:$0xff] }
  0xec   :  { %262 = vmatprep.mubr.f32.mxu0 %v954_v23  ;;  %v161_v35 = vadd.f32 %v893_v34, %v64_v31  ;;  %v155_v36 = vpop.f32.mrb[3].mxu0 }
  0xed   :  { %v156_v37 = vadd.f32 %v155_v36, %v59_v25  ;;  %v1078_v38 = vpack.c.bf16 %v610_v32, %v609_v33  ;;  %v608_v36 = vld [vmem:[%s1192_s7 + $0x8] sm:$0xff] }
  0xee   :  { %v612_v39 = vmul.f32 %v161_v35, %v161_v35 }
  0xef   :  { %v611_v40 = vmul.f32 %v156_v37, %v156_v37  ;;  %841 = vmatmul.mubr.msk.f32.gmra.mrb[6].mxu0 %vm174_vm2, %v151_v28 }
  0xf0   :  { %268 = vmatprep.mubr.f32.mxu0 %v954_v23 }
  0xf1   :  { %v1082_v41 = vpack.c.bf16 %v612_v39, %v611_v40 }
  0xf3   :  { %842 = vmatmul.mubr.msk.f32.gmra.mrb[8].mxu0 %vm174_vm2, %v156_v37 }
  0xf4   :  { %274 = vmatprep.mubr.f32.mxu0 %v954_v23 }
  0xf7   :  { %843 = vmatmul.mubr.msk.f32.gmra.mrb[10].mxu0 %vm174_vm2, %v161_v35 }
  0xf8   :  { %596 = vmatprep.mubr.bf16.mxu0 %v953_v3 }
 0x1be   :  { %v258_v42 = vpop.f32.mrb[4].mxu0 }
 0x1bf   :  { %v260_v43 = vpop.f32.mrb[5].mxu0  ;;  %v289_v49 = vmul.f32 %v281_v44, %v258_v42 }
 0x1c0   :  { %v290_v52 = vmul.f32 %v282_v46, %v260_v43 }
 0x1c2   :  { %v264_v48 = vpop.f32.mrb[6].mxu0 }
 0x1c3   :  { %v291_v50 = vmul.f32 %v283_v45, %v264_v48  ;;  %v266_v51 = vpop.f32.mrb[7].mxu0 }
 0x1c4   :  { %v292_v53 = vmul.f32 %v284_v47, %v266_v51 }
 0x1c5   :  { %v297_v54 = vpack.c.bf16 %v291_v50, %v289_v49 }
 0x1c6   :  { %v298_v55 = vpack.c.bf16 %v292_v53, %v290_v52  ;;  %v270_v56 = vpop.f32.mrb[8].mxu0 }
 0x1c7   :  { %v272_v57 = vpop.f32.mrb[9].mxu0  ;;  %443 = vrot.lane.b32.xlu0 %v297_v54, %s955_s21  ;;  %v293_v63 = vmul.f32 %v285_v58, %v270_v56 }
 0x1c8   :  { %445 = vrot.lane.b32.xlu1 %v298_v55, %s955_s21  ;;  %303 = vst.msk [vmem:[#allocation2 + $0x8] sm:$0xff] %vm302_vm3, %v298_v55  ;;  %v294_v2 = vmul.f32 %v286_v60, %v272_v57 }
 0x1ca   :  { %v276_v62 = vpop.f32.mrb[10].mxu0 }
 0x1cb   :  { %v295_v0 = vmul.f32 %v287_v59, %v276_v62  ;;  %v278_v1 = vpop.f32.mrb[11].mxu0 }
 0x1cc   :  { %v296_v3 = vmul.f32 %v288_v61, %v278_v1 }
 0x1cd   :  { %v299_v4 = vpack.c.bf16 %v295_v0, %v293_v63 }
 0x1ce   :  { %v300_v5 = vpack.c.bf16 %v296_v3, %v294_v2 }
 0x1cf   :  { %447 = vrot.lane.b32.xlu0 %v299_v4, %s955_s21  ;;  %v467_v6 = vld [vmem:[#allocation2 + $0x8] sm:$0xff] }
 0x1d0   :  { %449 = vrot.lane.b32.xlu1 %v300_v5, %s955_s21  ;;  %521 = vmatprep.subr.bf16.mxu1 %v467_v6  ;;  %305 = vst.msk [vmem:[#allocation2 + $0x18] sm:$0xff] %vm302_vm3, %v300_v5 }
 0x1d1   :  { %522 = vmatpush1.bf16.msra.mxu1 %v297_v54 }
 0x1d3   :  { %310 = vrot.lane.b32.xlu0 %v297_v54, %s956_s30 }
 0x1d4   :  { %312 = vrot.lane.b32.xlu1 %v298_v55, %s956_s30 }
 0x1d7   :  { %314 = vrot.lane.b32.xlu0 %v299_v4, %s956_s30  ;;  %v469_v7 = vld [vmem:[#allocation2 + $0x18] sm:$0xff] }
 0x1d8   :  { %316 = vrot.lane.b32.xlu1 %v300_v5, %s956_s30  ;;  %523 = vmatprep.subr.bf16.mxu1 %v469_v7 }
 0x1d9   :  { %524 = vmatpush1.bf16.msra.mxu1 %v299_v4 }
 0x1db   :  { %329 = vrot.lane.b32.xlu0 %v297_v54, %s957_s0 }
 0x1dc   :  { %331 = vrot.lane.b32.xlu1 %v298_v55, %s957_s0 }
 0x1df   :  { %333 = vrot.lane.b32.xlu0 %v299_v4, %s957_s0 }
 0x1e0   :  { %335 = vrot.lane.b32.xlu1 %v300_v5, %s957_s0 }
 0x1e3   :  { %348 = vrot.lane.b32.xlu0 %v297_v54, %s958_s9 }
 0x1e4   :  { %350 = vrot.lane.b32.xlu1 %v298_v55, %s958_s9 }
 0x1e7   :  { %352 = vrot.lane.b32.xlu0 %v299_v4, %s958_s9 }
 0x1e8   :  { %354 = vrot.lane.b32.xlu1 %v300_v5, %s958_s9 }
 0x1eb   :  { %367 = vrot.lane.b32.xlu0 %v297_v54, %s959_s10 }
 0x1ec   :  { %369 = vrot.lane.b32.xlu1 %v298_v55, %s959_s10 }
 0x1ef   :  { %371 = vrot.lane.b32.xlu0 %v299_v4, %s959_s10 }
 0x1f0   :  { %373 = vrot.lane.b32.xlu1 %v300_v5, %s959_s10 }
 0x1f3   :  { %386 = vrot.lane.b32.xlu0 %v297_v54, %s960_s5 }
 0x1f4   :  { %388 = vrot.lane.b32.xlu1 %v298_v55, %s960_s5 }
 0x1f7   :  { %390 = vrot.lane.b32.xlu0 %v299_v4, %s960_s5 }
 0x1f8   :  { %392 = vrot.lane.b32.xlu1 %v300_v5, %s960_s5 }
 0x1fb   :  { %405 = vrot.lane.b32.xlu0 %v297_v54, %s961_s11 }
 0x1fc   :  { %407 = vrot.lane.b32.xlu1 %v298_v55, %s961_s11 }
 0x1ff   :  { %409 = vrot.lane.b32.xlu0 %v299_v4, %s961_s11 }
 0x200   :  { %411 = vrot.lane.b32.xlu1 %v300_v5, %s961_s11 }
 0x203   :  { %424 = vrot.lane.b32.xlu0 %v297_v54, %s962_s4 }
 0x204   :  { %426 = vrot.lane.b32.xlu1 %v298_v55, %s962_s4 }
 0x207   :  { %428 = vrot.lane.b32.xlu0 %v299_v4, %s962_s4 }
 0x208   :  { %430 = vrot.lane.b32.xlu1 %v300_v5, %s962_s4 }
 0x20b   :  { %696 = vrot.lane.b32.xlu0 %v1065_v21, %s959_s10 }
 0x20c   :  { %698 = vrot.lane.b32.xlu1 %v1069_v22, %s959_s10 }
 0x20f   :  { %797 = vperm.xlu0 %943, %v793_v9  }
 0x210   :  { %802 = vperm.xlu1 %944, %v794_v10  }
 0x239   :  { %v444_v11 = vpop.permute.xlu0 %443 }
 0x23a   :  { %v446_v12 = vpop.permute.xlu1 %445 }
 0x23b   :  { %v452_v13 = vsel %vm451_vm4, %v444_v11, %v446_v12  ;;  %459 = vst.msk [vmem:[#allocation2 + $0x108] sm:$0xff] %vm302_vm3, %v446_v12 }
 0x241   :  { %v448_v14 = vpop.permute.xlu0 %447 }
 0x242   :  { %v450_v15 = vpop.permute.xlu1 %449  ;;  %v499_v16 = vld [vmem:[#allocation2 + $0x108] sm:$0xff] }
 0x243   :  { %v453_v17 = vsel %vm451_vm4, %v448_v14, %v450_v15  ;;  %461 = vst.msk [vmem:[#allocation2 + $0x118] sm:$0xff] %vm302_vm3, %v450_v15  ;;  %564 = vmatprep.subr.bf16.mxu0 %v499_v16 }
 0x244   :  { %565 = vmatpush1.bf16.msra.mxu0 %v452_v13 }
 0x245   :  { %v311_v18 = vpop.permute.xlu0 %310 }
 0x246   :  { %v313_v19 = vpop.permute.xlu1 %312 }
 0x247   :  { %v319_v20 = vsel %vm318_vm5, %v311_v18, %v313_v19  ;;  %326 = vst.msk [vmem:[#allocation2 + $0x28] sm:$0xff] %vm302_vm3, %v313_v19  ;;  %v946_v18 = vld [vmem:[%s1190_s2] ss:$12 sps:$4 sm:$0xff]  }
 0x249   :  { %v315_v21 = vpop.permute.xlu0 %314 }
 0x24a   :  { %v317_v22 = vpop.permute.xlu1 %316  ;;  %v501_v24 = vld [vmem:[#allocation2 + $0x118] sm:$0xff] }
 0x24b   :  { %v320_v25 = vsel %vm318_vm5, %v315_v21, %v317_v22  ;;  %328 = vst.msk [vmem:[#allocation2 + $0x38] sm:$0xff] %vm302_vm3, %v317_v22  ;;  %566 = vmatprep.subr.bf16.mxu0 %v501_v24 }
 0x24c   :  { %567 = vmatpush1.bf16.msra.mxu0 %v453_v17 }
 0x24d   :  { %922 = vmatprep.subr.bf16.mxu0 %v1078_v38  ;;  %v330_v27 = vpop.permute.xlu0 %329 }
 0x24e   :  { %v332_v28 = vpop.permute.xlu1 %331  ;;  %v471_v29 = vld [vmem:[#allocation2 + $0x28] sm:$0xff] }
 0x24f   :  { %v338_v31 = vsel %vm337_vm6, %v330_v27, %v332_v28  ;;  %345 = vst.msk [vmem:[#allocation2 + $0x48] sm:$0xff] %vm302_vm3, %v332_v28  ;;  %525 = vmatprep.subr.bf16.mxu1 %v471_v29  ;;  %847 = vmatmul.mubr.msk.bf16.vlgmr.msra.gmra.mrb[12].mxu0 %vm517_vm7, %v945_v26 }
 0x250   :  { %526 = vmatpush1.bf16.msra.mxu1 %v319_v20  ;;  %924 = vmatpush3.bf16.msra.mxu0 %v1078_v38 }
 0x251   :  { %926 = vmatprep.subr.bf16.mxu0 %v1082_v41  ;;  %v334_v32 = vpop.permute.xlu0 %333  ;;  %902 = vmatprep.mubr.msk.f32.mxu0 %vm517_vm7, %v607_v30 }
 0x252   :  { %v336_v33 = vpop.permute.xlu1 %335  ;;  %v473_v34 = vld [vmem:[#allocation2 + $0x38] sm:$0xff] }
 0x253   :  { %v339_v35 = vsel %vm337_vm6, %v334_v32, %v336_v33  ;;  %347 = vst.msk [vmem:[#allocation2 + $0x58] sm:$0xff] %vm302_vm3, %v336_v33  ;;  %527 = vmatprep.subr.bf16.mxu1 %v473_v34 }
 0x254   :  { %528 = vmatpush1.bf16.msra.mxu1 %v320_v25  ;;  %928 = vmatpush3.bf16.msra.mxu0 %v1082_v41 }
 0x255   :  { %v349_v37 = vpop.permute.xlu0 %348 }
 0x256   :  { %v351_v38 = vpop.permute.xlu1 %350  ;;  %v475_v39 = vld [vmem:[#allocation2 + $0x48] sm:$0xff] }
 0x257   :  { %v357_v40 = vsel %vm356_vm8, %v349_v37, %v351_v38  ;;  %364 = vst.msk [vmem:[#allocation2 + $0x68] sm:$0xff] %vm302_vm3, %v351_v38  ;;  %529 = vmatprep.subr.bf16.mxu1 %v475_v39  ;;  %903 = vmatmul.mubr.msk.f32.vlgmr.msra.gmra.mrb[16].mxu0 %vm517_vm7, %v608_v36 }
 0x258   :  { %530 = vmatpush1.bf16.msra.mxu1 %v338_v31  ;;  %776 = vmatprep.mubr.f32.mxu0 %v954_v23 }
 0x259   :  { %v353_v42 = vpop.permute.xlu0 %352 }
 0x25a   :  { %v355_v43 = vpop.permute.xlu1 %354  ;;  %v477_v41 = vld [vmem:[#allocation2 + $0x58] sm:$0xff] }
 0x25b   :  { %v358_v44 = vsel %vm356_vm8, %v353_v42, %v355_v43  ;;  %366 = vst.msk [vmem:[#allocation2 + $0x78] sm:$0xff] %vm302_vm3, %v355_v43  ;;  %531 = vmatprep.subr.bf16.mxu1 %v477_v41 }
 0x25c   :  { %532 = vmatpush1.bf16.msra.mxu1 %v339_v35 }
 0x25d   :  { %v368_v45 = vpop.permute.xlu0 %367 }
 0x25e   :  { %v370_v46 = vpop.permute.xlu1 %369  ;;  %v479_v47 = vld [vmem:[#allocation2 + $0x68] sm:$0xff] }
 0x25f   :  { %v376_v48 = vsel %vm375_vm9, %v368_v45, %v370_v46  ;;  %383 = vst.msk [vmem:[#allocation2 + $0x88] sm:$0xff] %vm302_vm3, %v370_v46  ;;  %533 = vmatprep.subr.bf16.mxu1 %v479_v47 }
 0x260   :  { %534 = vmatpush1.bf16.msra.mxu1 %v357_v40 }
 0x261   :  { %v372_v49 = vpop.permute.xlu0 %371 }
 0x262   :  { %v374_v50 = vpop.permute.xlu1 %373  ;;  %v481_v51 = vld [vmem:[#allocation2 + $0x78] sm:$0xff] }
 0x263   :  { %v377_v52 = vsel %vm375_vm9, %v372_v49, %v374_v50  ;;  %385 = vst.msk [vmem:[#allocation2 + $0x98] sm:$0xff] %vm302_vm3, %v374_v50  ;;  %535 = vmatprep.subr.bf16.mxu1 %v481_v51 }
 0x264   :  { %536 = vmatpush1.bf16.msra.mxu1 %v358_v44 }
 0x265   :  { %v387_v53 = vpop.permute.xlu0 %386 }
 0x266   :  { %v389_v54 = vpop.permute.xlu1 %388  ;;  %v483_v55 = vld [vmem:[#allocation2 + $0x88] sm:$0xff] }
 0x267   :  { %v395_v56 = vsel %vm394_vm10, %v387_v53, %v389_v54  ;;  %402 = vst.msk [vmem:[#allocation2 + $0xa8] sm:$0xff] %vm302_vm3, %v389_v54  ;;  %537 = vmatprep.subr.bf16.mxu1 %v483_v55 }
 0x268   :  { %538 = vmatpush1.bf16.msra.mxu1 %v376_v48 }
 0x269   :  { %v391_v57 = vpop.permute.xlu0 %390 }
 0x26a   :  { %v393_v58 = vpop.permute.xlu1 %392  ;;  %v485_v59 = vld [vmem:[#allocation2 + $0x98] sm:$0xff] }
 0x26b   :  { %v396_v60 = vsel %vm394_vm10, %v391_v57, %v393_v58  ;;  %404 = vst.msk [vmem:[#allocation2 + $0xb8] sm:$0xff] %vm302_vm3, %v393_v58  ;;  %539 = vmatprep.subr.bf16.mxu1 %v485_v59 }
 0x26c   :  { %540 = vmatpush1.bf16.msra.mxu1 %v377_v52 }
 0x26d   :  { %v406_v61 = vpop.permute.xlu0 %405 }
 0x26e   :  { %v408_v62 = vpop.permute.xlu1 %407  ;;  %v487_v63 = vld [vmem:[#allocation2 + $0xa8] sm:$0xff] }
 0x26f   :  { %v414_v0 = vsel %vm413_vm11, %v406_v61, %v408_v62  ;;  %421 = vst.msk [vmem:[#allocation2 + $0xc8] sm:$0xff] %vm302_vm3, %v408_v62  ;;  %541 = vmatprep.subr.bf16.mxu1 %v487_v63 }
 0x270   :  { %542 = vmatpush1.bf16.msra.mxu1 %v395_v56 }
 0x271   :  { %v410_v1 = vpop.permute.xlu0 %409 }
 0x272   :  { %v412_v2 = vpop.permute.xlu1 %411  ;;  %v489_v3 = vld [vmem:[#allocation2 + $0xb8] sm:$0xff] }
 0x273   :  { %v415_v4 = vsel %vm413_vm11, %v410_v1, %v412_v2  ;;  %423 = vst.msk [vmem:[#allocation2 + $0xd8] sm:$0xff] %vm302_vm3, %v412_v2  ;;  %543 = vmatprep.subr.bf16.mxu1 %v489_v3 }
 0x274   :  { %544 = vmatpush1.bf16.msra.mxu1 %v396_v60 }
 0x275   :  { %v425_v5 = vpop.permute.xlu0 %424 }
 0x276   :  { %v427_v6 = vpop.permute.xlu1 %426  ;;  %v491_v7 = vld [vmem:[#allocation2 + $0xc8] sm:$0xff] }
 0x277   :  { %v433_v8 = vsel %vm432_vm12, %v425_v5, %v427_v6  ;;  %440 = vst.msk [vmem:[#allocation2 + $0xe8] sm:$0xff] %vm302_vm3, %v427_v6  ;;  %545 = vmatprep.subr.bf16.mxu1 %v491_v7 }
 0x278   :  { %546 = vmatpush1.bf16.msra.mxu1 %v414_v0 }
 0x279   :  { %v429_v9 = vpop.permute.xlu0 %428 }
 0x27a   :  { %v431_v10 = vpop.permute.xlu1 %430  ;;  %v493_v11 = vld [vmem:[#allocation2 + $0xd8] sm:$0xff] }
 0x27b   :  { %v434_v12 = vsel %vm432_vm12, %v429_v9, %v431_v10  ;;  %442 = vst.msk [vmem:[#allocation2 + $0xf8] sm:$0xff] %vm302_vm3, %v431_v10  ;;  %547 = vmatprep.subr.bf16.mxu1 %v493_v11 }
 0x27c   :  { %548 = vmatpush1.bf16.msra.mxu1 %v415_v4 }
 0x27d   :  { %v697_v14 = vpop.permute.xlu0 %696 }
 0x27e   :  { %v495_v13 = vld [vmem:[#allocation2 + $0xe8] sm:$0xff]  ;;  %v699_v15 = vpop.permute.xlu1 %698 }
 0x27f   :  { %549 = vmatprep.subr.bf16.mxu1 %v495_v13  ;;  %v701_v16 = vsel %vm375_vm9, %v697_v14, %v699_v15  ;;  %850 = vmatprep.subr.msk.mxu0 %vm187_vm1, %v699_v15 }
 0x280   :  { %550 = vmatpush1.bf16.msra.mxu1 %v433_v8  ;;  %851 = vmatpush1.msk.msra.mxu0 %vm187_vm1, %v701_v16 }
 0x282   :  { %v497_v17 = vld [vmem:[#allocation2 + $0xf8] sm:$0xff] }
 0x283   :  { %551 = vmatprep.subr.bf16.mxu1 %v497_v17 }
 0x284   :  { %552 = vmatpush1.bf16.msra.mxu1 %v434_v12 }
 0x287   :  { %554 = vmatmul.mubr.bf16.vlgmr.msra.gmra.mrb[0].mxu1 %v946_v18 }
 0x28e   :  { %v798_v42 = vpop.permute.xlu0 %797 }
 0x28f   :  { %v803_v48 = vpop.permute.xlu1 %802 }
 0x322   :  { %v598_v19 = vpop.f32.mrb[12].mxu0 }
 0x323   :  { %v600_v20 = vpop.f32.mrb[13].mxu0 }
 0x324   :  { %v602_v21 = vpop.f32.mrb[14].mxu0 }
 0x325   :  { %v604_v22 = vpop.f32.mrb[15].mxu0 }
 0x32a   :  { %v904_v24 = vpop.f32.mrb[16].mxu0 }
 0x32b   :  { %v685_v25 = vpop.f32.mrb[17].mxu0  ;;  %v691_v27 = vadd.f32 1e-08, %v904_v24 }
 0x32c   :  { %v686_v26 = vadd.f32 1e-08, %v685_v25 }
 0x32e   :  { %949 = vrsqrt.f32 %v686_v26 }
 0x32f   :  { %951 = vrsqrt.f32 %v691_v27 }
 0x338   :  { %v950_v28 = vpop.eup %949 }
 0x339   :  { %852 = vmatmul.mubr.msk.f32.vlgmr.msra.gmra.mrb[18].mxu0 %vm174_vm2, %v950_v28  ;;  %v952_v29 = vpop.eup %951 }
 0x33a   :  { %782 = vmatprep.mubr.f32.mxu0 %v954_v23 }
 0x33d   :  { %853 = vmatmul.mubr.msk.f32.gmra.mrb[20].mxu0 %vm174_vm2, %v952_v29 }
 0x35a   :  { %v555_v30 = vpop.f32.mrb[0].mxu1 }
 0x35b   :  { %v599_v31 = vadd.f32 %v598_v19, %v555_v30  ;;  %v557_v32 = vpop.f32.mrb[1].mxu1 }
 0x35c   :  { %v601_v33 = vadd.f32 %v600_v20, %v557_v32  ;;  %v559_v34 = vpop.f32.mrb[2].mxu1 }
 0x35d   :  { %v603_v35 = vadd.f32 %v602_v21, %v559_v34  ;;  %v561_v36 = vpop.f32.mrb[3].mxu1 }
 0x35e   :  { %v605_v37 = vadd.f32 %v604_v22, %v561_v36 }
 0x40c   :  { %v778_v38 = vpop.f32.mrb[18].mxu0 }
 0x40d   :  { %v789_v39 = vmul.f32 %v778_v38, %v599_v31  ;;  %v780_v40 = vpop.f32.mrb[19].mxu0 }
 0x40e   :  { %v790_v43 = vmul.f32 %v780_v40, %v601_v33 }
 0x40f   :  { %v805_v41 = vadd.f32 %v798_v42, %v789_v39 }
 0x410   :  { %v806_v44 = vadd.f32 %v798_v42, %v790_v43  ;;  %v784_v45 = vpop.f32.mrb[20].mxu0 }
 0x411   :  { %vm809_vm13 = vcmp.ge.f32.partialorder %v805_v41, 0.0  ;;  %v813_v23 = vmul.f32 0.2, %v805_v41  ;;  %v791_v46 = vmul.f32 %v784_v45, %v603_v35  ;;  %v786_v47 = vpop.f32.mrb[21].mxu0 }
 0x412   :  { %vm810_vm14 = vcmp.ge.f32.partialorder %v806_v44, 0.0  ;;  %v814_v49 = vmul.f32 0.2, %v806_v44  ;;  %v792_v50 = vmul.f32 %v786_v47, %v605_v37 }
 0x413   :  { %v817_v51 = vsel %vm809_vm13, %v805_v41, %v813_v23  ;;  %v807_v52 = vadd.f32 %v803_v48, %v791_v46 }
 0x414   :  { %v821_v53 = vmul.f32 1.4142135, %v817_v51  ;;  %v818_v54 = vsel %vm810_vm14, %v806_v44, %v814_v49  ;;  %v808_v55 = vadd.f32 %v803_v48, %v792_v50 }
 0x415   :  { %v822_v56 = vmul.f32 1.4142135, %v818_v54  ;;  %vm811_vm15 = vcmp.ge.f32.partialorder %v807_v52, 0.0  ;;  %v815_v57 = vmul.f32 0.2, %v807_v52 }
 0x416   :  { %825 = vst [vmem:[%s1193_s8] sm:$0xff] %v821_v53  ;;  %vm812_vm0 = vcmp.ge.f32.partialorder %v808_v55, 0.0  ;;  %v816_v58 = vmul.f32 0.2, %v808_v55 }
 0x417   :  { %826 = vst.msk [vmem:[%s1193_s8 + $0x8] sm:$0xff] %vm302_vm3, %v822_v56  ;;  %v819_v59 = vsel %vm811_vm15, %v807_v52, %v815_v57 }
 0x418   :  { %v823_v60 = vmul.f32 1.4142135, %v819_v59  ;;  %v820_v61 = vsel %vm812_vm0, %v808_v55, %v816_v58 }
 0x419   :  { %v824_v62 = vmul.f32 1.4142135, %v820_v61 }
 0x41a   :  { %827 = vst [vmem:[%s1193_s8 + $0x10] sm:$0xff] %v823_v60 }
 0x41b   :  { %828 = vst.msk [vmem:[%s1193_s8 + $0x18] sm:$0xff] %vm302_vm3, %v824_v62 }

// kernel: _lambda_.11
= control target key start
LH: loop header
LB: loop body
LE: loop exit
PB: predicated region body
PF: predicated region fallthrough
CT: control target
= control target key end

     0   :  { %vm63_vm0 = vcmask 523264   ;;  %v420_v3 = vmov 0   ;;  %vm175_vm1 = vcmask 1041408   ;;  %vm162_vm2 = vcmask 15360   ;;  %s539_s5 = inlined_call_operand.vmem [shape: f32[64,2], index: 5, kind: input, shape index: {}]   ;;  %s540_s3 = inlined_call_operand.vmem [shape: f32[32,64], index: 3, kind: input, shape index: {}]   ;;  %s541_s4 = inlined_call_operand.vmem [shape: f32[32,1], index: 4, kind: input, shape index: {}]   ;;  %s542_s6 = inlined_call_operand.vmem [shape: f32[3,1], index: 6, kind: input, shape index: {}]   ;;  %s543_s1 = inlined_call_operand.vmem [shape: f32[2,32], index: 1, kind: input, shape index: {}]   ;;  %s544_s0 = inlined_call_operand.vmem [shape: f32[32,32], index: 0, kind: input, shape index: {}]   ;;  %s545_s2 = inlined_call_operand.vmem [shape: bf16[3,32], index: 2, kind: input, shape index: {}]   ;;  %s546_s7 = inlined_call_operand.vmem [shape: f32[3,32], index: 7, kind: output, shape index: {}]  }
   0x1   :  { %v31_v0 = vld [vmem:[%s539_s5] sm:$0xff]  ;;  %v32_v1 = vld [vmem:[%s539_s5 + $0x8] sm:$0xff]  ;;  %v33_v2 = vld [vmem:[%s539_s5 + $0x10] sm:$0xff]  ;;  %418 = vset.pattern.permute.xlu0 %v420_v3  ;;  %419 = vset.pattern.permute.xlu1 %v420_v3  ;;  %v421_v35 = vmov 0.0   ;;  %vm422_vm3 = vmmov 0   ;;  %vm281_vm4 = vcmask 261120  }
   0x2   :  { %v399_v4 = vpack.c.bf16 %v32_v1, %v31_v0  ;;  %v34_v5 = vld [vmem:[%s539_s5 + $0x18] sm:$0xff]  ;;  %v35_v7 = vld [vmem:[%s539_s5 + $0x20] sm:$0xff]  ;;  %v36_v8 = vld [vmem:[%s539_s5 + $0x28] sm:$0xff]  ;;  %vm325_vm5 = vcmask 256000  }
   0x3   :  { %v403_v6 = vpack.c.bf16 %v34_v5, %v33_v2  ;;  %v27_v9 = vld [vmem:[%s540_s3] sm:$0xff]  ;;  %v41_v11 = vld [vmem:[%s541_s4 + $0x10] sm:$0xff]  ;;  %v407_v12 = vpack.c.bf16 %v36_v8, %v35_v7  ;;  %v38_v14 = vld [vmem:[%s539_s5 + $0x38] sm:$0xff] }
   0x4   :  { %400 = vmatprep.subr.bf16.mxu0 %v399_v4  ;;  %377 = vmatprep.mubr.msk.f32.mxu0 %vm63_vm0, %v27_v9  ;;  %v39_v10 = vld [vmem:[%s541_s4] sm:$0xff]  ;;  %v37_v13 = vld [vmem:[%s539_s5 + $0x30] sm:$0xff]  ;;  %v40_v15 = vld [vmem:[%s541_s4 + $0x8] sm:$0xff] }
   0x5   :  { %402 = vmatpush3.bf16.msra.mxu0 %v399_v4  ;;  %45 = vperm.xlu0 %418, %v39_v10   ;;  %v42_v16 = vld [vmem:[%s541_s4 + $0x18] sm:$0xff]  ;;  %v411_v17 = vpack.c.bf16 %v38_v14, %v37_v13  ;;  %v275_v18 = vld [vmem:[%s542_s6] sm:$0x7]  ;;  %v28_v19 = vld [vmem:[%s540_s3 + $0x8] sm:$0xff] }
   0x6   :  { %404 = vmatprep.subr.bf16.mxu0 %v403_v6  ;;  %55 = vperm.xlu1 %419, %v41_v11   ;;  %v29_v20 = vld [vmem:[%s540_s3 + $0x10] sm:$0xff]  ;;  %v30_v21 = vld [vmem:[%s540_s3 + $0x18] sm:$0xff]  ;;  %v161_v22 = vld [vmem:[%s543_s1] sm:$0x3] }
   0x7   :  { %383 = vmatprep.subr.msk.mxu1 %vm175_vm1, %v161_v22  ;;  %v265_v36 = vld [vmem:[%s544_s0 + $0x8] sm:$0xff]  ;;  %v264_v37 = vld [vmem:[%s544_s0] sm:$0xff]  ;;  %v267_v42 = vld [vmem:[%s544_s0 + $0x18] sm:$0xff] }
   0x8   :  { %384 = vmatpush3.msk.msra.mxu1 %vm175_vm1, %v161_v22  ;;  %v266_v43 = vld [vmem:[%s544_s0 + $0x10] sm:$0xff]  ;;  %v272_v50 = vld [vmem:[%s545_s2] sm:$0x3] }
   0x9   :  { %406 = vmatpush3.bf16.msra.mxu0 %v403_v6  ;;  %50 = vperm.xlu0 %418, %v40_v15  }
   0xa   :  { %408 = vmatprep.subr.bf16.mxu0 %v407_v12  ;;  %60 = vperm.xlu1 %419, %v42_v16  }
   0xb   :  { %391 = vmatprep.subr.bf16.mxu1 %v421_v35 }
   0xd   :  { %410 = vmatpush3.bf16.msra.mxu0 %v407_v12  ;;  %278 = vperm.xlu0 %418, %v275_v18  }
   0xe   :  { %412 = vmatprep.subr.bf16.mxu0 %v411_v17 }
  0x11   :  { %414 = vmatpush3.bf16.msra.mxu0 %v411_v17 }
  0x14   :  { %378 = vmatmul.mubr.msk.f32.vlgmr.msra.gmra.mrb[0].mxu0 %vm63_vm0, %v28_v19 }
  0x15   :  { %380 = vmatprep.mubr.msk.f32.mxu0 %vm63_vm0, %v29_v20 }
  0x18   :  { %381 = vmatmul.mubr.msk.f32.gmra.mrb[2].mxu0 %vm63_vm0, %v30_v21 }
  0x84   :  { %v46_v23 = vpop.permute.xlu0 %45 }
  0x85   :  { %v56_v24 = vpop.permute.xlu1 %55 }
  0x88   :  { %v51_v27 = vpop.permute.xlu0 %50 }
  0x89   :  { %v61_v32 = vpop.permute.xlu1 %60 }
  0x8c   :  { %v279_v51 = vpop.permute.xlu0 %278 }
  0xe7   :  { %v379_v25 = vpop.f32.mrb[0].mxu0 }
  0xe8   :  { %v142_v26 = vpop.f32.mrb[1].mxu0  ;;  %v148_v29 = vadd.f32 %v379_v25, %v51_v27 }
  0xe9   :  { %v143_v28 = vadd.f32 %v142_v26, %v46_v23 }
  0xeb   :  { %v382_v30 = vpop.f32.mrb[2].mxu0  ;;  %385 = vmatprep.mubr.msk.f32.mxu1 %vm162_vm2, %v143_v28 }
  0xec   :  { %v152_v31 = vpop.f32.mrb[3].mxu0  ;;  %386 = vmatmul.mubr.msk.f32.vlgmr.msra.gmra.mrb[0].mxu1 %vm162_vm2, %v148_v29  ;;  %v158_v34 = vadd.f32 %v382_v30, %v61_v32 }
  0xed   :  { %v153_v33 = vadd.f32 %v152_v31, %v56_v24 }
  0xef   :  { %388 = vmatprep.mubr.msk.f32.mxu1 %vm162_vm2, %v153_v33 }
  0xf0   :  { %389 = vmatmul.mubr.msk.f32.gmra.mrb[2].mxu1 %vm162_vm2, %v158_v34 }
  0xf1   :  { %395 = vmatprep.mubr.msk.bf16.mxu1 %vm422_vm3, %v421_v35 }
 0x1bf   :  { %v387_v38 = vpop.f32.mrb[0].mxu1 }
 0x1c0   :  { %v269_v39 = vmul.f32 %v387_v38, %v265_v36  ;;  %v245_v40 = vpop.f32.mrb[1].mxu1 }
 0x1c1   :  { %v268_v41 = vmul.f32 %v264_v37, %v245_v40 }
 0x1c3   :  { %v273_v44 = vpack.c.bf16 %v269_v39, %v268_v41  ;;  %v390_v45 = vpop.f32.mrb[2].mxu1 }
 0x1c4   :  { %v271_v46 = vmul.f32 %v390_v45, %v267_v42  ;;  %v255_v47 = vpop.f32.mrb[3].mxu1 }
 0x1c5   :  { %v270_v48 = vmul.f32 %v266_v43, %v255_v47  ;;  %392 = vmatpush3.bf16.msra.mxu1 %v273_v44 }
 0x1c6   :  { %393 = vmatprep.subr.bf16.mxu1 %v421_v35 }
 0x1c7   :  { %v274_v49 = vpack.c.bf16 %v271_v46, %v270_v48 }
 0x1c9   :  { %394 = vmatpush3.bf16.msra.mxu1 %v274_v49 }
 0x1cc   :  { %396 = vmatmul.mubr.msk.bf16.vlgmr.msra.gmra.mrb[4].mxu1 %vm281_vm4, %v272_v50 }
 0x29f   :  { %v319_v52 = vpop.f32.mrb[4].mxu1 }
 0x2a0   :  { %v320_v53 = vadd.f32 %v319_v52, %v279_v51  ;;  %v397_v54 = vpop.f32.mrb[5].mxu1 }
 0x2a1   :  { %v322_v55 = vpop.f32.mrb[6].mxu1 }
 0x2a2   :  { %326 = vst.msk [vmem:[%s546_s7] sm:$0x7] %vm325_vm5, %v320_v53  ;;  %v398_v56 = vpop.f32.mrb[7].mxu1 }

// kernel: _lambda_.13
= control target key start
LH: loop header
LB: loop body
LE: loop exit
PB: predicated region body
PF: predicated region fallthrough
CT: control target
= control target key end

     0   :  { %vm52_vm0 = vcmask 523264   ;;  %v723_v3 = vmov 0   ;;  %vm151_vm1 = vcmask 1041408   ;;  %v724_v19 = vmov 0.0   ;;  %s725_s16 = smov 126   ;;  %s726_s17 = smov 127   ;;  %s902_s5 = inlined_call_operand.vmem [shape: f32[64,2], index: 5, kind: input, shape index: {}]   ;;  %s903_s3 = inlined_call_operand.vmem [shape: f32[16,64], index: 3, kind: input, shape index: {}]   ;;  %s904_s4 = inlined_call_operand.vmem [shape: f32[16,1], index: 4, kind: input, shape index: {}]   ;;  %s905_s1 = inlined_call_operand.vmem [shape: f32[2,222], index: 1, kind: input, shape index: {}]   ;;  %s906_s7 = inlined_call_operand.vmem [shape: f32[16,16], index: 7, kind: input, shape index: {}]   ;;  %s907_s0 = inlined_call_operand.vmem [shape: f32[16,222], index: 0, kind: input, shape index: {}]   ;;  %s908_s6 = inlined_call_operand.vmem [shape: f32[16,1], index: 6, kind: input, shape index: {}]   ;;  %s909_s2 = inlined_call_operand.vmem [shape: bf16[16,144], index: 2, kind: input, shape index: {}]   ;;  %s910_s8 = inlined_call_operand.vmem [shape: f32[16,200], index: 8, kind: output, shape index: {}]  }
   0x1   :  { %v32_v0 = vld [vmem:[%s902_s5] sm:$0xff]  ;;  %v33_v1 = vld [vmem:[%s902_s5 + $0x8] sm:$0xff]  ;;  %v34_v2 = vld [vmem:[%s902_s5 + $0x10] sm:$0xff]  ;;  %714 = vset.pattern.permute.xlu0 %v723_v3  ;;  %715 = vset.pattern.permute.xlu1 %v723_v3  ;;  %vm144_vm2 = vcmask 15360   ;;  %vm357_vm3 = vcmask 130048   ;;  %vm244_vm4 = vcmask 588800  }
   0x2   :  { %v684_v4 = vpack.c.bf16 %v33_v1, %v32_v0  ;;  %v35_v5 = vld [vmem:[%s902_s5 + $0x18] sm:$0xff]  ;;  %v36_v7 = vld [vmem:[%s902_s5 + $0x20] sm:$0xff]  ;;  %v37_v8 = vld [vmem:[%s902_s5 + $0x28] sm:$0xff]  ;;  %s727_s18 = smov 118   ;;  %s728_s19 = smov 117   ;;  %vm252_vm5 = vcmask 1039360  }
   0x3   :  { %v688_v6 = vpack.c.bf16 %v35_v5, %v34_v2  ;;  %v30_v9 = vld [vmem:[%s903_s3] sm:$0xff]  ;;  %v692_v11 = vpack.c.bf16 %v37_v8, %v36_v7  ;;  %v41_v12 = vld [vmem:[%s904_s4 + $0x8] sm:$0xff]  ;;  %v38_v13 = vld [vmem:[%s902_s5 + $0x30] sm:$0xff]  ;;  %s730_s20 = smov 108   ;;  %s731_s21 = smov 107   ;;  %vm262_vm6 = vcmask 1031168  }
   0x4   :  { %685 = vmatprep.subr.bf16.mxu0 %v684_v4  ;;  %674 = vmatprep.mubr.msk.f32.mxu0 %vm52_vm0, %v30_v9  ;;  %v40_v10 = vld [vmem:[%s904_s4] sm:$0xff]  ;;  %v39_v14 = vld [vmem:[%s902_s5 + $0x38] sm:$0xff]  ;;  %v31_v18 = vld [vmem:[%s903_s3 + $0x8] sm:$0xff]  ;;  %s732_s22 = smov 106   ;;  %vm272_vm7 = vcmask 965632   ;;  %vm282_vm8 = vcmask 957440  }
   0x5   :  { %687 = vmatpush3.bf16.msra.mxu0 %v684_v4  ;;  %44 = vperm.xlu0 %714, %v40_v10   ;;  %v696_v15 = vpack.c.bf16 %v39_v14, %v38_v13  ;;  %v815_v16 = vld.sshfl [vmem:[%s905_s1] sm:$0x33 pattern:$0x76325410]  ;;  %v405_v30 = vld [vmem:[%s906_s7 + $0x8] sm:$0xff]  ;;  %v235_v34 = vld [vmem:[%s907_s0 + $0x10] sm:$0xff] }
   0x6   :  { %689 = vmatprep.subr.bf16.mxu0 %v688_v6  ;;  %v819_v17 = vcombine.high %v815_v16, %v815_v16  ;;  %v404_v29 = vld [vmem:[%s906_s7] sm:$0xff]  ;;  %v234_v35 = vld [vmem:[%s907_s0 + $0x8] sm:$0xff]  ;;  %v236_v36 = vld [vmem:[%s907_s0 + $0x18] sm:$0xff]  ;;  %vm292_vm9 = vcmask 949248   ;;  %vm302_vm10 = vcmask 883712   ;;  %vm312_vm11 = vcmask 875520  }
   0x7   :  { %v233_v33 = vld [vmem:[%s907_s0] sm:$0xff]  ;;  %s729_s0 = smov 116   ;;  %v589_v50 = vld [vmem:[%s908_s6 + $0x8] sm:$0xff]  ;;  %vm322_vm12 = vcmask 867328  }
   0x8   :  { %v588_v48 = vld [vmem:[%s908_s6] sm:$0xff] }
   0x9   :  { %691 = vmatpush3.bf16.msra.mxu0 %v688_v6  ;;  %49 = vperm.xlu0 %714, %v41_v12   ;;  %v718_v49 = vld [vmem:[%s909_s2 + $0x4] ss:$8 sps:$4 sm:$0xff]  }
   0xa   :  { %693 = vmatprep.subr.bf16.mxu0 %v692_v11  ;;  %637 = vmatprep.mubr.msk.bf16.mxu1 %vm357_vm3, %v718_v49 }
   0xd   :  { %695 = vmatpush3.bf16.msra.mxu0 %v692_v11 }
   0xe   :  { %697 = vmatprep.subr.bf16.mxu0 %v696_v15 }
  0x11   :  { %699 = vmatpush3.bf16.msra.mxu0 %v696_v15 }
  0x12   :  { %631 = vmatprep.subr.msk.mxu0 %vm151_vm1, %v819_v17 }
  0x14   :  { %675 = vmatmul.mubr.msk.f32.vlgmr.msra.gmra.mrb[0].mxu0 %vm52_vm0, %v31_v18 }
  0x15   :  { %632 = vmatpush1.msk.msra.mxu0 %vm151_vm1, %v815_v16  ;;  %220 = vmatprep.mubr.f32.mxu0 %v724_v19 }
  0x84   :  { %v45_v20 = vpop.permute.xlu0 %44 }
  0x88   :  { %v50_v21 = vpop.permute.xlu0 %49 }
  0xe7   :  { %v676_v22 = vpop.f32.mrb[0].mxu0 }
  0xe8   :  { %v131_v23 = vadd.f32 %v676_v22, %v50_v21  ;;  %v125_v24 = vpop.f32.mrb[1].mxu0 }
  0xe9   :  { %v126_v25 = vadd.f32 %v125_v24, %v45_v20 }
  0xea   :  { %v407_v26 = vmul.f32 %v131_v23, %v131_v23 }
  0xeb   :  { %v406_v27 = vmul.f32 %v126_v25, %v126_v25  ;;  %633 = vmatmul.mubr.msk.f32.vlgmr.msra.gmra.mrb[2].mxu0 %vm144_vm2, %v126_v25 }
  0xec   :  { %226 = vmatprep.mubr.f32.mxu0 %v724_v19 }
  0xed   :  { %v700_v28 = vpack.c.bf16 %v407_v26, %v406_v27  ;;  %v716_v27 = vld [vmem:[%s909_s2] ss:$8 sps:$4 sm:$0xff]  }
  0xef   :  { %634 = vmatmul.mubr.msk.f32.gmra.mrb[4].mxu0 %vm144_vm2, %v131_v23  ;;  %701 = vmatprep.subr.bf16.mxu0 %v700_v28 }
  0xf0   :  { %703 = vmatpush3.bf16.msra.mxu0 %v700_v28  ;;  %681 = vmatprep.mubr.msk.f32.mxu0 %vm357_vm3, %v404_v29 }
  0xf3   :  { %682 = vmatmul.mubr.msk.f32.vlgmr.msra.gmra.mrb[6].mxu0 %vm357_vm3, %v405_v30 }
  0xf4   :  { %571 = vmatprep.mubr.f32.mxu0 %v724_v19 }
 0x1be   :  { %v222_v31 = vpop.f32.mrb[2].mxu0 }
 0x1bf   :  { %v224_v32 = vpop.f32.mrb[3].mxu0  ;;  %v237_v38 = vmul.f32 %v233_v33, %v222_v31 }
 0x1c0   :  { %v238_v41 = vmul.f32 %v234_v35, %v224_v32 }
 0x1c2   :  { %v228_v37 = vpop.f32.mrb[4].mxu0 }
 0x1c3   :  { %v239_v39 = vmul.f32 %v235_v34, %v228_v37  ;;  %v230_v40 = vpop.f32.mrb[5].mxu0 }
 0x1c4   :  { %v240_v42 = vmul.f32 %v236_v36, %v230_v40 }
 0x1c5   :  { %v241_v43 = vpack.c.bf16 %v239_v39, %v237_v38 }
 0x1c6   :  { %v242_v44 = vpack.c.bf16 %v240_v42, %v238_v41  ;;  %v855_v46 = vpop.f32.mrb[6].mxu0 }
 0x1c7   :  { %258 = vrot.lane.b32.xlu0 %v241_v43, %s725_s16  ;;  %248 = vrot.lane.b32.xlu1 %v241_v43, %s726_s17  ;;  %v480_v47 = vpop.f32.mrb[7].mxu0  ;;  %v486_v11 = vadd.f32 1e-08, %v855_v46 }
 0x1c8   :  { %245 = vst.msk [vmem:[#allocation2 + $0x8] sm:$0xff] %vm244_vm4, %v242_v44  ;;  %v481_v6 = vadd.f32 1e-08, %v480_v47 }
 0x1ca   :  { %719 = vrsqrt.f32 %v481_v6 }
 0x1cb   :  { %268 = vrot.lane.b32.xlu0 %v241_v43, %s727_s18  ;;  %250 = vrot.lane.b32.xlu1 %v242_v44, %s726_s17  ;;  %721 = vrsqrt.f32 %v486_v11 }
 0x1cf   :  { %278 = vrot.lane.b32.xlu0 %v241_v43, %s728_s19  ;;  %260 = vrot.lane.b32.xlu1 %v242_v44, %s725_s16  ;;  %v331_v45 = vld [vmem:[#allocation2 + $0x8] sm:$0xff] }
 0x1d0   :  { %361 = vmatprep.subr.bf16.mxu1 %v331_v45 }
 0x1d1   :  { %362 = vmatpush1.bf16.msra.mxu1 %v241_v43 }
 0x1d3   :  { %288 = vrot.lane.b32.xlu0 %v241_v43, %s729_s0  ;;  %270 = vrot.lane.b32.xlu1 %v242_v44, %s727_s18 }
 0x1d4   :  { %v720_v21 = vpop.eup %719 }
 0x1d5   :  { %v722_v25 = vpop.eup %721 }
 0x1d7   :  { %298 = vrot.lane.b32.xlu0 %v241_v43, %s730_s20  ;;  %280 = vrot.lane.b32.xlu1 %v242_v44, %s728_s19 }
 0x1db   :  { %308 = vrot.lane.b32.xlu0 %v241_v43, %s731_s21  ;;  %290 = vrot.lane.b32.xlu1 %v242_v44, %s729_s0 }
 0x1df   :  { %318 = vrot.lane.b32.xlu0 %v241_v43, %s732_s22  ;;  %300 = vrot.lane.b32.xlu1 %v242_v44, %s730_s20 }
 0x1e3   :  { %491 = vrot.lane.b32.xlu0 %v815_v16, %s728_s19  ;;  %310 = vrot.lane.b32.xlu1 %v242_v44, %s731_s21 }
 0x1e7   :  { %592 = vperm.xlu0 %714, %v588_v48   ;;  %320 = vrot.lane.b32.xlu1 %v242_v44, %s732_s22 }
 0x1eb   :  { %493 = vrot.lane.b32.xlu1 %v819_v17, %s728_s19 }
 0x1ef   :  { %597 = vperm.xlu1 %715, %v589_v50  }
 0x239   :  { %v259_v51 = vpop.permute.xlu0 %258  ;;  %v249_v52 = vpop.permute.xlu1 %248 }
 0x23d   :  { %v269_v53 = vpop.permute.xlu0 %268  ;;  %v251_v54 = vpop.permute.xlu1 %250 }
 0x23e   :  { %v253_v55 = vsel %vm252_vm5, %v249_v52, %v251_v54  ;;  %257 = vst.msk [vmem:[#allocation2 + $0x18] sm:$0xff] %vm244_vm4, %v251_v54 }
 0x241   :  { %v279_v56 = vpop.permute.xlu0 %278  ;;  %v261_v57 = vpop.permute.xlu1 %260 }
 0x242   :  { %v263_v58 = vsel %vm262_vm6, %v259_v51, %v261_v57  ;;  %267 = vst.msk [vmem:[#allocation2 + $0x28] sm:$0xff] %vm244_vm4, %v261_v57 }
 0x245   :  { %v289_v59 = vpop.permute.xlu0 %288  ;;  %v271_v60 = vpop.permute.xlu1 %270  ;;  %v333_v61 = vld [vmem:[#allocation2 + $0x18] sm:$0xff] }
 0x246   :  { %v273_v62 = vsel %vm272_vm7, %v269_v53, %v271_v60  ;;  %277 = vst.msk [vmem:[#allocation2 + $0x38] sm:$0xff] %vm244_vm4, %v271_v60  ;;  %363 = vmatprep.subr.bf16.mxu1 %v333_v61 }
 0x247   :  { %364 = vmatpush1.bf16.msra.mxu1 %v253_v55 }
 0x249   :  { %v281_v63 = vpop.permute.xlu1 %280  ;;  %v335_v0 = vld [vmem:[#allocation2 + $0x28] sm:$0xff]  ;;  %v299_v2 = vpop.permute.xlu0 %298 }
 0x24a   :  { %v283_v1 = vsel %vm282_vm8, %v279_v56, %v281_v63  ;;  %287 = vst.msk [vmem:[#allocation2 + $0x48] sm:$0xff] %vm244_vm4, %v281_v63  ;;  %365 = vmatprep.subr.bf16.mxu1 %v335_v0 }
 0x24b   :  { %366 = vmatpush1.bf16.msra.mxu1 %v263_v58 }
 0x24d   :  { %v291_v3 = vpop.permute.xlu1 %290  ;;  %v337_v4 = vld [vmem:[#allocation2 + $0x38] sm:$0xff]  ;;  %v309_v7 = vpop.permute.xlu0 %308 }
 0x24e   :  { %v293_v5 = vsel %vm292_vm9, %v289_v59, %v291_v3  ;;  %297 = vst.msk [vmem:[#allocation2 + $0x58] sm:$0xff] %vm244_vm4, %v291_v3  ;;  %367 = vmatprep.subr.bf16.mxu1 %v337_v4 }
 0x24f   :  { %368 = vmatpush1.bf16.msra.mxu1 %v273_v62 }
 0x251   :  { %v301_v8 = vpop.permute.xlu1 %300  ;;  %v339_v9 = vld [vmem:[#allocation2 + $0x48] sm:$0xff]  ;;  %v319_v15 = vpop.permute.xlu0 %318 }
 0x252   :  { %v303_v10 = vsel %vm302_vm10, %v299_v2, %v301_v8  ;;  %307 = vst.msk [vmem:[#allocation2 + $0x68] sm:$0xff] %vm244_vm4, %v301_v8  ;;  %369 = vmatprep.subr.bf16.mxu1 %v339_v9 }
 0x253   :  { %370 = vmatpush1.bf16.msra.mxu1 %v283_v1 }
 0x255   :  { %v311_v12 = vpop.permute.xlu1 %310  ;;  %v341_v13 = vld [vmem:[#allocation2 + $0x58] sm:$0xff]  ;;  %v492_v20 = vpop.permute.xlu0 %491 }
 0x256   :  { %v313_v14 = vsel %vm312_vm11, %v309_v7, %v311_v12  ;;  %317 = vst.msk [vmem:[#allocation2 + $0x78] sm:$0xff] %vm244_vm4, %v311_v12  ;;  %371 = vmatprep.subr.bf16.mxu1 %v341_v13 }
 0x257   :  { %372 = vmatpush1.bf16.msra.mxu1 %v293_v5 }
 0x259   :  { %v321_v16 = vpop.permute.xlu1 %320  ;;  %v343_v17 = vld [vmem:[#allocation2 + $0x68] sm:$0xff] }
 0x25a   :  { %v323_v18 = vsel %vm322_vm12, %v319_v15, %v321_v16  ;;  %327 = vst.msk [vmem:[#allocation2 + $0x88] sm:$0xff] %vm244_vm4, %v321_v16  ;;  %373 = vmatprep.subr.bf16.mxu1 %v343_v17 }
 0x25b   :  { %374 = vmatpush1.bf16.msra.mxu1 %v303_v10 }
 0x25d   :  { %v494_v22 = vpop.permute.xlu1 %493  ;;  %v345_v23 = vld [vmem:[#allocation2 + $0x78] sm:$0xff] }
 0x25e   :  { %v496_v24 = vsel %vm282_vm8, %v492_v20, %v494_v22  ;;  %375 = vmatprep.subr.bf16.mxu1 %v345_v23  ;;  %640 = vmatprep.subr.msk.mxu0 %vm151_vm1, %v494_v22 }
 0x25f   :  { %376 = vmatpush1.bf16.msra.mxu1 %v313_v14  ;;  %641 = vmatpush1.msk.msra.mxu0 %vm151_vm1, %v496_v24 }
 0x260   :  { %642 = vmatmul.mubr.msk.f32.vlgmr.msra.gmra.mrb[8].mxu0 %vm144_vm2, %v720_v21 }
 0x261   :  { %v347_v26 = vld [vmem:[#allocation2 + $0x88] sm:$0xff]  ;;  %577 = vmatprep.mubr.f32.mxu0 %v724_v19 }
 0x262   :  { %377 = vmatprep.subr.bf16.mxu1 %v347_v26 }
 0x263   :  { %378 = vmatpush1.bf16.msra.mxu1 %v323_v18 }
 0x264   :  { %643 = vmatmul.mubr.msk.f32.gmra.mrb[10].mxu0 %vm144_vm2, %v722_v25 }
 0x266   :  { %394 = vmatmul.mubr.bf16.vlgmr.msra.gmra.mrb[0].mxu1 %v716_v27  ;;  %v593_v33 = vpop.permute.xlu0 %592 }
 0x26e   :  { %v598_v19 = vpop.permute.xlu1 %597 }
 0x333   :  { %v573_v28 = vpop.f32.mrb[8].mxu0 }
 0x334   :  { %v575_v29 = vpop.f32.mrb[9].mxu0 }
 0x337   :  { %v579_v30 = vpop.f32.mrb[10].mxu0 }
 0x338   :  { %v581_v31 = vpop.f32.mrb[11].mxu0 }
 0x339   :  { %v395_v32 = vpop.f32.mrb[0].mxu1 }
 0x33a   :  { %v584_v34 = vmul.f32 %v573_v28, %v395_v32  ;;  %v397_v35 = vpop.f32.mrb[1].mxu1 }
 0x33b   :  { %v585_v36 = vmul.f32 %v575_v29, %v397_v35  ;;  %v399_v37 = vpop.f32.mrb[2].mxu1 }
 0x33c   :  { %v600_v38 = vadd.f32 %v593_v33, %v584_v34  ;;  %v586_v39 = vmul.f32 %v579_v30, %v399_v37  ;;  %v401_v40 = vpop.f32.mrb[3].mxu1 }
 0x33d   :  { %v601_v41 = vadd.f32 %v593_v33, %v585_v36  ;;  %v587_v42 = vmul.f32 %v581_v31, %v401_v40 }
 0x33e   :  { %vm604_vm13 = vcmp.ge.f32.partialorder %v600_v38, 0.0  ;;  %v608_v43 = vmul.f32 0.2, %v600_v38  ;;  %v602_v44 = vadd.f32 %v598_v19, %v586_v39 }
 0x33f   :  { %vm605_vm14 = vcmp.ge.f32.partialorder %v601_v41, 0.0  ;;  %v609_v45 = vmul.f32 0.2, %v601_v41  ;;  %v603_v46 = vadd.f32 %v598_v19, %v587_v42 }
 0x340   :  { %v612_v47 = vsel %vm604_vm13, %v600_v38, %v608_v43  ;;  %vm606_vm15 = vcmp.ge.f32.partialorder %v602_v44, 0.0  ;;  %v610_v48 = vmul.f32 0.2, %v602_v44 }
 0x341   :  { %v616_v49 = vmul.f32 1.4142135, %v612_v47  ;;  %v613_v50 = vsel %vm605_vm14, %v601_v41, %v609_v45  ;;  %vm607_vm0 = vcmp.ge.f32.partialorder %v603_v46, 0.0  ;;  %v611_v51 = vmul.f32 0.2, %v603_v46 }
 0x342   :  { %v617_v52 = vmul.f32 1.4142135, %v613_v50  ;;  %v614_v53 = vsel %vm606_vm15, %v602_v44, %v610_v48 }
 0x343   :  { %620 = vst [vmem:[%s910_s8] sm:$0xff] %v616_v49  ;;  %v615_v54 = vsel %vm607_vm0, %v603_v46, %v611_v51  ;;  %v618_v55 = vmul.f32 1.4142135, %v614_v53 }
 0x344   :  { %621 = vst.msk [vmem:[%s910_s8 + $0x8] sm:$0xff] %vm244_vm4, %v617_v52  ;;  %v619_v56 = vmul.f32 1.4142135, %v615_v54 }
 0x345   :  { %622 = vst [vmem:[%s910_s8 + $0x10] sm:$0xff] %v618_v55 }
 0x346   :  { %623 = vst.msk [vmem:[%s910_s8 + $0x18] sm:$0xff] %vm244_vm4, %v619_v56 }

// kernel: _lambda_.14
= control target key start
LH: loop header
LB: loop body
LE: loop exit
PB: predicated region body
PF: predicated region fallthrough
CT: control target
= control target key end

     0   :  { %vm52_vm0 = vcmask 523264   ;;  %v356_v3 = vmov 0   ;;  %vm142_vm1 = vcmask 1041408   ;;  %vm135_vm2 = vcmask 15360   ;;  %s463_s5 = inlined_call_operand.vmem [shape: f32[64,2], index: 5, kind: input, shape index: {}]   ;;  %s464_s3 = inlined_call_operand.vmem [shape: f32[16,64], index: 3, kind: input, shape index: {}]   ;;  %s465_s4 = inlined_call_operand.vmem [shape: f32[16,1], index: 4, kind: input, shape index: {}]   ;;  %s466_s1 = inlined_call_operand.vmem [shape: f32[2,128], index: 1, kind: input, shape index: {}]   ;;  %s467_s6 = inlined_call_operand.vmem [shape: f32[3,1], index: 6, kind: input, shape index: {}]   ;;  %s468_s0 = inlined_call_operand.vmem [shape: f32[16,128], index: 0, kind: input, shape index: {}]   ;;  %s469_s2 = inlined_call_operand.vmem [shape: bf16[3,16], index: 2, kind: input, shape index: {}]   ;;  %s470_s7 = inlined_call_operand.vmem [shape: f32[3,128], index: 7, kind: input, shape index: {}]   ;;  %s471_s8 = inlined_call_operand.vmem [shape: f32[3,128], index: 8, kind: output, shape index: {}]  }
   0x1   :  { %v32_v0 = vld [vmem:[%s463_s5] sm:$0xff]  ;;  %v33_v1 = vld [vmem:[%s463_s5 + $0x8] sm:$0xff]  ;;  %v34_v2 = vld [vmem:[%s463_s5 + $0x10] sm:$0xff]  ;;  %354 = vset.pattern.permute.xlu0 %v356_v3  ;;  %355 = vset.pattern.permute.xlu1 %v356_v3  ;;  %v357_v24 = vmov 0.0   ;;  %vm358_vm3 = vmmov 0   ;;  %vm233_vm4 = vcmask 130048  }
   0x2   :  { %v335_v4 = vpack.c.bf16 %v33_v1, %v32_v0  ;;  %v35_v5 = vld [vmem:[%s463_s5 + $0x18] sm:$0xff]  ;;  %v36_v7 = vld [vmem:[%s463_s5 + $0x20] sm:$0xff]  ;;  %v37_v8 = vld [vmem:[%s463_s5 + $0x28] sm:$0xff] }
   0x3   :  { %v339_v6 = vpack.c.bf16 %v35_v5, %v34_v2  ;;  %v30_v9 = vld [vmem:[%s464_s3] sm:$0xff]  ;;  %v343_v11 = vpack.c.bf16 %v37_v8, %v36_v7  ;;  %v41_v12 = vld [vmem:[%s465_s4 + $0x8] sm:$0xff]  ;;  %v38_v13 = vld [vmem:[%s463_s5 + $0x30] sm:$0xff] }
   0x4   :  { %336 = vmatprep.subr.bf16.mxu0 %v335_v4  ;;  %321 = vmatprep.mubr.msk.f32.mxu0 %vm52_vm0, %v30_v9  ;;  %v40_v10 = vld [vmem:[%s465_s4] sm:$0xff]  ;;  %v39_v14 = vld [vmem:[%s463_s5 + $0x38] sm:$0xff]  ;;  %v31_v16 = vld [vmem:[%s464_s3 + $0x8] sm:$0xff] }
   0x5   :  { %338 = vmatpush3.bf16.msra.mxu0 %v335_v4  ;;  %44 = vperm.xlu0 %354, %v40_v10   ;;  %v347_v15 = vpack.c.bf16 %v39_v14, %v38_v13  ;;  %v134_v17 = vld [vmem:[%s466_s1] sm:$0x3]  ;;  %v222_v26 = vld [vmem:[%s468_s0 + $0x8] sm:$0xff] }
   0x6   :  { %340 = vmatprep.subr.bf16.mxu0 %v339_v6  ;;  %324 = vmatprep.subr.msk.mxu1 %vm142_vm1, %v134_v17  ;;  %v227_v25 = vld [vmem:[%s467_s6] sm:$0x7] }
   0x7   :  { %325 = vmatpush3.msk.msra.mxu1 %vm142_vm1, %v134_v17  ;;  %230 = vperm.xlu1 %355, %v227_v25   ;;  %v221_v27 = vld [vmem:[%s468_s0] sm:$0xff] }
   0x8   :  { %329 = vmatprep.subr.bf16.mxu1 %v357_v24  ;;  %v225_v33 = vld [vmem:[%s469_s2] sm:$0x3] }
   0x9   :  { %342 = vmatpush3.bf16.msra.mxu0 %v339_v6  ;;  %49 = vperm.xlu0 %354, %v41_v12   ;;  %v277_v36 = vld [vmem:[%s470_s7] sm:$0x7] }
   0xa   :  { %344 = vmatprep.subr.bf16.mxu0 %v343_v11 }
   0xd   :  { %346 = vmatpush3.bf16.msra.mxu0 %v343_v11 }
   0xe   :  { %348 = vmatprep.subr.bf16.mxu0 %v347_v15 }
  0x11   :  { %350 = vmatpush3.bf16.msra.mxu0 %v347_v15 }
  0x14   :  { %322 = vmatmul.mubr.msk.f32.vlgmr.msra.gmra.mrb[0].mxu0 %vm52_vm0, %v31_v16 }
  0x84   :  { %v45_v18 = vpop.permute.xlu0 %44 }
  0x86   :  { %v231_v34 = vpop.permute.xlu1 %230 }
  0x88   :  { %v50_v21 = vpop.permute.xlu0 %49 }
  0xe7   :  { %v323_v19 = vpop.f32.mrb[0].mxu0 }
  0xe8   :  { %v125_v20 = vpop.f32.mrb[1].mxu0  ;;  %v131_v23 = vadd.f32 %v323_v19, %v50_v21 }
  0xe9   :  { %v126_v22 = vadd.f32 %v125_v20, %v45_v18 }
  0xeb   :  { %326 = vmatprep.mubr.msk.f32.mxu1 %vm135_vm2, %v126_v22 }
  0xec   :  { %327 = vmatmul.mubr.msk.f32.vlgmr.msra.gmra.mrb[0].mxu1 %vm135_vm2, %v131_v23 }
  0xed   :  { %331 = vmatprep.mubr.msk.bf16.mxu1 %vm358_vm3, %v357_v24 }
 0x1bf   :  { %v328_v28 = vpop.f32.mrb[0].mxu1 }
 0x1c0   :  { %v224_v29 = vmul.f32 %v328_v28, %v222_v26  ;;  %v212_v30 = vpop.f32.mrb[1].mxu1 }
 0x1c1   :  { %v223_v31 = vmul.f32 %v221_v27, %v212_v30 }
 0x1c3   :  { %v226_v32 = vpack.c.bf16 %v224_v29, %v223_v31 }
 0x1c5   :  { %330 = vmatpush3.bf16.msra.mxu1 %v226_v32 }
 0x1c8   :  { %332 = vmatmul.mubr.msk.bf16.vlgmr.msra.gmra.mrb[4].mxu1 %vm233_vm4, %v225_v33 }
 0x29b   :  { %v271_v35 = vpop.f32.mrb[4].mxu1 }
 0x29c   :  { %v272_v37 = vadd.f32 %v271_v35, %v231_v34  ;;  %v333_v38 = vpop.f32.mrb[5].mxu1 }
 0x29d   :  { %v274_v39 = vpop.f32.mrb[6].mxu1 }
 0x29e   :  { %v278_v40 = vadd.f32 %v277_v36, %v272_v37  ;;  %v334_v41 = vpop.f32.mrb[7].mxu1 }
 0x2a0   :  { %279 = vst [vmem:[%s471_s8] sm:$0x7] %v278_v40 }

// kernel: _lambda_.15
= control target key start
LH: loop header
LB: loop body
LE: loop exit
PB: predicated region body
PF: predicated region fallthrough
CT: control target
= control target key end

     0   :  { %vm52_vm0 = vcmask 523264   ;;  %v1367_v3 = vmov 0   ;;  %v1368_v17 = vmov 1983009808   ;;  %v142_v19 = vlaneseq  ;;  %s1370_s23 = smov 126   ;;  %s1371_s24 = smov 127   ;;  %s1806_s5 = inlined_call_operand.vmem [shape: f32[64,2], index: 5, kind: input, shape index: {}]   ;;  %s1807_s3 = inlined_call_operand.vmem [shape: f32[16,64], index: 3, kind: input, shape index: {}]   ;;  %s1808_s4 = inlined_call_operand.vmem [shape: f32[16,1], index: 4, kind: input, shape index: {}]   ;;  %s1809_s1 = inlined_call_operand.vmem [shape: f32[2,686], index: 1, kind: input, shape index: {}]   ;;  %s1810_s0 = inlined_call_operand.vmem [shape: f32[16,686], index: 0, kind: input, shape index: {}]   ;;  %s1811_s2 = inlined_call_operand.vmem [shape: bf16[8,144], index: 2, kind: input, shape index: {}]   ;;  %s1812_s6 = inlined_call_operand.vmem [shape: f32[8,1], index: 6, kind: input, shape index: {}]   ;;  %s1813_s7 = inlined_call_operand.vmem [shape: f32[8,16], index: 7, kind: input, shape index: {}]   ;;  %s1814_s8 = inlined_call_operand.vmem [shape: f32[8,648], index: 8, kind: output, shape index: {}]  }
   0x1   :  { %v32_v0 = vld [vmem:[%s1806_s5] sm:$0xff]  ;;  %v33_v1 = vld [vmem:[%s1806_s5 + $0x8] sm:$0xff]  ;;  %v34_v2 = vld [vmem:[%s1806_s5 + $0x10] sm:$0xff]  ;;  %1361 = vset.pattern.permute.xlu0 %v1367_v3  ;;  %v140_v18 = vunpack.c.l.s4 %v1368_v17  ;;  %vm170_vm1 = vcmask 1041408   ;;  %v1369_v26 = vmov 0.0   ;;  %vm163_vm2 = vcmask 15360  }
   0x2   :  { %v1329_v4 = vpack.c.bf16 %v33_v1, %v32_v0  ;;  %v35_v5 = vld [vmem:[%s1806_s5 + $0x18] sm:$0xff]  ;;  %v36_v7 = vld [vmem:[%s1806_s5 + $0x20] sm:$0xff]  ;;  %v37_v8 = vld [vmem:[%s1806_s5 + $0x28] sm:$0xff]  ;;  %v143_v21 = vshrl.u32 %v142_v19, 7  ;;  %247 = vmatprep.mubr.f32.mxu1 %v1369_v26  ;;  %vm449_vm3 = vcmask 64512   ;;  %s1374_s30 = smov 108  }
   0x3   :  { %v1333_v6 = vpack.c.bf16 %v35_v5, %v34_v2  ;;  %v30_v9 = vld [vmem:[%s1807_s3] sm:$0xff]  ;;  %v1337_v11 = vpack.c.bf16 %v37_v8, %v36_v7  ;;  %v41_v12 = vld [vmem:[%s1808_s4 + $0x8] sm:$0xff]  ;;  %v38_v13 = vld [vmem:[%s1806_s5 + $0x30] sm:$0xff]  ;;  %v141_v20 = vunpack.c.0.s8 %v140_v18  ;;  %s1375_s9 = smov 92   ;;  %s1376_s10 = smov 91   ;;  %vm758_vm4 = vcmask 130048  }
   0x4   :  { %1330 = vmatprep.subr.bf16.mxu0 %v1329_v4  ;;  %1319 = vmatprep.mubr.msk.f32.mxu0 %vm52_vm0, %v30_v9  ;;  %v40_v10 = vld [vmem:[%s1808_s4] sm:$0xff]  ;;  %v39_v14 = vld [vmem:[%s1806_s5 + $0x38] sm:$0xff]  ;;  %v31_v16 = vld [vmem:[%s1807_s3 + $0x8] sm:$0xff]  ;;  %vm469_vm5 = vcmask 1039360   ;;  %vm499_vm6 = vcmask 1031168   ;;  %vm529_vm7 = vcmask 900096  }
   0x5   :  { %1332 = vmatpush3.bf16.msra.mxu0 %v1329_v4  ;;  %44 = vperm.xlu0 %1361, %v40_v10   ;;  %v1341_v15 = vpack.c.bf16 %v39_v14, %v38_v13  ;;  %v144_v22 = vsub.s32 %v141_v20, %v143_v21  ;;  %v134_v23 = vld [vmem:[%s1809_s1] sm:$0xff]  ;;  %v1488_v32 = vld.sshfl [vmem:[%s1809_s1 + $0x8] sm:$0x33 pattern:$0x76325410]  ;;  %v420_v44 = vld [vmem:[%s1810_s0 + $0x30] sm:$0xff] }
   0x6   :  { %1334 = vmatprep.subr.bf16.mxu0 %v1333_v6  ;;  %v138_v27 = vcombine.high %v134_v23, %v134_v23  ;;  %v1492_v37 = vcombine.high %v1488_v32, %v1488_v32  ;;  %v414_v43 = vld [vmem:[%s1810_s0] sm:$0xff]  ;;  %v415_v45 = vld [vmem:[%s1810_s0 + $0x8] sm:$0xff]  ;;  %v421_v46 = vld [vmem:[%s1810_s0 + $0x38] sm:$0xff]  ;;  %s1372_s1 = smov 110   ;;  %vm559_vm8 = vcmask 891904   ;;  %vm589_vm9 = vcmask 883712  }
   0x7   :  { %v1466_v24 = vrot.slane %v134_v23, %v144_v22  ;;  %v416_v57 = vld [vmem:[%s1810_s0 + $0x10] sm:$0xff]  ;;  %v422_v58 = vld [vmem:[%s1810_s0 + $0x40] sm:$0xff]  ;;  %v417_v59 = vld [vmem:[%s1810_s0 + $0x18] sm:$0xff]  ;;  %vm619_vm10 = vcmask 752640   ;;  %vm649_vm11 = vcmask 744448   ;;  %vm679_vm12 = vcmask 736256  }
   0x8   :  { %v1477_v28 = vrot.slane %v138_v27, %v144_v22  ;;  %v423_v60 = vld [vmem:[%s1810_s0 + $0x48] sm:$0xff]  ;;  %v418_v7 = vld [vmem:[%s1810_s0 + $0x20] sm:$0xff]  ;;  %v424_v8 = vld [vmem:[%s1810_s0 + $0x50] sm:$0xff]  ;;  %vm1379_vm13 = vmmov 0  }
   0x9   :  { %1336 = vmatpush3.bf16.msra.mxu0 %v1333_v6  ;;  %49 = vperm.xlu0 %1361, %v41_v12   ;;  %v1470_v25 = vcombine.high %v1466_v24, %v1466_v24  ;;  %v419_v9 = vld [vmem:[%s1810_s0 + $0x28] sm:$0xff]  ;;  %v425_v10 = vld [vmem:[%s1810_s0 + $0x58] sm:$0xff]  ;;  %s1373_s0 = smov 109   ;;  %v1589_v19 = vld [vmem:[%s1811_s2] sm:$0xff]  ;;  %s1377_s2 = smov 90  }
   0xa   :  { %1338 = vmatprep.subr.bf16.mxu0 %v1337_v11  ;;  %v1481_v29 = vcombine.high %v1477_v28, %v1477_v28  ;;  %v1595_v20 = vcombine.high %v1589_v19, %v1589_v19  ;;  %v1214_v21 = vld [vmem:[%s1812_s6] sm:$0xff] }
   0xb   :  { %1263 = vmatprep.subr.msk.mxu1 %vm170_vm1, %v1470_v25 }
   0xc   :  { %1264 = vmatpush1.msk.msra.mxu1 %vm170_vm1, %v1466_v24 }
   0xd   :  { %1340 = vmatpush3.bf16.msra.mxu0 %v1337_v11  ;;  %1267 = vmatprep.subr.msk.mxu1 %vm170_vm1, %v1481_v29 }
   0xe   :  { %1342 = vmatprep.subr.bf16.mxu0 %v1341_v15 }
  0x11   :  { %1344 = vmatpush3.bf16.msra.mxu0 %v1341_v15 }
  0x14   :  { %1320 = vmatmul.mubr.msk.f32.vlgmr.msra.gmra.mrb[0].mxu0 %vm52_vm0, %v31_v16 }
  0x15   :  { %1277 = vmatprep.mubr.msk.bf16.mxu0 %vm758_vm4, %v1595_v20 }
  0x84   :  { %v45_v30 = vpop.permute.xlu0 %44 }
  0x88   :  { %v50_v31 = vpop.permute.xlu0 %49 }
  0xe7   :  { %v1321_v33 = vpop.f32.mrb[0].mxu0 }
  0xe8   :  { %v131_v34 = vadd.f32 %v1321_v33, %v50_v31  ;;  %v125_v35 = vpop.f32.mrb[1].mxu0 }
  0xe9   :  { %v126_v36 = vadd.f32 %v125_v35, %v45_v30 }
  0xea   :  { %v1494_v38 = vmul.f32 %v131_v34, %v131_v34 }
  0xeb   :  { %v1496_v39 = vmul.f32 %v126_v36, %v126_v36  ;;  %1265 = vmatmul.mubr.msk.f32.vlgmr.msra.gmra.mrb[0].mxu1 %vm163_vm2, %v126_v36 }
  0xec   :  { %1268 = vmatpush1.msk.msra.mxu1 %vm170_vm1, %v1477_v28  ;;  %253 = vmatprep.mubr.f32.mxu1 %v1369_v26 }
  0xed   :  { %1271 = vmatprep.subr.msk.mxu1 %vm170_vm1, %v1492_v37  ;;  %v1346_v40 = vpack.c.bf16 %v1494_v38, %v1496_v39 }
  0xef   :  { %1266 = vmatmul.mubr.msk.f32.gmra.mrb[2].mxu1 %vm163_vm2, %v131_v34 }
  0xf0   :  { %324 = vmatprep.mubr.f32.mxu1 %v1369_v26 }
  0xf3   :  { %1269 = vmatmul.mubr.msk.f32.vlgmr.msra.gmra.mrb[4].mxu1 %vm163_vm2, %v126_v36 }
  0xf4   :  { %330 = vmatprep.mubr.f32.mxu1 %v1369_v26  ;;  %1272 = vmatpush1.msk.msra.mxu1 %vm170_vm1, %v1488_v32 }
  0xf7   :  { %1270 = vmatmul.mubr.msk.f32.gmra.mrb[6].mxu1 %vm163_vm2, %v131_v34 }
  0xf8   :  { %401 = vmatprep.mubr.f32.mxu1 %v1369_v26 }
  0xfb   :  { %1273 = vmatmul.mubr.msk.f32.vlgmr.msra.gmra.mrb[8].mxu1 %vm163_vm2, %v126_v36 }
  0xfc   :  { %407 = vmatprep.mubr.f32.mxu1 %v1369_v26 }
  0xff   :  { %1274 = vmatmul.mubr.msk.f32.gmra.mrb[10].mxu1 %vm163_vm2, %v131_v34 }
 0x100   :  { %1278 = vmatprep.mubr.msk.bf16.mxu1 %vm758_vm4, %v1595_v20 }
 0x1be   :  { %v249_v41 = vpop.f32.mrb[0].mxu1 }
 0x1bf   :  { %v251_v42 = vpop.f32.mrb[1].mxu1  ;;  %v426_v48 = vmul.f32 %v414_v43, %v249_v41 }
 0x1c0   :  { %v427_v51 = vmul.f32 %v415_v45, %v251_v42 }
 0x1c2   :  { %v255_v47 = vpop.f32.mrb[2].mxu1 }
 0x1c3   :  { %v432_v49 = vmul.f32 %v420_v44, %v255_v47  ;;  %v257_v50 = vpop.f32.mrb[3].mxu1 }
 0x1c4   :  { %v433_v52 = vmul.f32 %v421_v46, %v257_v50 }
 0x1c5   :  { %v1529_v53 = vpack.c.bf16 %v432_v49, %v426_v48 }
 0x1c6   :  { %v1531_v54 = vpack.c.bf16 %v433_v52, %v427_v51  ;;  %v326_v55 = vpop.f32.mrb[4].mxu1 }
 0x1c7   :  { %v328_v56 = vpop.f32.mrb[5].mxu1  ;;  %v428_v62 = vmul.f32 %v416_v57, %v326_v55 }
 0x1c8   :  { %762 = vmatprep.subr.bf16.mxu0 %v1531_v54  ;;  %v429_v1 = vmul.f32 %v417_v59, %v328_v56 }
 0x1c9   :  { %763 = vmatpush1.bf16.msra.mxu0 %v1529_v53 }
 0x1ca   :  { %v332_v61 = vpop.f32.mrb[6].mxu1 }
 0x1cb   :  { %v434_v63 = vmul.f32 %v422_v58, %v332_v61  ;;  %v334_v0 = vpop.f32.mrb[7].mxu1 }
 0x1cc   :  { %v435_v2 = vmul.f32 %v423_v60, %v334_v0 }
 0x1cd   :  { %v440_v3 = vpack.c.bf16 %v434_v63, %v428_v62 }
 0x1ce   :  { %v441_v4 = vpack.c.bf16 %v435_v2, %v429_v1  ;;  %v403_v5 = vpop.f32.mrb[8].mxu1 }
 0x1cf   :  { %v405_v6 = vpop.f32.mrb[9].mxu1  ;;  %491 = vrot.lane.b32.xlu1 %v440_v3, %s1370_s23  ;;  %461 = vrot.lane.b32.xlu0 %v440_v3, %s1371_s24  ;;  %v430_v12 = vmul.f32 %v418_v7, %v403_v5  ;;  %v1378_v7 = vmov 0.0|0.0  }
 0x1d0   :  { %803 = vmatprep.subr.bf16.mxu1 %v441_v4  ;;  %v431_v15 = vmul.f32 %v419_v9, %v405_v6  ;;  %v1713_v6 = vcombine.low %v1589_v19, %v1589_v19 }
 0x1d1   :  { %804 = vmatpush1.bf16.msra.mxu1 %v440_v3 }
 0x1d2   :  { %v409_v11 = vpop.f32.mrb[10].mxu1 }
 0x1d3   :  { %v436_v13 = vmul.f32 %v424_v8, %v409_v11  ;;  %v411_v14 = vpop.f32.mrb[11].mxu1  ;;  %463 = vrot.lane.b32.xlu1 %v441_v4, %s1371_s24  ;;  %521 = vrot.lane.b32.xlu0 %v440_v3, %s1372_s1 }
 0x1d4   :  { %v437_v16 = vmul.f32 %v425_v10, %v411_v14 }
 0x1d5   :  { %v1563_v17 = vpack.c.bf16 %v436_v13, %v430_v12 }
 0x1d6   :  { %v443_v18 = vpack.c.bf16 %v437_v16, %v431_v15  ;;  %v885_v16 = vld [vmem:[%s1813_s7] sm:$0xff] }
 0x1d7   :  { %493 = vrot.lane.b32.xlu1 %v441_v4, %s1370_s23  ;;  %523 = vrot.lane.b32.xlu0 %v441_v4, %s1372_s1 }
 0x1d8   :  { %450 = vst.msk [vmem:[#allocation2 + $0x28] sm:$0xff] %vm449_vm3, %v443_v18 }
 0x1db   :  { %553 = vrot.lane.b32.xlu1 %v441_v4, %s1373_s0  ;;  %583 = vrot.lane.b32.xlu0 %v441_v4, %s1374_s30 }
 0x1df   :  { %465 = vrot.lane.b32.xlu1 %v1563_v17, %s1371_s24  ;;  %495 = vrot.lane.b32.xlu0 %v1563_v17, %s1370_s23 }
 0x1e3   :  { %551 = vrot.lane.b32.xlu1 %v440_v3, %s1373_s0  ;;  %581 = vrot.lane.b32.xlu0 %v440_v3, %s1374_s30 }
 0x1e7   :  { %525 = vrot.lane.b32.xlu1 %v1563_v17, %s1372_s1  ;;  %555 = vrot.lane.b32.xlu0 %v1563_v17, %s1373_s0 }
 0x1eb   :  { %613 = vrot.lane.b32.xlu1 %v441_v4, %s1375_s9  ;;  %643 = vrot.lane.b32.xlu0 %v441_v4, %s1376_s10 }
 0x1ef   :  { %585 = vrot.lane.b32.xlu1 %v1563_v17, %s1374_s30  ;;  %615 = vrot.lane.b32.xlu0 %v1563_v17, %s1375_s9 }
 0x1f3   :  { %611 = vrot.lane.b32.xlu1 %v440_v3, %s1375_s9  ;;  %641 = vrot.lane.b32.xlu0 %v440_v3, %s1376_s10 }
 0x1f7   :  { %645 = vrot.lane.b32.xlu1 %v1563_v17, %s1376_s10  ;;  %675 = vrot.lane.b32.xlu0 %v1563_v17, %s1377_s2 }
 0x1fb   :  { %673 = vrot.lane.b32.xlu1 %v441_v4, %s1377_s2  ;;  %459 = vrot.lane.b32.xlu0 %v1531_v54, %s1371_s24 }
 0x1ff   :  { %671 = vrot.lane.b32.xlu1 %v440_v3, %s1377_s2  ;;  %489 = vrot.lane.b32.xlu0 %v1531_v54, %s1370_s23 }
 0x203   :  { %519 = vrot.lane.b32.xlu0 %v1531_v54, %s1372_s1  ;;  %457 = vrot.lane.b32.xlu1 %v1529_v53, %s1371_s24 }
 0x207   :  { %549 = vrot.lane.b32.xlu0 %v1531_v54, %s1373_s0  ;;  %487 = vrot.lane.b32.xlu1 %v1529_v53, %s1370_s23 }
 0x20b   :  { %579 = vrot.lane.b32.xlu0 %v1531_v54, %s1374_s30  ;;  %517 = vrot.lane.b32.xlu1 %v1529_v53, %s1372_s1 }
 0x20f   :  { %609 = vrot.lane.b32.xlu0 %v1531_v54, %s1375_s9  ;;  %547 = vrot.lane.b32.xlu1 %v1529_v53, %s1373_s0 }
 0x213   :  { %639 = vrot.lane.b32.xlu0 %v1531_v54, %s1376_s10  ;;  %577 = vrot.lane.b32.xlu1 %v1529_v53, %s1374_s30 }
 0x217   :  { %669 = vrot.lane.b32.xlu0 %v1531_v54, %s1377_s2  ;;  %607 = vrot.lane.b32.xlu1 %v1529_v53, %s1375_s9 }
 0x21b   :  { %467 = vrot.lane.b32.xlu0 %v443_v18, %s1371_s24  ;;  %637 = vrot.lane.b32.xlu1 %v1529_v53, %s1376_s10 }
 0x21f   :  { %527 = vrot.lane.b32.xlu0 %v443_v18, %s1372_s1  ;;  %667 = vrot.lane.b32.xlu1 %v1529_v53, %s1377_s2 }
 0x223   :  { %587 = vrot.lane.b32.xlu0 %v443_v18, %s1374_s30  ;;  %497 = vrot.lane.b32.xlu1 %v443_v18, %s1370_s23 }
 0x227   :  { %647 = vrot.lane.b32.xlu0 %v443_v18, %s1376_s10  ;;  %557 = vrot.lane.b32.xlu1 %v443_v18, %s1373_s0 }
 0x22b   :  { %964 = vrot.lane.b32.xlu0 %v1470_v25, %s1373_s0  ;;  %617 = vrot.lane.b32.xlu1 %v443_v18, %s1375_s9 }
 0x22f   :  { %962 = vrot.lane.b32.xlu0 %v1466_v24, %s1373_s0  ;;  %677 = vrot.lane.b32.xlu1 %v443_v18, %s1377_s2 }
 0x233   :  { %970 = vrot.lane.b32.xlu0 %v1488_v32, %s1373_s0  ;;  %966 = vrot.lane.b32.xlu1 %v1477_v28, %s1373_s0 }
 0x237   :  { %1217 = vperm.xlu0 %1361, %v1214_v21   ;;  %968 = vrot.lane.b32.xlu1 %v1481_v29, %s1373_s0 }
 0x23b   :  { %972 = vrot.lane.b32.xlu1 %v1492_v37, %s1373_s0 }
 0x241   :  { %v1656_v22 = vpop.permute.xlu1 %491  ;;  %v462_v23 = vpop.permute.xlu0 %461 }
 0x245   :  { %v464_v24 = vpop.permute.xlu1 %463  ;;  %v1658_v25 = vpop.permute.xlu0 %521 }
 0x246   :  { %v472_v27 = vsel %vm469_vm5, %v462_v23, %v464_v24 }
 0x249   :  { %v494_v28 = vpop.permute.xlu1 %493  ;;  %v524_v30 = vpop.permute.xlu0 %523 }
 0x24a   :  { %v502_v31 = vsel %vm499_vm6, %v1656_v22, %v494_v28  ;;  %v532_v29 = vsel %vm529_vm7, %v1658_v25, %v524_v30 }
 0x24d   :  { %v554_v32 = vpop.permute.xlu1 %553  ;;  %v584_v33 = vpop.permute.xlu0 %583 }
 0x251   :  { %v1665_v34 = vpop.permute.xlu1 %465  ;;  %v1667_v35 = vpop.permute.xlu0 %495 }
 0x252   :  { %v473_v36 = vsel %vm469_vm5, %v464_v24, %v1665_v34  ;;  %v503_v37 = vsel %vm499_vm6, %v494_v28, %v1667_v35 }
 0x253   :  { %805 = vmatprep.subr.bf16.mxu1 %v473_v36 }
 0x254   :  { %806 = vmatpush1.bf16.msra.mxu1 %v472_v27 }
 0x255   :  { %v1673_v41 = vpop.permute.xlu1 %551  ;;  %v1675_v42 = vpop.permute.xlu0 %581  ;;  %807 = vmatprep.subr.bf16.mxu1 %v503_v37 }
 0x256   :  { %v562_v43 = vsel %vm559_vm8, %v1673_v41, %v554_v32  ;;  %v592_v44 = vsel %vm589_vm9, %v1675_v42, %v584_v33 }
 0x258   :  { %808 = vmatpush1.bf16.msra.mxu1 %v502_v31 }
 0x259   :  { %v1681_v45 = vpop.permute.xlu1 %525  ;;  %v1683_v46 = vpop.permute.xlu0 %555 }
 0x25a   :  { %v533_v47 = vsel %vm529_vm7, %v524_v30, %v1681_v45  ;;  %v563_v48 = vsel %vm559_vm8, %v554_v32, %v1683_v46 }
 0x25b   :  { %809 = vmatprep.subr.bf16.mxu1 %v533_v47 }
 0x25c   :  { %810 = vmatpush1.bf16.msra.mxu1 %v532_v29 }
 0x25d   :  { %v614_v49 = vpop.permute.xlu1 %613  ;;  %v644_v50 = vpop.permute.xlu0 %643  ;;  %811 = vmatprep.subr.bf16.mxu1 %v563_v48  ;;  %v703_v48 = vld [vmem:[#allocation2 + $0x28] sm:$0xff] }
 0x260   :  { %812 = vmatpush1.bf16.msra.mxu1 %v562_v43 }
 0x261   :  { %v1689_v51 = vpop.permute.xlu1 %585  ;;  %v1691_v52 = vpop.permute.xlu0 %615 }
 0x262   :  { %v593_v53 = vsel %vm589_vm9, %v584_v33, %v1689_v51  ;;  %v623_v54 = vsel %vm619_vm10, %v614_v49, %v1691_v52 }
 0x263   :  { %813 = vmatprep.subr.bf16.mxu1 %v593_v53 }
 0x264   :  { %814 = vmatpush1.bf16.msra.mxu1 %v592_v44 }
 0x265   :  { %v612_v55 = vpop.permute.xlu1 %611  ;;  %v642_v56 = vpop.permute.xlu0 %641  ;;  %815 = vmatprep.subr.bf16.mxu1 %v623_v54 }
 0x266   :  { %v622_v57 = vsel %vm619_vm10, %v612_v55, %v614_v49  ;;  %v652_v58 = vsel %vm649_vm11, %v642_v56, %v644_v50 }
 0x268   :  { %816 = vmatpush1.bf16.msra.mxu1 %v622_v57 }
 0x269   :  { %v1699_v59 = vpop.permute.xlu1 %645  ;;  %v1701_v60 = vpop.permute.xlu0 %675 }
 0x26a   :  { %v653_v61 = vsel %vm649_vm11, %v644_v50, %v1699_v59 }
 0x26b   :  { %817 = vmatprep.subr.bf16.mxu1 %v653_v61 }
 0x26c   :  { %818 = vmatpush1.bf16.msra.mxu1 %v652_v58 }
 0x26d   :  { %v674_v62 = vpop.permute.xlu1 %673  ;;  %v460_v63 = vpop.permute.xlu0 %459 }
 0x26e   :  { %v683_v0 = vsel %vm679_vm12, %v674_v62, %v1701_v60  ;;  %v471_v1 = vsel %vm469_vm5, %v460_v63, %v462_v23 }
 0x26f   :  { %764 = vmatprep.subr.bf16.mxu0 %v471_v1  ;;  %819 = vmatprep.subr.bf16.mxu1 %v683_v0 }
 0x271   :  { %v672_v2 = vpop.permute.xlu1 %671  ;;  %v490_v3 = vpop.permute.xlu0 %489 }
 0x272   :  { %v682_v4 = vsel %vm679_vm12, %v672_v2, %v674_v62  ;;  %v501_v5 = vsel %vm499_vm6, %v490_v3, %v1656_v22 }
 0x273   :  { %820 = vmatpush1.bf16.msra.mxu1 %v682_v4 }
 0x274   :  { %1345 = vmatprep.subr.bf16.mxu1 %v1378_v7 }
 0x275   :  { %v520_v8 = vpop.permute.xlu0 %519  ;;  %v458_v9 = vpop.permute.xlu1 %457 }
 0x276   :  { %v531_v10 = vsel %vm529_vm7, %v520_v8, %v1658_v25  ;;  %v470_v11 = vsel %vm469_vm5, %v458_v9, %v460_v63  ;;  %836 = vmatmul.mubr.bf16.vlgmr.msra.gmra.mrb[12].mxu1 %v1713_v6 }
 0x277   :  { %765 = vmatpush1.bf16.msra.mxu0 %v470_v11  ;;  %1347 = vmatpush3.bf16.msra.mxu1 %v1346_v40 }
 0x278   :  { %766 = vmatprep.subr.bf16.mxu0 %v501_v5  ;;  %1326 = vmatprep.mubr.msk.f32.mxu1 %vm1379_vm13, %v1369_v26 }
 0x279   :  { %v550_v12 = vpop.permute.xlu0 %549  ;;  %v488_v13 = vpop.permute.xlu1 %487 }
 0x27a   :  { %v561_v14 = vsel %vm559_vm8, %v550_v12, %v1673_v41  ;;  %v500_v15 = vsel %vm499_vm6, %v488_v13, %v490_v3 }
 0x27b   :  { %767 = vmatpush1.bf16.msra.mxu0 %v500_v15 }
 0x27c   :  { %768 = vmatprep.subr.bf16.mxu0 %v531_v10 }
 0x27d   :  { %v580_v18 = vpop.permute.xlu0 %579  ;;  %v518_v38 = vpop.permute.xlu1 %517 }
 0x27e   :  { %v591_v39 = vsel %vm589_vm9, %v580_v18, %v1675_v42  ;;  %v530_v40 = vsel %vm529_vm7, %v518_v38, %v520_v8  ;;  %1327 = vmatmul.mubr.msk.f32.vlgmr.msra.gmra.mrb[16].mxu1 %vm758_vm4, %v885_v16 }
 0x27f   :  { %769 = vmatpush1.bf16.msra.mxu0 %v530_v40  ;;  %1059 = vmatprep.mubr.f32.mxu1 %v1369_v26 }
 0x280   :  { %770 = vmatprep.subr.bf16.mxu0 %v561_v14 }
 0x281   :  { %v610_v19 = vpop.permute.xlu0 %609  ;;  %v548_v21 = vpop.permute.xlu1 %547 }
 0x282   :  { %v621_v22 = vsel %vm619_vm10, %v610_v19, %v612_v55  ;;  %v560_v23 = vsel %vm559_vm8, %v548_v21, %v550_v12 }
 0x283   :  { %771 = vmatpush1.bf16.msra.mxu0 %v560_v23 }
 0x284   :  { %772 = vmatprep.subr.bf16.mxu0 %v591_v39 }
 0x285   :  { %v640_v24 = vpop.permute.xlu0 %639  ;;  %v578_v25 = vpop.permute.xlu1 %577 }
 0x286   :  { %v651_v27 = vsel %vm649_vm11, %v640_v24, %v642_v56  ;;  %v590_v28 = vsel %vm589_vm9, %v578_v25, %v580_v18 }
 0x287   :  { %773 = vmatpush1.bf16.msra.mxu0 %v590_v28 }
 0x288   :  { %774 = vmatprep.subr.bf16.mxu0 %v621_v22 }
 0x289   :  { %v670_v30 = vpop.permute.xlu0 %669  ;;  %v608_v31 = vpop.permute.xlu1 %607 }
 0x28a   :  { %v681_v29 = vsel %vm679_vm12, %v670_v30, %v672_v2  ;;  %v620_v32 = vsel %vm619_vm10, %v608_v31, %v610_v19 }
 0x28b   :  { %775 = vmatpush1.bf16.msra.mxu0 %v620_v32 }
 0x28c   :  { %776 = vmatprep.subr.bf16.mxu0 %v651_v27 }
 0x28d   :  { %v468_v33 = vpop.permute.xlu0 %467  ;;  %v638_v36 = vpop.permute.xlu1 %637 }
 0x28e   :  { %v474_v37 = vsel %vm469_vm5, %v1665_v34, %v468_v33  ;;  %486 = vst.msk [vmem:[#allocation2 + $0x58] sm:$0xff] %vm449_vm3, %v468_v33  ;;  %v650_v41 = vsel %vm649_vm11, %v638_v36, %v640_v24 }
 0x28f   :  { %777 = vmatpush1.bf16.msra.mxu0 %v650_v41 }
 0x290   :  { %778 = vmatprep.subr.bf16.mxu0 %v681_v29 }
 0x291   :  { %v528_v42 = vpop.permute.xlu0 %527  ;;  %v668_v43 = vpop.permute.xlu1 %667 }
 0x292   :  { %v534_v44 = vsel %vm529_vm7, %v1681_v45, %v528_v42  ;;  %546 = vst.msk [vmem:[#allocation2 + $0xb8] sm:$0xff] %vm449_vm3, %v528_v42  ;;  %v680_v47 = vsel %vm679_vm12, %v668_v43, %v670_v30 }
 0x293   :  { %779 = vmatpush1.bf16.msra.mxu0 %v680_v47 }
 0x294   :  { %844 = vmatprep.subr.bf16.mxu0 %v703_v48 }
 0x295   :  { %v588_v49 = vpop.permute.xlu0 %587  ;;  %v498_v34 = vpop.permute.xlu1 %497  ;;  %v709_v45 = vld [vmem:[#allocation2 + $0x58] sm:$0xff] }
 0x296   :  { %v594_v50 = vsel %vm589_vm9, %v1689_v51, %v588_v49  ;;  %606 = vst.msk [vmem:[#allocation2 + $0x118] sm:$0xff] %vm449_vm3, %v588_v49  ;;  %v504_v53 = vsel %vm499_vm6, %v1667_v35, %v498_v34  ;;  %516 = vst.msk [vmem:[#allocation2 + $0x88] sm:$0xff] %vm449_vm3, %v498_v34  ;;  %795 = vmatmul.mubr.bf16.vlgmr.msra.gmra.mrb[4].mxu0 %v1713_v6 }
 0x297   :  { %845 = vmatpush1.bf16.msra.mxu0 %v1563_v17  ;;  %1279 = vmatprep.mubr.msk.bf16.mxu0 %vm758_vm4, %v1595_v20 }
 0x298   :  { %846 = vmatprep.subr.bf16.mxu0 %v709_v45 }
 0x299   :  { %v648_v54 = vpop.permute.xlu0 %647  ;;  %v558_v55 = vpop.permute.xlu1 %557  ;;  %v721_v20 = vld [vmem:[#allocation2 + $0xb8] sm:$0xff] }
 0x29a   :  { %v654_v51 = vsel %vm649_vm11, %v1699_v59, %v648_v54  ;;  %666 = vst.msk [vmem:[#allocation2 + $0x178] sm:$0xff] %vm449_vm3, %v648_v54  ;;  %v564_v35 = vsel %vm559_vm8, %v1683_v46, %v558_v55  ;;  %576 = vst.msk [vmem:[#allocation2 + $0xe8] sm:$0xff] %vm449_vm3, %v558_v55 }
 0x29b   :  { %847 = vmatpush1.bf16.msra.mxu0 %v474_v37 }
 0x29d   :  { %v618_v56 = vpop.permute.xlu1 %617  ;;  %v715_v17 = vld [vmem:[#allocation2 + $0x88] sm:$0xff]  ;;  %v733_v61 = vld [vmem:[#allocation2 + $0x118] sm:$0xff] }
 0x29e   :  { %v624_v57 = vsel %vm619_vm10, %v1691_v52, %v618_v56  ;;  %636 = vst.msk [vmem:[#allocation2 + $0x148] sm:$0xff] %vm449_vm3, %v618_v56  ;;  %848 = vmatprep.subr.bf16.mxu0 %v715_v17 }
 0x29f   :  { %849 = vmatpush1.bf16.msra.mxu0 %v504_v53 }
 0x2a0   :  { %850 = vmatprep.subr.bf16.mxu0 %v721_v20 }
 0x2a1   :  { %v678_v58 = vpop.permute.xlu1 %677  ;;  %v727_v46 = vld [vmem:[#allocation2 + $0xe8] sm:$0xff]  ;;  %v745_v62 = vld [vmem:[#allocation2 + $0x178] sm:$0xff] }
 0x2a2   :  { %v684_v59 = vsel %vm679_vm12, %v1701_v60, %v678_v58  ;;  %696 = vst.msk [vmem:[#allocation2 + $0x1a8] sm:$0xff] %vm449_vm3, %v678_v58  ;;  %v965_v60 = vpop.permute.xlu0 %964 }
 0x2a3   :  { %851 = vmatpush1.bf16.msra.mxu0 %v534_v44 }
 0x2a4   :  { %852 = vmatprep.subr.bf16.mxu0 %v727_v46 }
 0x2a5   :  { %v739_v52 = vld [vmem:[#allocation2 + $0x148] sm:$0xff]  ;;  %v967_v2 = vpop.permute.xlu1 %966 }
 0x2a6   :  { %v963_v0 = vpop.permute.xlu0 %962  ;;  %v976_v3 = vsel %vm559_vm8, %v965_v60, %v967_v2 }
 0x2a7   :  { %853 = vmatpush1.bf16.msra.mxu0 %v564_v35  ;;  %v975_v1 = vsel %vm559_vm8, %v963_v0, %v965_v60  ;;  %1281 = vmatprep.subr.msk.mxu1 %vm170_vm1, %v976_v3 }
 0x2a8   :  { %854 = vmatprep.subr.bf16.mxu0 %v733_v61  ;;  %1282 = vmatpush1.msk.msra.mxu1 %vm170_vm1, %v975_v1 }
 0x2a9   :  { %v751_v63 = vld [vmem:[#allocation2 + $0x1a8] sm:$0xff]  ;;  %v969_v5 = vpop.permute.xlu1 %968 }
 0x2aa   :  { %v971_v4 = vpop.permute.xlu0 %970  ;;  %v977_v7 = vsel %vm559_vm8, %v967_v2, %v969_v5 }
 0x2ab   :  { %855 = vmatpush1.bf16.msra.mxu0 %v594_v50  ;;  %v978_v8 = vsel %vm559_vm8, %v969_v5, %v971_v4 }
 0x2ac   :  { %856 = vmatprep.subr.bf16.mxu0 %v739_v52  ;;  %1284 = vmatprep.subr.msk.mxu1 %vm170_vm1, %v978_v8 }
 0x2ad   :  { %v973_v16 = vpop.permute.xlu1 %972 }
 0x2ae   :  { %v979_v18 = vsel %vm559_vm8, %v971_v4, %v973_v16 }
 0x2af   :  { %857 = vmatpush1.bf16.msra.mxu0 %v624_v57 }
 0x2b0   :  { %858 = vmatprep.subr.bf16.mxu0 %v745_v62 }
 0x2b3   :  { %859 = vmatpush1.bf16.msra.mxu0 %v654_v51 }
 0x2b4   :  { %860 = vmatprep.subr.bf16.mxu0 %v751_v63 }
 0x2b6   :  { %v1218_v30 = vpop.permute.xlu0 %1217 }
 0x2b7   :  { %861 = vmatpush1.bf16.msra.mxu0 %v684_v59 }
 0x2ba   :  { %877 = vmatmul.mubr.bf16.vlgmr.msra.gmra.mrb[8].mxu0 %v1713_v6 }
 0x349   :  { %v837_v6 = vpop.f32.mrb[12].mxu1 }
 0x34a   :  { %v839_v9 = vpop.f32.mrb[13].mxu1 }
 0x34b   :  { %v841_v10 = vpop.f32.mrb[14].mxu1 }
 0x34c   :  { %v842_v11 = vpop.f32.mrb[15].mxu1 }
 0x351   :  { %v957_v12 = vpop.f32.mrb[16].mxu1 }
 0x352   :  { %v958_v13 = vadd.f32 1e-08, %v957_v12  ;;  %v1328_v14 = vpop.f32.mrb[17].mxu1 }
 0x354   :  { %1365 = vrsqrt.f32 %v958_v13 }
 0x35e   :  { %v1366_v15 = vpop.eup %1365 }
 0x35f   :  { %1283 = vmatmul.mubr.msk.f32.vlgmr.msra.gmra.mrb[18].mxu1 %vm163_vm2, %v1366_v15 }
 0x360   :  { %1285 = vmatpush1.msk.msra.mxu1 %vm170_vm1, %v977_v7  ;;  %1130 = vmatprep.mubr.f32.mxu1 %v1369_v26 }
 0x361   :  { %1287 = vmatprep.subr.msk.mxu1 %vm170_vm1, %v973_v16 }
 0x363   :  { %1286 = vmatmul.mubr.msk.f32.vlgmr.msra.gmra.mrb[20].mxu1 %vm163_vm2, %v1366_v15 }
 0x364   :  { %1288 = vmatpush1.msk.msra.mxu1 %vm170_vm1, %v979_v18  ;;  %1201 = vmatprep.mubr.f32.mxu1 %v1369_v26 }
 0x367   :  { %1289 = vmatmul.mubr.msk.f32.vlgmr.msra.gmra.mrb[22].mxu1 %vm163_vm2, %v1366_v15 }
 0x369   :  { %v796_v38 = vpop.f32.mrb[4].mxu0 }
 0x36a   :  { %v798_v39 = vpop.f32.mrb[5].mxu0 }
 0x36b   :  { %v800_v40 = vpop.f32.mrb[6].mxu0 }
 0x36c   :  { %v801_v19 = vpop.f32.mrb[7].mxu0 }
 0x38d   :  { %v878_v21 = vpop.f32.mrb[8].mxu0 }
 0x38e   :  { %v880_v22 = vpop.f32.mrb[9].mxu0 }
 0x38f   :  { %v882_v23 = vpop.f32.mrb[10].mxu0 }
 0x390   :  { %v883_v24 = vpop.f32.mrb[11].mxu0 }
 0x432   :  { %v1061_v25 = vpop.f32.mrb[18].mxu1 }
 0x433   :  { %v1208_v27 = vmul.f32 %v1061_v25, %v796_v38  ;;  %v1063_v28 = vpop.f32.mrb[19].mxu1 }
 0x434   :  { %v1209_v31 = vmul.f32 %v1063_v28, %v798_v39 }
 0x435   :  { %v1220_v29 = vadd.f32 %v1218_v30, %v1208_v27 }
 0x436   :  { %v1221_v32 = vadd.f32 %v1218_v30, %v1209_v31  ;;  %v1132_v33 = vpop.f32.mrb[20].mxu1 }
 0x437   :  { %vm1226_vm14 = vcmp.ge.f32.partialorder %v1220_v29, 0.0  ;;  %v1232_v26 = vmul.f32 0.2, %v1220_v29  ;;  %v1210_v36 = vmul.f32 %v1132_v33, %v837_v6  ;;  %v1134_v37 = vpop.f32.mrb[21].mxu1 }
 0x438   :  { %vm1227_vm15 = vcmp.ge.f32.partialorder %v1221_v32, 0.0  ;;  %v1233_v41 = vmul.f32 0.2, %v1221_v32  ;;  %v1211_v42 = vmul.f32 %v1134_v37, %v839_v9 }
 0x439   :  { %v1238_v43 = vsel %vm1226_vm14, %v1220_v29, %v1232_v26  ;;  %v1222_v44 = vadd.f32 %v1218_v30, %v1210_v36 }
 0x43a   :  { %v1244_v47 = vmul.f32 1.4142135, %v1238_v43  ;;  %v1239_v48 = vsel %vm1227_vm15, %v1221_v32, %v1233_v41  ;;  %v1223_v49 = vadd.f32 %v1218_v30, %v1211_v42  ;;  %v1203_v34 = vpop.f32.mrb[22].mxu1 }
 0x43b   :  { %v1245_v50 = vmul.f32 1.4142135, %v1239_v48  ;;  %vm1228_vm0 = vcmp.ge.f32.partialorder %v1222_v44, 0.0  ;;  %v1234_v53 = vmul.f32 0.2, %v1222_v44  ;;  %v1212_v45 = vmul.f32 %v1203_v34, %v878_v21  ;;  %v1205_v54 = vpop.f32.mrb[23].mxu1 }
 0x43c   :  { %1250 = vst [vmem:[%s1814_s8] sm:$0xff] %v1244_v47  ;;  %vm1229_vm1 = vcmp.ge.f32.partialorder %v1223_v49, 0.0  ;;  %v1235_v55 = vmul.f32 0.2, %v1223_v49  ;;  %v1213_v51 = vmul.f32 %v1205_v54, %v880_v22 }
 0x43d   :  { %1251 = vst [vmem:[%s1814_s8 + $0x8] sm:$0xff] %v1245_v50  ;;  %v1240_v35 = vsel %vm1228_vm0, %v1222_v44, %v1234_v53  ;;  %v1224_v56 = vadd.f32 %v1218_v30, %v1212_v45 }
 0x43e   :  { %v1246_v17 = vmul.f32 1.4142135, %v1240_v35  ;;  %v1241_v57 = vsel %vm1229_vm1, %v1223_v49, %v1235_v55  ;;  %v1225_v20 = vadd.f32 %v1218_v30, %v1213_v51 }
 0x43f   :  { %v1247_v58 = vmul.f32 1.4142135, %v1241_v57  ;;  %vm1230_vm2 = vcmp.ge.f32.partialorder %v1224_v56, 0.0  ;;  %v1236_v59 = vmul.f32 0.2, %v1224_v56 }
 0x440   :  { %1252 = vst [vmem:[%s1814_s8 + $0x10] sm:$0xff] %v1246_v17  ;;  %vm1231_vm4 = vcmp.ge.f32.partialorder %v1225_v20, 0.0  ;;  %v1237_v46 = vmul.f32 0.2, %v1225_v20 }
 0x441   :  { %1253 = vst [vmem:[%s1814_s8 + $0x18] sm:$0xff] %v1247_v58  ;;  %v1242_v61 = vsel %vm1230_vm2, %v1224_v56, %v1236_v59 }
 0x442   :  { %v1248_v52 = vmul.f32 1.4142135, %v1242_v61  ;;  %v1243_v62 = vsel %vm1231_vm4, %v1225_v20, %v1237_v46 }
 0x443   :  { %v1249_v63 = vmul.f32 1.4142135, %v1243_v62 }
 0x444   :  { %1254 = vst [vmem:[%s1814_s8 + $0x20] sm:$0xff] %v1248_v52 }
 0x445   :  { %1255 = vst.msk [vmem:[%s1814_s8 + $0x28] sm:$0xff] %vm449_vm3, %v1249_v63 }

// kernel: _lambda_.17
= control target key start
LH: loop header
LB: loop body
LE: loop exit
PB: predicated region body
PF: predicated region fallthrough
CT: control target
= control target key end

     0   :  { %v497_v0 = vmov 0.0|0.0   ;;  %vm498_vm0 = vmmov 0   ;;  %v499_v4 = vmov 0.0   ;;  %v500_v7 = vmov 0   ;;  %s613_s5 = inlined_call_operand.vmem [shape: f32[64,2], index: 5, kind: input, shape index: {}]   ;;  %s614_s4 = inlined_call_operand.vmem [shape: f32[8,1], index: 4, kind: input, shape index: {}]   ;;  %s615_s6 = inlined_call_operand.vmem [shape: f32[3,1], index: 6, kind: input, shape index: {}]   ;;  %s616_s1 = inlined_call_operand.vmem [shape: f32[2,512], index: 1, kind: input, shape index: {}]   ;;  %s617_s3 = inlined_call_operand.vmem [shape: f32[8,64], index: 3, kind: input, shape index: {}]   ;;  %s618_s0 = inlined_call_operand.vmem [shape: f32[8,512], index: 0, kind: input, shape index: {}]   ;;  %s619_s2 = inlined_call_operand.vmem [shape: bf16[3,8], index: 2, kind: input, shape index: {}]   ;;  %s620_s7 = inlined_call_operand.vmem [shape: f32[3,512], index: 7, kind: input, shape index: {}]   ;;  %s621_s8 = inlined_call_operand.vmem [shape: f32[3,512], index: 8, kind: output, shape index: {}]  }
   0x1   :  { %476 = vmatprep.subr.bf16.mxu0 %v497_v0  ;;  %v31_v1 = vld [vmem:[%s613_s5] sm:$0xff]  ;;  %v32_v2 = vld [vmem:[%s613_s5 + $0x8] sm:$0xff]  ;;  %v33_v3 = vld [vmem:[%s613_s5 + $0x10] sm:$0xff]  ;;  %473 = vmatprep.mubr.msk.f32.mxu0 %vm498_vm0, %v499_v4  ;;  %v125_v10 = vlaneseq  ;;  %v501_v13 = vmov 1983009808   ;;  %vm142_vm1 = vcmask 1041408  }
   0x2   :  { %v477_v5 = vpack.c.bf16 %v32_v2, %v31_v1  ;;  %v34_v6 = vld [vmem:[%s613_s5 + $0x18] sm:$0xff]  ;;  %493 = vset.pattern.permute.xlu0 %v500_v7  ;;  %286 = vmatprep.mubr.f32.mxu1 %v499_v4  ;;  %v39_v9 = vld [vmem:[%s614_s4] sm:$0xff]  ;;  %v36_v12 = vld [vmem:[%s613_s5 + $0x28] sm:$0xff]  ;;  %v123_v14 = vunpack.c.l.s4 %v501_v13  ;;  %vm45_vm2 = vcmask 523264   ;;  %vm138_vm3 = vcmask 15360  }
   0x3   :  { %v480_v8 = vpack.c.bf16 %v34_v6, %v33_v3  ;;  %v35_v11 = vld [vmem:[%s613_s5 + $0x20] sm:$0xff]  ;;  %42 = vperm.xlu0 %493, %v39_v9   ;;  %v126_v16 = vshrl.u32 %v125_v10, 7  ;;  %v37_v19 = vld [vmem:[%s613_s5 + $0x30] sm:$0xff]  ;;  %v38_v20 = vld [vmem:[%s613_s5 + $0x38] sm:$0xff]  ;;  %vm316_vm4 = vcmask 1043456   ;;  %vm312_vm5 = vcmask 64512  }
   0x4   :  { %478 = vmatpush3.bf16.msra.mxu0 %v477_v5  ;;  %v306_v15 = vld [vmem:[%s615_s6] sm:$0x7]  ;;  %v124_v17 = vunpack.c.0.s8 %v123_v14  ;;  %v483_v18 = vpack.c.bf16 %v36_v12, %v35_v11  ;;  %v486_v24 = vpack.c.bf16 %v38_v20, %v37_v19  ;;  %v295_v35 = vld [vmem:[%s618_s0 + $0x10] sm:$0xff]  ;;  %v294_v36 = vld [vmem:[%s618_s0 + $0x8] sm:$0xff] }
   0x5   :  { %479 = vmatprep.subr.bf16.mxu0 %v497_v0  ;;  %v119_v22 = vld [vmem:[%s616_s1] sm:$0xff]  ;;  %v296_v37 = vld [vmem:[%s618_s0 + $0x18] sm:$0xff] }
   0x6   :  { %v127_v21 = vsub.s32 %v124_v17, %v126_v16  ;;  %v30_v26 = vld [vmem:[%s617_s3] sm:$0xff]  ;;  %v121_v27 = vcombine.high %v119_v22, %v119_v22 }
   0x7   :  { %309 = vperm.xlu0 %493, %v306_v15   ;;  %v293_v34 = vld [vmem:[%s618_s0] sm:$0xff] }
   0x8   :  { %481 = vmatpush3.bf16.msra.mxu0 %v480_v8  ;;  %v128_v23 = vrot.slane %v119_v22, %v127_v21  ;;  %v135_v28 = vrot.slane %v121_v27, %v127_v21  ;;  %v301_v51 = vld [vmem:[%s619_s2] sm:$0x3] }
   0x9   :  { %482 = vmatprep.subr.bf16.mxu0 %v497_v0  ;;  %v411_v53 = vld [vmem:[%s620_s7] sm:$0x77] }
   0xa   :  { %v136_v25 = vcombine.high %v128_v23, %v128_v23  ;;  %v137_v29 = vcombine.high %v135_v28, %v135_v28  ;;  %v415_v56 = vcombine.high %v411_v53, %v411_v53 }
   0xc   :  { %484 = vmatpush3.bf16.msra.mxu0 %v483_v18  ;;  %441 = vmatprep.subr.msk.mxu1 %vm142_vm1, %v137_v29 }
   0xd   :  { %485 = vmatprep.subr.bf16.mxu0 %v497_v0  ;;  %442 = vmatpush1.msk.msra.mxu1 %vm142_vm1, %v135_v28  ;;  %v412_v0 = vld [vmem:[%s620_s7 + $0x8] sm:$0x77] }
   0xe   :  { %v416_v3 = vcombine.high %v412_v0, %v412_v0 }
  0x10   :  { %487 = vmatpush3.bf16.msra.mxu0 %v486_v24 }
  0x11   :  { %438 = vmatprep.subr.msk.mxu0 %vm142_vm1, %v136_v25 }
  0x13   :  { %474 = vmatmul.mubr.msk.f32.vlgmr.msra.gmra.mrb[0].mxu0 %vm45_vm2, %v30_v26 }
  0x14   :  { %439 = vmatpush1.msk.msra.mxu0 %vm142_vm1, %v128_v23  ;;  %215 = vmatprep.mubr.f32.mxu0 %v499_v4 }
  0x82   :  { %v43_v30 = vpop.permute.xlu0 %42 }
  0x86   :  { %v310_v54 = vpop.permute.xlu0 %309 }
  0xe6   :  { %v115_v31 = vpop.f32.mrb[0].mxu0 }
  0xe7   :  { %v116_v32 = vadd.f32 %v115_v31, %v43_v30  ;;  %v475_v33 = vpop.f32.mrb[1].mxu0 }
  0xe9   :  { %440 = vmatmul.mubr.msk.f32.vlgmr.msra.gmra.mrb[2].mxu0 %vm138_vm3, %v116_v32  ;;  %443 = vmatmul.mubr.msk.f32.vlgmr.msra.gmra.mrb[0].mxu1 %vm138_vm3, %v116_v32 }
  0xea   :  { %361 = vmatprep.mubr.bf16.mxu1 %v500_v7 }
 0x1bc   :  { %v217_v38 = vpop.f32.mrb[2].mxu0  ;;  %v288_v39 = vpop.f32.mrb[0].mxu1 }
 0x1bd   :  { %v297_v40 = vmul.f32 %v293_v34, %v217_v38  ;;  %v219_v41 = vpop.f32.mrb[3].mxu0  ;;  %v290_v42 = vpop.f32.mrb[1].mxu1  ;;  %v299_v43 = vmul.f32 %v295_v35, %v288_v39 }
 0x1be   :  { %v298_v44 = vmul.f32 %v294_v36, %v219_v41  ;;  %v300_v45 = vmul.f32 %v296_v37, %v290_v42 }
 0x1bf   :  { %v302_v46 = vpack.c.bf16 %v297_v40, %v297_v40  ;;  %v304_v49 = vpack.c.bf16 %v299_v43, %v299_v43 }
 0x1c0   :  { %v303_v47 = vpack.c.bf16 %v298_v44, %v298_v44  ;;  %v305_v50 = vpack.c.bf16 %v300_v45, %v300_v45 }
 0x1c1   :  { %v318_v48 = vsel %vm316_vm4, %v302_v46, 0  ;;  %v324_v52 = vsel %vm316_vm4, %v304_v49, 0 }
 0x1c2   :  { %444 = vmatprep.subr.msk.bf16.mxu1 %vm316_vm4, %v303_v47 }
 0x1c3   :  { %330 = vmatpush1.bf16.msra.mxu1 %v318_v48 }
 0x1c4   :  { %446 = vmatprep.subr.msk.bf16.mxu1 %vm316_vm4, %v305_v50 }
 0x1c6   :  { %445 = vmatmul.mubr.msk.bf16.vlgmr.msra.gmra.mrb[4].mxu1 %vm312_vm5, %v301_v51 }
 0x1c7   :  { %371 = vmatpush1.bf16.msra.mxu1 %v324_v52  ;;  %402 = vmatprep.mubr.bf16.mxu1 %v500_v7 }
 0x1ce   :  { %447 = vmatmul.mubr.msk.bf16.vlgmr.msra.gmra.mrb[8].mxu1 %vm312_vm5, %v301_v51 }
 0x299   :  { %v363_v55 = vpop.f32.mrb[4].mxu1 }
 0x29a   :  { %v364_v57 = vadd.f32 %v363_v55, %v310_v54  ;;  %v365_v58 = vpop.f32.mrb[5].mxu1 }
 0x29b   :  { %v366_v59 = vadd.f32 %v365_v58, %v310_v54  ;;  %v367_v60 = vpop.f32.mrb[6].mxu1 }
 0x29c   :  { %v419_v61 = vadd.f32 %v411_v53, %v364_v57  ;;  %v368_v62 = vpop.f32.mrb[7].mxu1 }
 0x29d   :  { %v420_v63 = vadd.f32 %v415_v56, %v366_v59 }
 0x29f   :  { %v427_v1 = vcombine.low %v419_v61, %v420_v63 }
 0x2a1   :  { %431 = vst [vmem:[%s621_s8] sm:$0x77] %v427_v1  ;;  %v404_v2 = vpop.f32.mrb[8].mxu1 }
 0x2a2   :  { %v405_v4 = vadd.f32 %v404_v2, %v310_v54  ;;  %v406_v5 = vpop.f32.mrb[9].mxu1 }
 0x2a3   :  { %v407_v6 = vadd.f32 %v406_v5, %v310_v54  ;;  %v408_v7 = vpop.f32.mrb[10].mxu1 }
 0x2a4   :  { %v421_v8 = vadd.f32 %v412_v0, %v405_v4  ;;  %v409_v9 = vpop.f32.mrb[11].mxu1 }
 0x2a5   :  { %v422_v10 = vadd.f32 %v416_v3, %v407_v6 }
 0x2a7   :  { %v428_v11 = vcombine.low %v421_v8, %v422_v10 }
 0x2a9   :  { %432 = vst [vmem:[%s621_s8 + $0x8] sm:$0x77] %v428_v11 }

// kernel: _lambda_.16
= control target key start
LH: loop header
LB: loop body
LE: loop exit
PB: predicated region body
PF: predicated region fallthrough
CT: control target
= control target key end

     0   :  { %v1414_v0 = vmov 0.0|0.0   ;;  %vm1415_vm0 = vmmov 0   ;;  %v1416_v4 = vmov 0.0   ;;  %v1417_v7 = vmov 0   ;;  %s1419_s15 = smov 126   ;;  %s1420_s16 = smov 127   ;;  %s1796_s5 = inlined_call_operand.vmem [shape: f32[64,2], index: 5, kind: input, shape index: {}]   ;;  %s1797_s4 = inlined_call_operand.vmem [shape: f32[8,1], index: 4, kind: input, shape index: {}]   ;;  %s1798_s3 = inlined_call_operand.vmem [shape: f32[8,64], index: 3, kind: input, shape index: {}]   ;;  %s1799_s1 = inlined_call_operand.vmem [shape: f32[2,686], index: 1, kind: input, shape index: {}]   ;;  %s1800_s0 = inlined_call_operand.vmem [shape: f32[8,686], index: 0, kind: input, shape index: {}]   ;;  %s1801_s2 = inlined_call_operand.vmem [shape: bf16[8,72], index: 2, kind: input, shape index: {}]   ;;  %s1802_s7 = inlined_call_operand.vmem [shape: f32[8,8], index: 7, kind: input, shape index: {}]   ;;  %s1803_s6 = inlined_call_operand.vmem [shape: f32[8,1], index: 6, kind: input, shape index: {}]   ;;  %s1804_s8 = inlined_call_operand.vmem [shape: f32[8,648], index: 8, kind: output, shape index: {}]  }
   0x1   :  { %1370 = vmatprep.subr.bf16.mxu0 %v1414_v0  ;;  %v31_v1 = vld [vmem:[%s1796_s5] sm:$0xff]  ;;  %v32_v2 = vld [vmem:[%s1796_s5 + $0x8] sm:$0xff]  ;;  %v33_v3 = vld [vmem:[%s1796_s5 + $0x10] sm:$0xff]  ;;  %1362 = vmatprep.mubr.msk.f32.mxu0 %vm1415_vm0, %v1416_v4  ;;  %vm45_vm1 = vcmask 523264   ;;  %v1418_v17 = vmov 1983009808   ;;  %v127_v19 = vlaneseq }
   0x2   :  { %v1371_v5 = vpack.c.bf16 %v32_v2, %v31_v1  ;;  %v34_v6 = vld [vmem:[%s1796_s5 + $0x18] sm:$0xff]  ;;  %1395 = vset.pattern.permute.xlu0 %v1417_v7  ;;  %229 = vmatprep.mubr.f32.mxu1 %v1416_v4  ;;  %v39_v9 = vld [vmem:[%s1797_s4] sm:$0xff]  ;;  %v36_v11 = vld [vmem:[%s1796_s5 + $0x28] sm:$0xff]  ;;  %v125_v18 = vunpack.c.l.s4 %v1418_v17  ;;  %vm152_vm2 = vcmask 1041408   ;;  %vm148_vm3 = vcmask 15360   ;;  %s1422_s17 = smov 109  }
   0x3   :  { %1396 = vset.pattern.permute.xlu1 %v1417_v7  ;;  %v1374_v8 = vpack.c.bf16 %v34_v6, %v33_v3  ;;  %v35_v10 = vld [vmem:[%s1796_s5 + $0x20] sm:$0xff]  ;;  %42 = vperm.xlu0 %1395, %v39_v9   ;;  %v37_v13 = vld [vmem:[%s1796_s5 + $0x30] sm:$0xff]  ;;  %v38_v14 = vld [vmem:[%s1796_s5 + $0x38] sm:$0xff]  ;;  %v128_v21 = vshrl.u32 %v127_v19, 7  ;;  %vm416_vm4 = vcmask 1043456   ;;  %vm417_vm5 = vcmask 64516  }
   0x4   :  { %1372 = vmatpush3.bf16.msra.mxu0 %v1371_v5  ;;  %v1377_v12 = vpack.c.bf16 %v36_v11, %v35_v10  ;;  %v1380_v15 = vpack.c.bf16 %v38_v14, %v37_v13  ;;  %v30_v16 = vld [vmem:[%s1798_s3] sm:$0xff]  ;;  %v126_v20 = vunpack.c.0.s8 %v125_v18  ;;  %v1532_v30 = vld.sshfl [vmem:[%s1799_s1 + $0x8] sm:$0x33 pattern:$0x76325410]  ;;  %v380_v41 = vld [vmem:[%s1800_s0 + $0x10] sm:$0xff] }
   0x5   :  { %1373 = vmatprep.subr.bf16.mxu0 %v1414_v0  ;;  %v119_v23 = vld [vmem:[%s1799_s1] sm:$0xff]  ;;  %v1538_v34 = vcombine.high %v1532_v30, %v1532_v30  ;;  %v379_v36 = vld [vmem:[%s1800_s0 + $0x8] sm:$0xff]  ;;  %v381_v42 = vld [vmem:[%s1800_s0 + $0x18] sm:$0xff]  ;;  %s1423_s18 = smov 108   ;;  %s1424_s19 = smov 92   ;;  %vm452_vm7 = vcmask 1031168  }
   0x6   :  { %v129_v22 = vsub.s32 %v126_v20, %v128_v21  ;;  %v123_v25 = vcombine.high %v119_v23, %v119_v23  ;;  %v378_v35 = vld [vmem:[%s1800_s0] sm:$0xff]  ;;  %v383_v49 = vld [vmem:[%s1800_s0 + $0x28] sm:$0xff]  ;;  %vm1580_vm6 = vmor %vm417_vm5, %vm416_vm4  ;;  %s1425_s20 = smov 91   ;;  %s1426_s21 = smov 90   ;;  %vm473_vm8 = vcmask 900096   ;;  %vm431_vm9 = vcmask 1039360  }
   0x7   :  { %v382_v48 = vld [vmem:[%s1800_s0 + $0x20] sm:$0xff]  ;;  %s1421_s0 = smov 110   ;;  %vm494_vm10 = vcmask 891904   ;;  %vm515_vm11 = vcmask 883712   ;;  %vm536_vm12 = vcmask 752640   ;;  %vm557_vm13 = vcmask 744448  }
   0x8   :  { %1375 = vmatpush3.bf16.msra.mxu0 %v1374_v8  ;;  %v1511_v24 = vrot.slane %v119_v23, %v129_v22  ;;  %v1517_v27 = vrot.slane %v123_v25, %v129_v22  ;;  %vm578_vm14 = vcmask 736256   ;;  %vm752_vm15 = vcmask 588800  }
   0x9   :  { %1376 = vmatprep.subr.bf16.mxu0 %v1414_v0 }
   0xa   :  { %v1515_v26 = vcombine.high %v1511_v24, %v1511_v24  ;;  %v1525_v28 = vcombine.high %v1517_v27, %v1517_v27 }
   0xc   :  { %1378 = vmatpush3.bf16.msra.mxu0 %v1377_v12  ;;  %1274 = vmatprep.subr.msk.mxu1 %vm152_vm2, %v1515_v26 }
   0xd   :  { %1379 = vmatprep.subr.bf16.mxu0 %v1414_v0  ;;  %1275 = vmatpush1.msk.msra.mxu1 %vm152_vm2, %v1511_v24 }
   0xe   :  { %1277 = vmatprep.subr.msk.mxu1 %vm152_vm2, %v1525_v28 }
  0x10   :  { %1381 = vmatpush3.bf16.msra.mxu0 %v1380_v15 }
  0x13   :  { %1363 = vmatmul.mubr.msk.f32.vlgmr.msra.gmra.mrb[0].mxu0 %vm45_vm1, %v30_v16 }
  0x14   :  { %847 = vmatprep.mubr.bf16.mxu0 %v1417_v7 }
  0x82   :  { %v43_v29 = vpop.permute.xlu0 %42 }
  0xe6   :  { %v115_v31 = vpop.f32.mrb[0].mxu0 }
  0xe7   :  { %v1534_v32 = vadd.f32 %v115_v31, %v43_v29  ;;  %v1364_v33 = vpop.f32.mrb[1].mxu0 }
  0xe9   :  { %1276 = vmatmul.mubr.msk.f32.vlgmr.msra.gmra.mrb[0].mxu1 %vm148_vm3, %v1534_v32 }
  0xea   :  { %1278 = vmatpush1.msk.msra.mxu1 %vm152_vm2, %v1517_v27  ;;  %300 = vmatprep.mubr.f32.mxu1 %v1416_v4 }
  0xeb   :  { %1280 = vmatprep.subr.msk.mxu1 %vm152_vm2, %v1538_v34 }
  0xed   :  { %1279 = vmatmul.mubr.msk.f32.vlgmr.msra.gmra.mrb[2].mxu1 %vm148_vm3, %v1534_v32 }
  0xee   :  { %1281 = vmatpush1.msk.msra.mxu1 %vm152_vm2, %v1532_v30  ;;  %371 = vmatprep.mubr.f32.mxu1 %v1416_v4 }
  0xf1   :  { %1282 = vmatmul.mubr.msk.f32.vlgmr.msra.gmra.mrb[4].mxu1 %vm148_vm3, %v1534_v32 }
  0xf2   :  { %806 = vmatprep.mubr.bf16.mxu1 %v1417_v7 }
 0x1bc   :  { %v231_v37 = vpop.f32.mrb[0].mxu1 }
 0x1bd   :  { %v384_v38 = vmul.f32 %v378_v35, %v231_v37  ;;  %v233_v39 = vpop.f32.mrb[1].mxu1 }
 0x1be   :  { %v385_v40 = vmul.f32 %v379_v36, %v233_v39 }
 0x1c0   :  { %v1567_v43 = vpack.c.bf16 %v385_v40, %v384_v38  ;;  %v302_v44 = vpop.f32.mrb[2].mxu1 }
 0x1c1   :  { %v386_v45 = vmul.f32 %v380_v41, %v302_v44  ;;  %v304_v46 = vpop.f32.mrb[3].mxu1 }
 0x1c2   :  { %v387_v47 = vmul.f32 %v381_v42, %v304_v46 }
 0x1c4   :  { %v1575_v50 = vpack.c.bf16 %v387_v47, %v386_v45  ;;  %v373_v51 = vpop.f32.mrb[4].mxu1 }
 0x1c5   :  { %v388_v52 = vmul.f32 %v382_v48, %v373_v51  ;;  %v375_v53 = vpop.f32.mrb[5].mxu1 }
 0x1c6   :  { %v389_v54 = vmul.f32 %v383_v49, %v375_v53  ;;  %444 = vrot.lane.b32.xlu1 %v1575_v50, %s1419_s15  ;;  %422 = vrot.lane.b32.xlu0 %v1575_v50, %s1420_s16 }
 0x1c8   :  { %v1334_v56 = vpack.c.bf16 %v389_v54, %v388_v52 }
 0x1ca   :  { %465 = vrot.lane.b32.xlu1 %v1575_v50, %s1421_s0  ;;  %446 = vrot.lane.b32.xlu0 %v1334_v56, %s1419_s15  ;;  %419 = vst.msk [vmem:[#allocation2 + $0x10] sm:$0xff] %vm1580_vm6, %v1334_v56 }
 0x1ce   :  { %486 = vrot.lane.b32.xlu1 %v1575_v50, %s1422_s17  ;;  %467 = vrot.lane.b32.xlu0 %v1334_v56, %s1421_s0 }
 0x1d2   :  { %424 = vrot.lane.b32.xlu1 %v1334_v56, %s1420_s16  ;;  %488 = vrot.lane.b32.xlu0 %v1334_v56, %s1422_s17 }
 0x1d6   :  { %507 = vrot.lane.b32.xlu1 %v1575_v50, %s1423_s18  ;;  %509 = vrot.lane.b32.xlu0 %v1334_v56, %s1423_s18 }
 0x1da   :  { %528 = vrot.lane.b32.xlu1 %v1575_v50, %s1424_s19  ;;  %530 = vrot.lane.b32.xlu0 %v1334_v56, %s1424_s19 }
 0x1de   :  { %549 = vrot.lane.b32.xlu1 %v1575_v50, %s1425_s20  ;;  %551 = vrot.lane.b32.xlu0 %v1334_v56, %s1425_s20 }
 0x1e2   :  { %570 = vrot.lane.b32.xlu1 %v1575_v50, %s1426_s21  ;;  %572 = vrot.lane.b32.xlu0 %v1334_v56, %s1426_s21 }
 0x1e6   :  { %442 = vrot.lane.b32.xlu0 %v1567_v43, %s1419_s15  ;;  %420 = vrot.lane.b32.xlu1 %v1567_v43, %s1420_s16 }
 0x1ea   :  { %484 = vrot.lane.b32.xlu0 %v1567_v43, %s1422_s17  ;;  %463 = vrot.lane.b32.xlu1 %v1567_v43, %s1421_s0 }
 0x1ee   :  { %526 = vrot.lane.b32.xlu0 %v1567_v43, %s1424_s19  ;;  %505 = vrot.lane.b32.xlu1 %v1567_v43, %s1423_s18 }
 0x1f2   :  { %568 = vrot.lane.b32.xlu0 %v1567_v43, %s1426_s21  ;;  %547 = vrot.lane.b32.xlu1 %v1567_v43, %s1425_s20 }
 0x1f6   :  { %976 = vrot.lane.b32.xlu1 %v1515_v26, %s1422_s17  ;;  %978 = vrot.lane.b32.xlu0 %v1517_v27, %s1422_s17 }
 0x1fa   :  { %974 = vrot.lane.b32.xlu1 %v1511_v24, %s1422_s17  ;;  %980 = vrot.lane.b32.xlu0 %v1525_v28, %s1422_s17 }
 0x1fe   :  { %982 = vrot.lane.b32.xlu1 %v1532_v30, %s1422_s17  ;;  %984 = vrot.lane.b32.xlu0 %v1538_v34, %s1422_s17 }
 0x238   :  { %v1606_v57 = vpop.permute.xlu1 %444  ;;  %v1608_v58 = vpop.permute.xlu0 %422 }
 0x239   :  { %v449_v61 = vrot.slane %v1606_v57, 4  ;;  %v427_v13 = vrot.slane %v1608_v58, 4 }
 0x23c   :  { %v1610_v59 = vpop.permute.xlu1 %465  ;;  %v447_v60 = vpop.permute.xlu0 %446 }
 0x23d   :  { %v450_v62 = vrot.slane %v447_v60, 4  ;;  %v470_v5 = vrot.slane %v1610_v59, 4 }
 0x23f   :  { %v454_v63 = vsel %vm416_vm4, %v449_v61, %v450_v62  ;;  %v456_v0 = vsel %vm452_vm7, %v447_v60, %v450_v62 }
 0x240   :  { %v455_v1 = vsel %vm452_vm7, %v1606_v57, %v454_v63  ;;  %462 = vst.msk [vmem:[#allocation2 + $0x40] sm:$0xff] %vm1580_vm6, %v456_v0  ;;  %v1621_v2 = vpop.permute.xlu1 %486  ;;  %v468_v3 = vpop.permute.xlu0 %467  ;;  %v1709_v57 = vld [vmem:[%s1801_s2] sm:$0xf] }
 0x241   :  { %v471_v6 = vrot.slane %v468_v3, 4  ;;  %v491_v14 = vrot.slane %v1621_v2, 4 }
 0x243   :  { %v475_v8 = vsel %vm416_vm4, %v470_v5, %v471_v6  ;;  %v477_v9 = vsel %vm473_vm8, %v468_v3, %v471_v6 }
 0x244   :  { %v476_v10 = vsel %vm473_vm8, %v1610_v59, %v475_v8  ;;  %483 = vst.msk [vmem:[#allocation2 + $0x58] sm:$0xff] %vm1580_vm6, %v477_v9  ;;  %v425_v11 = vpop.permute.xlu1 %424  ;;  %v489_v12 = vpop.permute.xlu0 %488 }
 0x245   :  { %v428_v15 = vrot.slane %v425_v11, 4  ;;  %v492_v16 = vrot.slane %v489_v12, 4  ;;  %v1295_v31 = vcombine.high %v455_v1, %v476_v10  ;;  %v1294_v38 = vcombine.low %v455_v1, %v476_v10 }
 0x247   :  { %v433_v17 = vsel %vm416_vm4, %v427_v13, %v428_v15  ;;  %v435_v18 = vsel %vm431_vm9, %v425_v11, %v428_v15  ;;  %v496_v19 = vsel %vm416_vm4, %v491_v14, %v492_v16  ;;  %v498_v20 = vsel %vm494_vm10, %v489_v12, %v492_v16 }
 0x248   :  { %v434_v21 = vsel %vm431_vm9, %v1608_v58, %v433_v17  ;;  %441 = vst.msk [vmem:[#allocation2 + $0x28] sm:$0xff] %vm1580_vm6, %v435_v18  ;;  %v497_v22 = vsel %vm494_vm10, %v1621_v2, %v496_v19  ;;  %504 = vst.msk [vmem:[#allocation2 + $0x70] sm:$0xff] %vm1580_vm6, %v498_v20  ;;  %v1650_v23 = vpop.permute.xlu1 %507  ;;  %v510_v24 = vpop.permute.xlu0 %509 }
 0x249   :  { %v512_v25 = vrot.slane %v1650_v23, 4  ;;  %v513_v26 = vrot.slane %v510_v24, 4  ;;  %v1288_v27 = vcombine.low %v1575_v50, %v434_v21  ;;  %v1289_v28 = vcombine.high %v1575_v50, %v434_v21 }
 0x24a   :  { %v898_v21 = vmul.f32 %v1534_v32, %v1534_v32 }
 0x24b   :  { %v517_v29 = vsel %vm416_vm4, %v512_v25, %v513_v26  ;;  %v519_v30 = vsel %vm515_vm11, %v510_v24, %v513_v26  ;;  %815 = vmatprep.subr.bf16.mxu0 %v1289_v28 }
 0x24c   :  { %v518_v33 = vsel %vm515_vm11, %v1650_v23, %v517_v29  ;;  %525 = vst.msk [vmem:[#allocation2 + $0x88] sm:$0xff] %vm1580_vm6, %v519_v30  ;;  %v1663_v34 = vpop.permute.xlu1 %528  ;;  %v531_v35 = vpop.permute.xlu0 %530  ;;  %816 = vmatpush1.bf16.msra.mxu0 %v1288_v27 }
 0x24d   :  { %v533_v36 = vrot.slane %v1663_v34, 4  ;;  %v534_v37 = vrot.slane %v531_v35, 4  ;;  %817 = vmatprep.subr.bf16.mxu0 %v1295_v31  ;;  %v1301_v41 = vcombine.high %v497_v22, %v518_v33  ;;  %v1300_v48 = vcombine.low %v497_v22, %v518_v33 }
 0x24f   :  { %v538_v39 = vsel %vm416_vm4, %v533_v36, %v534_v37  ;;  %v540_v40 = vsel %vm536_vm12, %v531_v35, %v534_v37  ;;  %v897_v37 = vld [vmem:[%s1802_s7] sm:$0xff] }
 0x250   :  { %v539_v42 = vsel %vm536_vm12, %v1663_v34, %v538_v39  ;;  %546 = vst.msk [vmem:[#allocation2 + $0xa0] sm:$0xff] %vm1580_vm6, %v540_v40  ;;  %v1674_v44 = vpop.permute.xlu1 %549  ;;  %v552_v45 = vpop.permute.xlu0 %551  ;;  %818 = vmatpush1.bf16.msra.mxu0 %v1294_v38 }
 0x251   :  { %v554_v46 = vrot.slane %v1674_v44, 4  ;;  %v555_v47 = vrot.slane %v552_v45, 4  ;;  %819 = vmatprep.subr.bf16.mxu0 %v1301_v41 }
 0x253   :  { %v559_v49 = vsel %vm416_vm4, %v554_v46, %v555_v47  ;;  %v561_v50 = vsel %vm557_vm13, %v552_v45, %v555_v47 }
 0x254   :  { %v560_v51 = vsel %vm557_vm13, %v1674_v44, %v559_v49  ;;  %567 = vst.msk [vmem:[#allocation2 + $0xb8] sm:$0xff] %vm1580_vm6, %v561_v50  ;;  %v1685_v52 = vpop.permute.xlu1 %570  ;;  %v573_v53 = vpop.permute.xlu0 %572  ;;  %820 = vmatpush1.bf16.msra.mxu0 %v1300_v48  ;;  %v1398_v49 = vld [vmem:[#allocation2 + $0x10] ss:$24 sps:$4 sm:$0xff]   ;;  %v1403_v50 = vld [vmem:[#allocation2 + $0x44] ss:$24 sps:$4 sm:$0xff]  }
 0x255   :  { %v575_v54 = vrot.slane %v1685_v52, 4  ;;  %v576_v56 = vrot.slane %v573_v53, 4  ;;  %v1306_v60 = vcombine.low %v539_v42, %v560_v51  ;;  %v1307_v62 = vcombine.high %v539_v42, %v560_v51  ;;  %v1401_v51 = vld [vmem:[#allocation2 + $0x40] ss:$24 sps:$4 sm:$0xff]  }
 0x257   :  { %v580_v63 = vsel %vm416_vm4, %v575_v54, %v576_v56  ;;  %v582_v0 = vsel %vm578_vm14, %v573_v53, %v576_v56  ;;  %821 = vmatprep.subr.bf16.mxu0 %v1307_v62  ;;  %v1404_v53 = vld [vmem:[#allocation2 + $0x70] ss:$24 sps:$4 sm:$0xff]  }
 0x258   :  { %v581_v1 = vsel %vm578_vm14, %v1685_v52, %v580_v63  ;;  %588 = vst.msk [vmem:[#allocation2 + $0xd0] sm:$0xff] %vm1580_vm6, %v582_v0  ;;  %v443_v3 = vpop.permute.xlu0 %442  ;;  %v421_v6 = vpop.permute.xlu1 %420  ;;  %822 = vmatpush1.bf16.msra.mxu0 %v1306_v60  ;;  %v1406_v52 = vld [vmem:[#allocation2 + $0x74] ss:$24 sps:$4 sm:$0xff]  }
 0x259   :  { %v448_v8 = vrot.slane %v443_v3, 4  ;;  %v426_v9 = vrot.slane %v421_v6, 4  ;;  %v1313_v10 = vcombine.high %v581_v1, %v581_v1  ;;  %v1312_v11 = vcombine.low %v581_v1, %v581_v1 }
 0x25b   :  { %v451_v12 = vsel %vm416_vm4, %v448_v8, %v449_v61  ;;  %v430_v15 = vsel %vm416_vm4, %v426_v9, %v427_v13  ;;  %1318 = vmatprep.subr.msk.bf16.mxu0 %vm416_vm4, %v1313_v10  ;;  %v763_v55 = vsel %vm416_vm4, %v1312_v11, 0  ;;  %v1407_v60 = vld [vmem:[#allocation2 + $0xa0] ss:$24 sps:$4 sm:$0xff]  }
 0x25c   :  { %v453_v16 = vsel %vm452_vm7, %v443_v3, %v451_v12  ;;  %v432_v17 = vsel %vm431_vm9, %v421_v6, %v430_v15  ;;  %v485_v18 = vpop.permute.xlu0 %484  ;;  %v464_v19 = vpop.permute.xlu1 %463  ;;  %824 = vmatpush1.bf16.msra.mxu0 %v763_v55  ;;  %v1226_v15 = vld [vmem:[%s1803_s6] sm:$0xff] }
 0x25d   :  { %v490_v58 = vrot.slane %v485_v18, 4  ;;  %v469_v61 = vrot.slane %v464_v19, 4  ;;  %v1286_v13 = vcombine.low %v1567_v43, %v432_v17  ;;  %v1287_v20 = vcombine.high %v1567_v43, %v432_v17  ;;  %1365 = vmatprep.subr.mxu0 %v1416_v4  ;;  %1229 = vperm.xlu1 %1396, %v1226_v15  }
 0x25f   :  { %v493_v22 = vsel %vm416_vm4, %v490_v58, %v491_v14  ;;  %v472_v24 = vsel %vm416_vm4, %v469_v61, %v470_v5  ;;  %774 = vmatprep.subr.bf16.mxu1 %v1287_v20  ;;  %1319 = vmatmul.mubr.msk.bf16.vlgmr.msra.gmra.mrb[4].mxu0 %vm752_vm15, %v1709_v57  ;;  %v616_v56 = vld [vmem:[#allocation2 + $0xd0] sm:$0xff] }
 0x260   :  { %v495_v26 = vsel %vm494_vm10, %v485_v18, %v493_v22  ;;  %v474_v43 = vsel %vm473_vm8, %v464_v19, %v472_v24  ;;  %v527_v27 = vpop.permute.xlu0 %526  ;;  %v506_v28 = vpop.permute.xlu1 %505  ;;  %775 = vmatpush1.bf16.msra.mxu1 %v1286_v13  ;;  %1366 = vmatpush3.msra.mxu0 %v898_v21  ;;  %v1315_v62 = vcombine.high %v616_v56, %v616_v56 }
 0x261   :  { %v532_v32 = vrot.slane %v527_v27, 4  ;;  %v511_v2 = vrot.slane %v506_v28, 4  ;;  %v1292_v29 = vcombine.low %v453_v16, %v474_v43  ;;  %v1293_v14 = vcombine.high %v453_v16, %v474_v43  ;;  %1367 = vmatprep.mubr.msk.f32.mxu0 %vm1415_vm0, %v1416_v4 }
 0x262   :  { %vm899_vm0 = vcmask 64512   ;;  %v1314_v63 = vcombine.low %v616_v56, %v616_v56 }
 0x263   :  { %v535_v59 = vsel %vm416_vm4, %v532_v32, %v533_v36  ;;  %v514_v5 = vsel %vm416_vm4, %v511_v2, %v512_v25  ;;  %776 = vmatprep.subr.bf16.mxu1 %v1293_v14 }
 0x264   :  { %v537_v30 = vsel %vm536_vm12, %v527_v27, %v535_v59  ;;  %v516_v31 = vsel %vm515_vm11, %v506_v28, %v514_v5  ;;  %v569_v33 = vpop.permute.xlu0 %568  ;;  %v548_v35 = vpop.permute.xlu1 %547  ;;  %777 = vmatpush1.bf16.msra.mxu1 %v1292_v29  ;;  %v769_v0 = vsel %vm416_vm4, %v1314_v63, 0 }
 0x265   :  { %v574_v34 = vrot.slane %v569_v33, 4  ;;  %v553_v38 = vrot.slane %v548_v35, 4  ;;  %v1298_v36 = vcombine.low %v495_v26, %v516_v31  ;;  %v1299_v39 = vcombine.high %v495_v26, %v516_v31 }
 0x267   :  { %v577_v23 = vsel %vm416_vm4, %v574_v34, %v575_v54  ;;  %v556_v25 = vsel %vm416_vm4, %v553_v38, %v554_v46  ;;  %778 = vmatprep.subr.bf16.mxu1 %v1299_v39  ;;  %1368 = vmatmul.mubr.msk.f32.vlgmr.msra.gmra.mrb[2].mxu0 %vm899_vm0, %v897_v37  ;;  %v1400_v46 = vld [vmem:[#allocation2 + $0x14] ss:$24 sps:$4 sm:$0xff]   ;;  %v1409_v54 = vld [vmem:[#allocation2 + $0xa4] ss:$24 sps:$4 sm:$0xff]  }
 0x268   :  { %v579_v40 = vsel %vm578_vm14, %v569_v33, %v577_v23  ;;  %v558_v41 = vsel %vm557_vm13, %v548_v35, %v556_v25  ;;  %779 = vmatpush1.bf16.msra.mxu1 %v1298_v36  ;;  %1071 = vmatprep.mubr.f32.mxu0 %v1416_v4  ;;  %v979_v1 = vpop.permute.xlu0 %978 }
 0x269   :  { %v1304_v42 = vcombine.low %v537_v30, %v558_v41  ;;  %v1305_v45 = vcombine.high %v537_v30, %v558_v41  ;;  %v1311_v47 = vcombine.high %v579_v40, %v579_v40  ;;  %v1310_v48 = vcombine.low %v579_v40, %v579_v40 }
 0x26b   :  { %780 = vmatprep.subr.bf16.mxu1 %v1305_v45  ;;  %v757_v44 = vsel %vm416_vm4, %v1310_v48, 0 }
 0x26c   :  { %781 = vmatpush1.bf16.msra.mxu1 %v1304_v42  ;;  %v981_v8 = vpop.permute.xlu0 %980 }
 0x26d   :  { %1316 = vmatprep.subr.msk.bf16.mxu1 %vm416_vm4, %v1311_v47  ;;  %v989_v10 = vsel %vm494_vm10, %v979_v1, %v981_v8 }
 0x270   :  { %783 = vmatpush1.bf16.msra.mxu1 %v757_v44  ;;  %v985_v22 = vpop.permute.xlu0 %984 }
 0x271   :  { %856 = vmatprep.subr.bf16.mxu1 %v1400_v46 }
 0x273   :  { %1317 = vmatmul.mubr.msk.bf16.vlgmr.msra.gmra.mrb[8].mxu1 %vm752_vm15, %v1709_v57 }
 0x274   :  { %857 = vmatpush1.bf16.msra.mxu1 %v1398_v49  ;;  %888 = vmatprep.mubr.bf16.mxu1 %v1417_v7  ;;  %v977_v7 = vpop.permute.xlu1 %976 }
 0x275   :  { %858 = vmatprep.subr.bf16.mxu1 %v1403_v50  ;;  %v988_v3 = vsel %vm494_vm10, %v977_v7, %v979_v1 }
 0x276   :  { %1323 = vmatprep.subr.msk.mxu0 %vm152_vm2, %v988_v3 }
 0x278   :  { %859 = vmatpush1.bf16.msra.mxu1 %v1401_v51  ;;  %v975_v6 = vpop.permute.xlu1 %974 }
 0x279   :  { %860 = vmatprep.subr.bf16.mxu1 %v1406_v52  ;;  %v987_v9 = vsel %vm494_vm10, %v975_v6, %v977_v7 }
 0x27a   :  { %1324 = vmatpush1.msk.msra.mxu0 %vm152_vm2, %v987_v9 }
 0x27c   :  { %861 = vmatpush1.bf16.msra.mxu1 %v1404_v53  ;;  %v983_v11 = vpop.permute.xlu1 %982 }
 0x27d   :  { %862 = vmatprep.subr.bf16.mxu1 %v1409_v54  ;;  %v990_v12 = vsel %vm494_vm10, %v981_v8, %v983_v11  ;;  %v991_v26 = vsel %vm494_vm10, %v983_v11, %v985_v22 }
 0x27e   :  { %1326 = vmatprep.subr.msk.mxu0 %vm152_vm2, %v990_v12 }
 0x280   :  { %863 = vmatpush1.bf16.msra.mxu1 %v1407_v60 }
 0x281   :  { %1320 = vmatprep.subr.msk.bf16.mxu1 %vm416_vm4, %v1315_v62 }
 0x284   :  { %865 = vmatpush1.bf16.msra.mxu1 %v769_v0 }
 0x287   :  { %1321 = vmatmul.mubr.msk.bf16.vlgmr.msra.gmra.mrb[12].mxu1 %vm752_vm15, %v1709_v57 }
 0x2dc   :  { %v1230_v29 = vpop.permute.xlu1 %1229 }
 0x332   :  { %v849_v55 = vpop.f32.mrb[4].mxu0 }
 0x333   :  { %v851_v16 = vpop.f32.mrb[5].mxu0 }
 0x334   :  { %v853_v17 = vpop.f32.mrb[6].mxu0 }
 0x335   :  { %v854_v18 = vpop.f32.mrb[7].mxu0 }
 0x33a   :  { %v969_v19 = vpop.f32.mrb[2].mxu0 }
 0x33b   :  { %v970_v57 = vadd.f32 1e-08, %v969_v19  ;;  %v1369_v58 = vpop.f32.mrb[3].mxu0 }
 0x33d   :  { %1412 = vrsqrt.f32 %v970_v57 }
 0x346   :  { %v808_v61 = vpop.f32.mrb[8].mxu1 }
 0x347   :  { %v1413_v13 = vpop.eup %1412  ;;  %v810_v20 = vpop.f32.mrb[9].mxu1 }
 0x348   :  { %1325 = vmatmul.mubr.msk.f32.vlgmr.msra.gmra.mrb[8].mxu0 %vm148_vm3, %v1413_v13  ;;  %v812_v21 = vpop.f32.mrb[10].mxu1 }
 0x349   :  { %1327 = vmatpush1.msk.msra.mxu0 %vm152_vm2, %v989_v10  ;;  %1142 = vmatprep.mubr.f32.mxu0 %v1416_v4  ;;  %v813_v24 = vpop.f32.mrb[11].mxu1 }
 0x34a   :  { %1329 = vmatprep.subr.msk.mxu0 %vm152_vm2, %v985_v22 }
 0x34c   :  { %1328 = vmatmul.mubr.msk.f32.vlgmr.msra.gmra.mrb[10].mxu0 %vm148_vm3, %v1413_v13 }
 0x34d   :  { %1330 = vmatpush1.msk.msra.mxu0 %vm152_vm2, %v991_v26  ;;  %1213 = vmatprep.mubr.f32.mxu0 %v1416_v4 }
 0x350   :  { %1331 = vmatmul.mubr.msk.f32.vlgmr.msra.gmra.mrb[12].mxu0 %vm148_vm3, %v1413_v13 }
 0x35a   :  { %v890_v43 = vpop.f32.mrb[12].mxu1 }
 0x35b   :  { %v892_v27 = vpop.f32.mrb[13].mxu1 }
 0x35c   :  { %v894_v28 = vpop.f32.mrb[14].mxu1 }
 0x35d   :  { %v895_v32 = vpop.f32.mrb[15].mxu1 }
 0x41b   :  { %v1073_v2 = vpop.f32.mrb[8].mxu0 }
 0x41c   :  { %v1220_v14 = vmul.f32 %v1073_v2, %v808_v61  ;;  %v1075_v59 = vpop.f32.mrb[9].mxu0 }
 0x41d   :  { %v1221_v5 = vmul.f32 %v1075_v59, %v810_v20 }
 0x41e   :  { %v1232_v30 = vadd.f32 %v1230_v29, %v1220_v14 }
 0x41f   :  { %v1233_v31 = vadd.f32 %v1230_v29, %v1221_v5  ;;  %v1144_v33 = vpop.f32.mrb[10].mxu0 }
 0x420   :  { %vm1238_vm1 = vcmp.ge.f32.partialorder %v1232_v30, 0.0  ;;  %v1244_v35 = vmul.f32 0.2, %v1232_v30  ;;  %v1222_v37 = vmul.f32 %v1144_v33, %v849_v55  ;;  %v1146_v34 = vpop.f32.mrb[11].mxu0 }
 0x421   :  { %vm1239_vm2 = vcmp.ge.f32.partialorder %v1233_v31, 0.0  ;;  %v1245_v4 = vmul.f32 0.2, %v1233_v31  ;;  %v1223_v38 = vmul.f32 %v1146_v34, %v851_v16 }
 0x422   :  { %v1250_v36 = vsel %vm1238_vm1, %v1232_v30, %v1244_v35  ;;  %v1234_v39 = vadd.f32 %v1230_v29, %v1222_v37 }
 0x423   :  { %v1251_v23 = vsel %vm1239_vm2, %v1233_v31, %v1245_v4  ;;  %v1256_v25 = vmul.f32 1.4142135, %v1250_v36  ;;  %v1235_v40 = vadd.f32 %v1230_v29, %v1223_v38  ;;  %v1215_v41 = vpop.f32.mrb[12].mxu0 }
 0x424   :  { %v1257_v42 = vmul.f32 1.4142135, %v1251_v23  ;;  %vm1240_vm3 = vcmp.ge.f32.partialorder %v1234_v39, 0.0  ;;  %v1246_v45 = vmul.f32 0.2, %v1234_v39  ;;  %v1224_v47 = vmul.f32 %v1215_v41, %v890_v43  ;;  %v1217_v48 = vpop.f32.mrb[13].mxu0 }
 0x425   :  { %1262 = vst [vmem:[%s1804_s8] sm:$0xff] %v1256_v25  ;;  %vm1241_vm4 = vcmp.ge.f32.partialorder %v1235_v40, 0.0  ;;  %v1247_v44 = vmul.f32 0.2, %v1235_v40  ;;  %v1225_v46 = vmul.f32 %v1217_v48, %v892_v27 }
 0x426   :  { %1263 = vst [vmem:[%s1804_s8 + $0x8] sm:$0xff] %v1257_v42  ;;  %v1252_v49 = vsel %vm1240_vm3, %v1234_v39, %v1246_v45  ;;  %v1236_v50 = vadd.f32 %v1230_v29, %v1224_v47 }
 0x427   :  { %v1258_v51 = vmul.f32 1.4142135, %v1252_v49  ;;  %v1253_v52 = vsel %vm1241_vm4, %v1235_v40, %v1247_v44  ;;  %v1237_v53 = vadd.f32 %v1230_v29, %v1225_v46 }
 0x428   :  { %v1259_v54 = vmul.f32 1.4142135, %v1253_v52  ;;  %vm1242_vm5 = vcmp.ge.f32.partialorder %v1236_v50, 0.0  ;;  %v1248_v56 = vmul.f32 0.2, %v1236_v50 }
 0x429   :  { %1264 = vst [vmem:[%s1804_s8 + $0x10] sm:$0xff] %v1258_v51  ;;  %vm1243_vm6 = vcmp.ge.f32.partialorder %v1237_v53, 0.0  ;;  %v1249_v60 = vmul.f32 0.2, %v1237_v53 }
 0x42a   :  { %1265 = vst [vmem:[%s1804_s8 + $0x18] sm:$0xff] %v1259_v54  ;;  %v1254_v62 = vsel %vm1242_vm5, %v1236_v50, %v1248_v56 }
 0x42b   :  { %v1260_v63 = vmul.f32 1.4142135, %v1254_v62  ;;  %v1255_v0 = vsel %vm1243_vm6, %v1237_v53, %v1249_v60 }
 0x42c   :  { %v1261_v7 = vmul.f32 1.4142135, %v1255_v0 }
 0x42d   :  { %1266 = vst [vmem:[%s1804_s8 + $0x20] sm:$0xff] %v1260_v63 }
 0x42e   :  { %1267 = vst.msk [vmem:[%s1804_s8 + $0x28] sm:$0xff] %vm899_vm0, %v1261_v7 }

</bundles_post_ra>
